<compile_context>
chip_gen: v6e
topology: v6e:2x2x1
jax: 0.10.0
libtpu: 0.0.40
codegen_flags: <defaults>
</compile_context>

<pallas_src>
import functools
import numpy as np
import jax
import jax.numpy as jnp
from jax.experimental import pallas as pl
from jax.experimental.pallas import tpu as pltpu

MODEL_DIM = 32
HEADS = 4
PWFF_MID = 64
NUM_BLOCKS = 2
LN_EPS = 1e-6
OUT_PAD = 128          # lane-dense padding for the final vocab projection
DEC_VOCAB = 24
ENC_VOCAB = 20

_VMEM = pl.BlockSpec(memory_space=pltpu.MemorySpace.VMEM)


# ----------------------- in-kernel helpers (traced inside kernels) -----------------------

def _ln(x, g, b, eps=LN_EPS):
    """torch-style LayerNorm: unbiased std (N-1), eps added to std."""
    d = x.shape[-1]
    mean = jnp.mean(x, axis=-1, keepdims=True)
    diff = x - mean
    var = jnp.sum(diff * diff, axis=-1, keepdims=True) * (1.0 / (d - 1))
    std = jnp.sqrt(var) + eps
    return g * (diff * pl.reciprocal(std, approx=True)) + b


def _mha_from_qkv(q2d, k2d, v2d, wo, mask, batch, sq, sk, heads, dh):
    """All-heads scaled-dot-product attention + output projection.

    q2d: [B*Sq, D]  k2d/v2d: [B*Sk, D]  wo: [D, D]  mask: [B, Sq, Sk] (1=keep).
    Output projection is fused into the head loop:
        concat(heads) @ wo == sum_h head_h @ wo[h*dh:(h+1)*dh, :]
    Returns [B*Sq, D].
    """
    inv_dh = 1.0 / dh            # reference divides by head_dim (not sqrt)
    out = None
    for h in range(heads):
        qh = q2d[:, h * dh:(h + 1) * dh].reshape(batch, sq, dh)
        kh = k2d[:, h * dh:(h + 1) * dh].reshape(batch, sk, dh)
        vh = v2d[:, h * dh:(h + 1) * dh].reshape(batch, sk, dh)
        s = jnp.einsum('bqd,bkd->bqk', qh, kh,
                       preferred_element_type=jnp.float32) * inv_dh
        s = jnp.where(mask == 0.0, -1e9, s)
        s = s - jnp.max(s, axis=-1, keepdims=True)
        p = jnp.exp(s)
        p = p * pl.reciprocal(jnp.sum(p, axis=-1, keepdims=True), approx=True)
        oh = jnp.einsum('bqk,bkd->bqd', p, vh,
                        preferred_element_type=jnp.float32)
        part = jnp.dot(oh.reshape(batch * sq, dh), wo[h * dh:(h + 1) * dh, :],
                       preferred_element_type=jnp.float32)
        out = part if out is None else out + part
    return out


# ----------------------- fused Pallas kernels -----------------------

def _encoder_block_kernel(x_ref, mask_ref, wqkv_ref, wo_ref, g1_ref, b1_ref,
                          w1_ref, c1_ref, w2_ref, c2_ref, g2_ref, b2_ref,
                          o_ref, *, batch, seq, heads):
    d = x_ref.shape[-1]
    dh = d // heads
    x = x_ref[...]                                             # [B*S, D]
    mask = mask_ref[...]                                       # [B, S, S]

    # --- multi-head self attention (fused QKV + output proj) ---
    qkv = jnp.dot(x, wqkv_ref[...], preferred_element_type=jnp.float32)   # [B*S, 3D]
    attn = _mha_from_qkv(qkv[:, :d], qkv[:, d:2 * d], qkv[:, 2 * d:],
                         wo_ref[...], mask, batch, seq, seq, heads, dh)
    h1 = _ln(x + attn, g1_ref[...], b1_ref[...])               # residual + LN1

    # --- position-wise feed forward ---
    ff = jnp.dot(h1, w1_ref[...], preferred_element_type=jnp.float32) + c1_ref[...]
    ff = jnp.maximum(ff, 0.0)
    ff = jnp.dot(ff, w2_ref[...], preferred_element_type=jnp.float32) + c2_ref[...]
    o_ref[...] = _ln(h1 + ff, g2_ref[...], b2_ref[...])        # residual + LN2


def _decoder_block_kernel(x_ref, enc_ref, tmask_ref, smask_ref,
                          swqkv_ref, swo_ref, g1_ref, b1_ref,
                          cwq_ref, cwkv_ref, cwo_ref, g2_ref, b2_ref,
                          w1_ref, c1_ref, w2_ref, c2_ref, g3_ref, b3_ref,
                          o_ref, *, batch, seq_q, seq_k, heads):
    d = x_ref.shape[-1]
    dh = d // heads
    x = x_ref[...]                                             # [B*Sq, D]
    enc = enc_ref[...]                                         # [B*Sk, D]

    # --- masked self attention ---
    sqkv = jnp.dot(x, swqkv_ref[...], preferred_element_type=jnp.float32)  # [B*Sq, 3D]
    self_attn = _mha_from_qkv(sqkv[:, :d], sqkv[:, d:2 * d], sqkv[:, 2 * d:],
                              swo_ref[...], tmask_ref[...],
                              batch, seq_q, seq_q, heads, dh)
    h1 = _ln(x + self_attn, g1_ref[...], b1_ref[...])

    # --- encoder-decoder cross attention ---
    q = jnp.dot(h1, cwq_ref[...], preferred_element_type=jnp.float32)      # [B*Sq, D]
    kv = jnp.dot(enc, cwkv_ref[...], preferred_element_type=jnp.float32)   # [B*Sk, 2D]
    cross = _mha_from_qkv(q, kv[:, :d], kv[:, d:],
                          cwo_ref[...], smask_ref[...],
                          batch, seq_q, seq_k, heads, dh)
    h2 = _ln(h1 + cross, g2_ref[...], b2_ref[...])

    # --- position-wise feed forward ---
    ff = jnp.dot(h2, w1_ref[...], preferred_element_type=jnp.float32) + c1_ref[...]
    ff = jnp.maximum(ff, 0.0)
    ff = jnp.dot(ff, w2_ref[...], preferred_element_type=jnp.float32) + c2_ref[...]
    o_ref[...] = _ln(h2 + ff, g3_ref[...], b3_ref[...])


def _add_ln_kernel(x_ref, y_ref, g_ref, b_ref, o_ref):
    # (scaled embedding + positional term) -> LayerNorm, fused.
    o_ref[...] = _ln(x_ref[...] + y_ref[...], g_ref[...], b_ref[...])


def _linear_kernel(x_ref, w_ref, b_ref, o_ref):
    o_ref[...] = jnp.dot(x_ref[...], w_ref[...],
                         preferred_element_type=jnp.float32) + b_ref[...]


# ----------------------- pallas_call wrappers -----------------------

def encoder_block_call(x2d, mask3, p, batch, seq):
    n, d = x2d.shape
    kernel = functools.partial(_encoder_block_kernel,
                               batch=batch, seq=seq, heads=HEADS)
    return pl.pallas_call(
        kernel,
        out_shape=jax.ShapeDtypeStruct((n, d), jnp.float32),
        in_specs=[_VMEM] * 12,
        out_specs=_VMEM,
    )(x2d, mask3, p['wqkv'], p['wo'], p['ln1_g'], p['ln1_b'],
      p['w1'], p['c1'], p['w2'], p['c2'], p['ln2_g'], p['ln2_b'])


def decoder_block_call(x2d, enc2d, tmask3, smask3, p, batch, seq_q, seq_k):
    n, d = x2d.shape
    kernel = functools.partial(_decoder_block_kernel,
                               batch=batch, seq_q=seq_q, seq_k=seq_k, heads=HEADS)
    return pl.pallas_call(
        kernel,
        out_shape=jax.ShapeDtypeStruct((n, d), jnp.float32),
        in_specs=[_VMEM] * 19,
        out_specs=_VMEM,
    )(x2d, enc2d, tmask3, smask3,
      p['swqkv'], p['swo'], p['ln1_g'], p['ln1_b'],
      p['cwq'], p['cwkv'], p['cwo'], p['ln2_g'], p['ln2_b'],
      p['w1'], p['c1'], p['w2'], p['c2'], p['ln3_g'], p['ln3_b'])


def pallas_add_layernorm(x2d, y2d, gamma, beta):
    n, d = x2d.shape
    return pl.pallas_call(
        _add_ln_kernel,
        out_shape=jax.ShapeDtypeStruct((n, d), jnp.float32),
        in_specs=[_VMEM] * 4,
        out_specs=_VMEM,
    )(x2d, y2d, gamma, beta)


def pallas_linear(x2d, w, b):
    n = x2d.shape[0]
    dout = w.shape[1]
    return pl.pallas_call(
        _linear_kernel,
        out_shape=jax.ShapeDtypeStruct((n, dout), jnp.float32),
        in_specs=[_VMEM] * 3,
        out_specs=_VMEM,
    )(x2d, w, b)


# ----------------------- model forward (jitted glue) -----------------------

_SQRT_D = float(np.sqrt(MODEL_DIM))


def encoder_forward(p, x_tok, pos_src, enc_mask3):
    b, s = x_tok.shape
    emb = jnp.take(p['embed'], x_tok, axis=0) * _SQRT_D          # [B, S, D]
    x2d = (emb.reshape(b * s, MODEL_DIM))
    x2d = pallas_add_layernorm(x2d, pos_src.reshape(b * s, MODEL_DIM),
                               p['ln_g'], p['ln_b'])
    for blk in p['blocks']:
        x2d = encoder_block_call(x2d, enc_mask3, blk, b, s)
    return x2d                                                   # [B*S_src, D]


def decoder_forward(p, y_tok, pos_tgt, enc2d, self_mask3, cross_mask3, seq_k):
    b, s = y_tok.shape
    emb = jnp.take(p['embed'], y_tok, axis=0) * _SQRT_D          # [B, S, D]
    x2d = emb.reshape(b * s, MODEL_DIM)
    x2d = pallas_add_layernorm(x2d, pos_tgt.reshape(b * s, MODEL_DIM),
                               p['ln_g'], p['ln_b'])
    for blk in p['blocks']:
        x2d = decoder_block_call(x2d, enc2d, self_mask3, cross_mask3,
                                 blk, b, s, seq_k)
    logits = pallas_linear(x2d, p['out_w_pad'], p['out_b_pad'])  # [B*S, 128] lane-dense
    return logits[:, :DEC_VOCAB].reshape(b, s, DEC_VOCAB)


@jax.jit
def transformer_apply(params, x_tok, y_tok, pos_src, pos_tgt,
                      enc_mask3, dec_self_mask3, dec_cross_mask3):
    seq_k = x_tok.shape[1]
    enc2d = encoder_forward(params['encoder'], x_tok, pos_src, enc_mask3)
    return decoder_forward(params['decoder'], y_tok, pos_tgt, enc2d,
                           dec_self_mask3, dec_cross_mask3, seq_k)


# ----------------------- host-side glue (positional encodings, masks) -----------------------

def make_pos_table(d):
    pos = np.arange(0, d, 1)
    emb = np.zeros([d, d], dtype=np.float32)
    for i in range(d // 2):
        denom = 10000 ** (2 * i / d)
        emb[:, 2 * i] = np.sin(pos / denom)
        emb[:, 2 * i + 1] = np.cos(pos / denom)
    return emb


def make_pos_term(lens, seq, pe_np):
    # Matches pad_sequence(get_positional_encodings(lens)).transpose(1, 0):
    # position t of sequence b gets PE[t] if t < lens[b], else 0 (padding).
    b = len(lens)
    out = np.zeros((b, seq, pe_np.shape[1]), np.float32)
    for bi, ln in enumerate(lens):
        l = min(int(ln), seq)
        out[bi, :l, :] = pe_np[:l, :]
    return jnp.asarray(out)


# ----------------------- parameter init -----------------------

def glorot_uniform(key, din, dout):
    r = float(np.sqrt(3.0 / ((din + dout) / 2.0)))
    return jax.random.uniform(key, (din, dout), jnp.float32, -r, r)


def xavier_uniform(key, n, d):
    r = float(np.sqrt(6.0 / (n + d)))
    return jax.random.uniform(key, (n, d), jnp.float32, -r, r)


def _ln_params(d):
    return jnp.ones((1, d), jnp.float32), jnp.zeros((1, d), jnp.float32)


def init_encoder_block(key, d, mid):
    ks = jax.random.split(key, 6)
    wq, wk, wv, wo = (glorot_uniform(ks[i], d, d) for i in range(4))
    g1, b1 = _ln_params(d)
    g2, b2 = _ln_params(d)
    return {'wqkv': jnp.concatenate([wq, wk, wv], axis=1), 'wo': wo,
            'ln1_g': g1, 'ln1_b': b1,
            'w1': glorot_uniform(ks[4], d, mid), 'c1': jnp.zeros((1, mid), jnp.float32),
            'w2': glorot_uniform(ks[5], mid, d), 'c2': jnp.zeros((1, d), jnp.float32),
            'ln2_g': g2, 'ln2_b': b2}


def init_decoder_block(key, d, mid):
    ks = jax.random.split(key, 10)
    swq, swk, swv, swo = (glorot_uniform(ks[i], d, d) for i in range(4))
    cwq, cwk, cwv, cwo = (glorot_uniform(ks[4 + i], d, d) for i in range(4))
    g1, b1 = _ln_params(d)
    g2, b2 = _ln_params(d)
    g3, b3 = _ln_params(d)
    return {'swqkv': jnp.concatenate([swq, swk, swv], axis=1), 'swo': swo,
            'ln1_g': g1, 'ln1_b': b1,
            'cwq': cwq, 'cwkv': jnp.concatenate([cwk, cwv], axis=1), 'cwo': cwo,
            'ln2_g': g2, 'ln2_b': b2,
            'w1': glorot_uniform(ks[8], d, mid), 'c1': jnp.zeros((1, mid), jnp.float32),
            'w2': glorot_uniform(ks[9], mid, d), 'c2': jnp.zeros((1, d), jnp.float32),
            'ln3_g': g3, 'ln3_b': b3}


def init_transformer(key, enc_vocab, dec_vocab):
    d, mid = MODEL_DIM, PWFF_MID
    ke, kd, keb, kdb, ko = jax.random.split(key, 5)
    g_e, b_e = _ln_params(d)
    g_d, b_d = _ln_params(d)
    # NOTE: reference re-applies xavier_uniform_ over the whole embedding, so the
    # padding_idx row is NOT zero; plain xavier init matches that behavior.
    enc = {'embed': xavier_uniform(ke, enc_vocab, d),
           'ln_g': g_e, 'ln_b': b_e,
           'blocks': [init_encoder_block(k, d, mid)
                      for k in jax.random.split(keb, NUM_BLOCKS)]}
    out_w = glorot_uniform(ko, d, dec_vocab)
    out_w_pad = jnp.zeros((d, OUT_PAD), jnp.float32).at[:, :dec_vocab].set(out_w)
    dec = {'embed': xavier_uniform(kd, dec_vocab, d),
           'ln_g': g_d, 'ln_b': b_d,
           'blocks': [init_decoder_block(k, d, mid)
                      for k in jax.random.split(kdb, NUM_BLOCKS)],
           'out_w_pad': out_w_pad,
           'out_b_pad': jnp.zeros((1, OUT_PAD), jnp.float32)}
    return {'encoder': enc, 'decoder': dec}


# ----------------------- Main -----------------------

if __name__ == "__main__":
    B, S_SRC, S_TGT = 2, 8, 8
    src_lens = [8, 6]
    tgt_lens = [9, 7]                       # decoder positional lens = tgt_lens - 1
    tgt_input_lens = [l - 1 for l in tgt_lens]

    key = jax.random.PRNGKey(0)
    k_params, k_x, k_y = jax.random.split(key, 3)
    params = init_transformer(k_params, ENC_VOCAB, DEC_VOCAB)

    x = jax.random.randint(k_x, (B, S_SRC), 1, ENC_VOCAB, dtype=jnp.int32)
    y = jax.random.randint(k_y, (B, S_TGT), 1, DEC_VOCAB, dtype=jnp.int32)

    # Positional-encoding terms (already gated by sequence lengths), host-side.
    pe = make_pos_table(MODEL_DIM)
    pos_src = make_pos_term(src_lens, S_SRC, pe)           # [B, S_src, D]
    pos_tgt = make_pos_term(tgt_input_lens, S_TGT, pe)     # [B, S_tgt, D]

    # Compact masks broadcast once on host to [B, Sq, Sk] (1 = attend).
    src_valid = (np.arange(S_SRC)[None, :] < np.asarray(src_lens)[:, None]
                 ).astype(np.float32)                      # [B, S_src]
    enc_mask3 = jnp.asarray(np.broadcast_to(src_valid[:, None, :],
                                            (B, S_SRC, S_SRC)).copy())
    dec_cross_mask3 = jnp.asarray(np.broadcast_to(src_valid[:, None, :],
                                                  (B, S_TGT, S_SRC)).copy())
    causal = np.tril(np.ones((S_TGT, S_TGT), np.float32))
    dec_self_mask3 = jnp.asarray(np.broadcast_to(causal[None, :, :],
                                                 (B, S_TGT, S_TGT)).copy())

    out = transformer_apply(params, x, y, pos_src, pos_tgt,
                            enc_mask3, dec_self_mask3, dec_cross_mask3)
    out = jax.block_until_ready(out)
    assert out.shape == (B, S_TGT, DEC_VOCAB)
    assert bool(jnp.all(jnp.isfinite(out)))
    print("KERNEL_OK")
</pallas_src>

<mosaic_0001>
module attributes {stable_mosaic.version = 11 : i64} {
  func.func @_add_ln_kernel(%arg0: memref<16x32xf32, #tpu.memory_space<vmem>>, %arg1: memref<16x32xf32, #tpu.memory_space<vmem>>, %arg2: memref<1x32xf32, #tpu.memory_space<vmem>>, %arg3: memref<1x32xf32, #tpu.memory_space<vmem>>, %arg4: memref<16x32xf32, #tpu.memory_space<vmem>>) attributes {dimension_semantics = [], scalar_prefetch = 0 : i64, scratch_operands = 0 : i64, tpu.core_type = #tpu.core_type<tc>} {
    %c0 = arith.constant 0 : index
    %c0_0 = arith.constant 0 : index
    %0 = vector.load %arg0[%c0, %c0_0] : memref<16x32xf32, #tpu.memory_space<vmem>>, vector<16x32xf32>
    %c0_1 = arith.constant 0 : index
    %c0_2 = arith.constant 0 : index
    %1 = vector.load %arg1[%c0_1, %c0_2] : memref<16x32xf32, #tpu.memory_space<vmem>>, vector<16x32xf32>
    %2 = arith.addf %0, %1 : vector<16x32xf32>
    %c0_3 = arith.constant 0 : index
    %c0_4 = arith.constant 0 : index
    %3 = vector.load %arg2[%c0_3, %c0_4] : memref<1x32xf32, #tpu.memory_space<vmem>>, vector<1x32xf32>
    %c0_5 = arith.constant 0 : index
    %c0_6 = arith.constant 0 : index
    %4 = vector.load %arg3[%c0_5, %c0_6] : memref<1x32xf32, #tpu.memory_space<vmem>>, vector<1x32xf32>
    %cst = arith.constant dense<0.000000e+00> : vector<16xf32>
    %5 = vector.multi_reduction <add>, %2, %cst [1] : vector<16x32xf32> to vector<16xf32>
    %6 = vector.shape_cast %5 : vector<16xf32> to vector<16x1xf32>
    %cst_7 = arith.constant 3.200000e+01 : f32
    %7 = vector.broadcast %cst_7 : f32 to vector<16x1xf32>
    %8 = arith.divf %6, %7 : vector<16x1xf32>
    %9 = vector.broadcast %8 : vector<16x1xf32> to vector<16x32xf32>
    %10 = arith.subf %2, %9 : vector<16x32xf32>
    %11 = arith.mulf %10, %10 : vector<16x32xf32>
    %cst_8 = arith.constant dense<0.000000e+00> : vector<16xf32>
    %12 = vector.multi_reduction <add>, %11, %cst_8 [1] : vector<16x32xf32> to vector<16xf32>
    %13 = vector.shape_cast %12 : vector<16xf32> to vector<16x1xf32>
    %cst_9 = arith.constant 0.0322580636 : f32
    %14 = vector.broadcast %cst_9 : f32 to vector<16x1xf32>
    %15 = arith.mulf %13, %14 : vector<16x1xf32>
    %16 = math.sqrt %15 : vector<16x1xf32>
    %cst_10 = arith.constant 9.99999997E-7 : f32
    %17 = vector.broadcast %cst_10 : f32 to vector<16x1xf32>
    %18 = arith.addf %16, %17 : vector<16x1xf32>
    %19 = tpu.reciprocal %18 {approx = true} : vector<16x1xf32> -> vector<16x1xf32>
    %20 = vector.broadcast %19 : vector<16x1xf32> to vector<16x32xf32>
    %21 = arith.mulf %10, %20 : vector<16x32xf32>
    %22 = vector.broadcast %3 : vector<1x32xf32> to vector<16x32xf32>
    %23 = arith.mulf %22, %21 : vector<16x32xf32>
    %24 = vector.broadcast %4 : vector<1x32xf32> to vector<16x32xf32>
    %25 = arith.addf %23, %24 : vector<16x32xf32>
    %c0_11 = arith.constant 0 : index
    %c0_12 = arith.constant 0 : index
    %26 = vector.load %arg4[%c0_11, %c0_12] : memref<16x32xf32, #tpu.memory_space<vmem>>, vector<16x32xf32>
    tpu.vector_store %arg4[%c0_11, %c0_12], %25 {strides = array<i32>} : memref<16x32xf32, #tpu.memory_space<vmem>>, vector<16x32xf32>,
    return
  }
}

module attributes {stable_mosaic.version = 11 : i64} {
  func.func @_encoder_block_kernel(%arg0: memref<16x32xf32, #tpu.memory_space<vmem>>, %arg1: memref<2x8x8xf32, #tpu.memory_space<vmem>>, %arg2: memref<32x96xf32, #tpu.memory_space<vmem>>, %arg3: memref<32x32xf32, #tpu.memory_space<vmem>>, %arg4: memref<1x32xf32, #tpu.memory_space<vmem>>, %arg5: memref<1x32xf32, #tpu.memory_space<vmem>>, %arg6: memref<32x64xf32, #tpu.memory_space<vmem>>, %arg7: memref<1x64xf32, #tpu.memory_space<vmem>>, %arg8: memref<64x32xf32, #tpu.memory_space<vmem>>, %arg9: memref<1x32xf32, #tpu.memory_space<vmem>>, %arg10: memref<1x32xf32, #tpu.memory_space<vmem>>, %arg11: memref<1x32xf32, #tpu.memory_space<vmem>>, %arg12: memref<16x32xf32, #tpu.memory_space<vmem>>) attributes {dimension_semantics = [], scalar_prefetch = 0 : i64, scratch_operands = 0 : i64, tpu.core_type = #tpu.core_type<tc>} {
    %c0 = arith.constant 0 : index
    %c0_0 = arith.constant 0 : index
    %0 = vector.load %arg0[%c0, %c0_0] : memref<16x32xf32, #tpu.memory_space<vmem>>, vector<16x32xf32>
    %c0_1 = arith.constant 0 : index
    %c0_2 = arith.constant 0 : index
    %c0_3 = arith.constant 0 : index
    %1 = vector.load %arg1[%c0_1, %c0_2, %c0_3] : memref<2x8x8xf32, #tpu.memory_space<vmem>>, vector<2x8x8xf32>
    %c0_4 = arith.constant 0 : index
    %c0_5 = arith.constant 0 : index
    %2 = vector.load %arg2[%c0_4, %c0_5] : memref<32x96xf32, #tpu.memory_space<vmem>>, vector<32x96xf32>
    %cst = arith.constant dense<0.000000e+00> : vector<16x96xf32>
    %3 = tpu.matmul %0, %2, %cst {dimension_numbers = #tpu.dot_dimension_numbers<[1], [0], [0], [1], [0, 0, 1, 1], [], []>} : vector<16x32xf32>, vector<32x96xf32>, vector<16x96xf32> -> vector<16x96xf32>
    %4 = vector.extract_strided_slice %3 {offsets = [0, 0], sizes = [16, 32], strides = [1, 1]} : vector<16x96xf32> to vector<16x32xf32>
    %5 = vector.extract_strided_slice %3 {offsets = [0, 32], sizes = [16, 32], strides = [1, 1]} : vector<16x96xf32> to vector<16x32xf32>
    %6 = vector.extract_strided_slice %3 {offsets = [0, 64], sizes = [16, 32], strides = [1, 1]} : vector<16x96xf32> to vector<16x32xf32>
    %c0_6 = arith.constant 0 : index
    %c0_7 = arith.constant 0 : index
    %7 = vector.load %arg3[%c0_6, %c0_7] : memref<32x32xf32, #tpu.memory_space<vmem>>, vector<32x32xf32>
    %8 = vector.extract_strided_slice %4 {offsets = [0, 0], sizes = [16, 8], strides = [1, 1]} : vector<16x32xf32> to vector<16x8xf32>
    %9 = vector.shape_cast %8 : vector<16x8xf32> to vector<2x8x8xf32>
    %10 = vector.extract_strided_slice %5 {offsets = [0, 0], sizes = [16, 8], strides = [1, 1]} : vector<16x32xf32> to vector<16x8xf32>
    %11 = vector.shape_cast %10 : vector<16x8xf32> to vector<2x8x8xf32>
    %12 = vector.extract_strided_slice %6 {offsets = [0, 0], sizes = [16, 8], strides = [1, 1]} : vector<16x32xf32> to vector<16x8xf32>
    %13 = vector.shape_cast %12 : vector<16x8xf32> to vector<2x8x8xf32>
    "tpu.trace_start"() <{level = 10 : i32, message = "bqd,bkd->bqk"}> : () -> ()
    %cst_8 = arith.constant dense<0.000000e+00> : vector<2x8x8xf32>
    %14 = tpu.matmul %9, %11, %cst_8 {dimension_numbers = #tpu.dot_dimension_numbers<[2], [2], [1], [1], [0, 0, 0, 1, 1, 1], [0], [0]>} : vector<2x8x8xf32>, vector<2x8x8xf32>, vector<2x8x8xf32> -> vector<2x8x8xf32>
    "tpu.trace_stop"() : () -> ()
    %cst_9 = arith.constant 1.250000e-01 : f32
    %15 = vector.broadcast %cst_9 : f32 to vector<2x8x8xf32>
    %16 = arith.mulf %14, %15 : vector<2x8x8xf32>
    %cst_10 = arith.constant 0.000000e+00 : f32
    %17 = vector.broadcast %cst_10 : f32 to vector<2x8x8xf32>
    %18 = arith.cmpf oeq, %1, %17 : vector<2x8x8xf32>
    %cst_11 = arith.constant -1.000000e+09 : f32
    %19 = vector.broadcast %cst_11 : f32 to vector<2x8x8xf32>
    %20 = arith.select %18, %19, %16 : vector<2x8x8xi1>, vector<2x8x8xf32>
    %cst_12 = arith.constant dense<0xFF800000> : vector<2x8xf32>
    %21 = vector.multi_reduction <maximumf>, %20, %cst_12 [2] : vector<2x8x8xf32> to vector<2x8xf32>
    %22 = vector.shape_cast %21 : vector<2x8xf32> to vector<2x8x1xf32>
    %23 = vector.broadcast %22 : vector<2x8x1xf32> to vector<2x8x8xf32>
    %24 = arith.subf %20, %23 : vector<2x8x8xf32>
    %25 = math.exp %24 : vector<2x8x8xf32>
    %cst_13 = arith.constant dense<0.000000e+00> : vector<2x8xf32>
    %26 = vector.multi_reduction <add>, %25, %cst_13 [2] : vector<2x8x8xf32> to vector<2x8xf32>
    %27 = vector.shape_cast %26 : vector<2x8xf32> to vector<2x8x1xf32>
    %28 = tpu.reciprocal %27 {approx = true} : vector<2x8x1xf32> -> vector<2x8x1xf32>
    %29 = vector.broadcast %28 : vector<2x8x1xf32> to vector<2x8x8xf32>
    %30 = arith.mulf %25, %29 : vector<2x8x8xf32>
    "tpu.trace_start"() <{level = 10 : i32, message = "bqk,bkd->bqd"}> : () -> ()
    %cst_14 = arith.constant dense<0.000000e+00> : vector<2x8x8xf32>
    %31 = tpu.matmul %30, %13, %cst_14 {dimension_numbers = #tpu.dot_dimension_numbers<[2], [1], [1], [2], [0, 0, 0, 1, 1, 2], [0], [0]>} : vector<2x8x8xf32>, vector<2x8x8xf32>, vector<2x8x8xf32> -> vector<2x8x8xf32>
    "tpu.trace_stop"() : () -> ()
    %32 = vector.shape_cast %31 : vector<2x8x8xf32> to vector<16x8xf32>
    %33 = vector.extract_strided_slice %7 {offsets = [0, 0], sizes = [8, 32], strides = [1, 1]} : vector<32x32xf32> to vector<8x32xf32>
    %cst_15 = arith.constant dense<0.000000e+00> : vector<16x32xf32>
    %34 = tpu.matmul %32, %33, %cst_15 {dimension_numbers = #tpu.dot_dimension_numbers<[1], [0], [0], [1], [0, 0, 1, 1], [], []>} : vector<16x8xf32>, vector<8x32xf32>, vector<16x32xf32> -> vector<16x32xf32>
    %35 = vector.extract_strided_slice %4 {offsets = [0, 8], sizes = [16, 8], strides = [1, 1]} : vector<16x32xf32> to vector<16x8xf32>
    %36 = vector.shape_cast %35 : vector<16x8xf32> to vector<2x8x8xf32>
    %37 = vector.extract_strided_slice %5 {offsets = [0, 8], sizes = [16, 8], strides = [1, 1]} : vector<16x32xf32> to vector<16x8xf32>
    %38 = vector.shape_cast %37 : vector<16x8xf32> to vector<2x8x8xf32>
    %39 = vector.extract_strided_slice %6 {offsets = [0, 8], sizes = [16, 8], strides = [1, 1]} : vector<16x32xf32> to vector<16x8xf32>
    %40 = vector.shape_cast %39 : vector<16x8xf32> to vector<2x8x8xf32>
    "tpu.trace_start"() <{level = 10 : i32, message = "bqd,bkd->bqk"}> : () -> ()
    %cst_16 = arith.constant dense<0.000000e+00> : vector<2x8x8xf32>
    %41 = tpu.matmul %36, %38, %cst_16 {dimension_numbers = #tpu.dot_dimension_numbers<[2], [2], [1], [1], [0, 0, 0, 1, 1, 1], [0], [0]>} : vector<2x8x8xf32>, vector<2x8x8xf32>, vector<2x8x8xf32> -> vector<2x8x8xf32>
    "tpu.trace_stop"() : () -> ()
    %cst_17 = arith.constant 1.250000e-01 : f32
    %42 = vector.broadcast %cst_17 : f32 to vector<2x8x8xf32>
    %43 = arith.mulf %41, %42 : vector<2x8x8xf32>
    %cst_18 = arith.constant 0.000000e+00 : f32
    %44 = vector.broadcast %cst_18 : f32 to vector<2x8x8xf32>
    %45 = arith.cmpf oeq, %1, %44 : vector<2x8x8xf32>
    %cst_19 = arith.constant -1.000000e+09 : f32
    %46 = vector.broadcast %cst_19 : f32 to vector<2x8x8xf32>
    %47 = arith.select %45, %46, %43 : vector<2x8x8xi1>, vector<2x8x8xf32>
    %cst_20 = arith.constant dense<0xFF800000> : vector<2x8xf32>
    %48 = vector.multi_reduction <maximumf>, %47, %cst_20 [2] : vector<2x8x8xf32> to vector<2x8xf32>
    %49 = vector.shape_cast %48 : vector<2x8xf32> to vector<2x8x1xf32>
    %50 = vector.broadcast %49 : vector<2x8x1xf32> to vector<2x8x8xf32>
    %51 = arith.subf %47, %50 : vector<2x8x8xf32>
    %52 = math.exp %51 : vector<2x8x8xf32>
    %cst_21 = arith.constant dense<0.000000e+00> : vector<2x8xf32>
    %53 = vector.multi_reduction <add>, %52, %cst_21 [2] : vector<2x8x8xf32> to vector<2x8xf32>
    %54 = vector.shape_cast %53 : vector<2x8xf32> to vector<2x8x1xf32>
    %55 = tpu.reciprocal %54 {approx = true} : vector<2x8x1xf32> -> vector<2x8x1xf32>
    %56 = vector.broadcast %55 : vector<2x8x1xf32> to vector<2x8x8xf32>
    %57 = arith.mulf %52, %56 : vector<2x8x8xf32>
    "tpu.trace_start"() <{level = 10 : i32, message = "bqk,bkd->bqd"}> : () -> ()
    %cst_22 = arith.constant dense<0.000000e+00> : vector<2x8x8xf32>
    %58 = tpu.matmul %57, %40, %cst_22 {dimension_numbers = #tpu.dot_dimension_numbers<[2], [1], [1], [2], [0, 0, 0, 1, 1, 2], [0], [0]>} : vector<2x8x8xf32>, vector<2x8x8xf32>, vector<2x8x8xf32> -> vector<2x8x8xf32>
    "tpu.trace_stop"() : () -> ()
    %59 = vector.shape_cast %58 : vector<2x8x8xf32> to vector<16x8xf32>
    %60 = vector.extract_strided_slice %7 {offsets = [8, 0], sizes = [8, 32], strides = [1, 1]} : vector<32x32xf32> to vector<8x32xf32>
    %cst_23 = arith.constant dense<0.000000e+00> : vector<16x32xf32>
    %61 = tpu.matmul %59, %60, %cst_23 {dimension_numbers = #tpu.dot_dimension_numbers<[1], [0], [0], [1], [0, 0, 1, 1], [], []>} : vector<16x8xf32>, vector<8x32xf32>, vector<16x32xf32> -> vector<16x32xf32>
    %62 = arith.addf %34, %61 : vector<16x32xf32>
    %63 = vector.extract_strided_slice %4 {offsets = [0, 16], sizes = [16, 8], strides = [1, 1]} : vector<16x32xf32> to vector<16x8xf32>
    %64 = vector.shape_cast %63 : vector<16x8xf32> to vector<2x8x8xf32>
    %65 = vector.extract_strided_slice %5 {offsets = [0, 16], sizes = [16, 8], strides = [1, 1]} : vector<16x32xf32> to vector<16x8xf32>
    %66 = vector.shape_cast %65 : vector<16x8xf32> to vector<2x8x8xf32>
    %67 = vector.extract_strided_slice %6 {offsets = [0, 16], sizes = [16, 8], strides = [1, 1]} : vector<16x32xf32> to vector<16x8xf32>
    %68 = vector.shape_cast %67 : vector<16x8xf32> to vector<2x8x8xf32>
    "tpu.trace_start"() <{level = 10 : i32, message = "bqd,bkd->bqk"}> : () -> ()
    %cst_24 = arith.constant dense<0.000000e+00> : vector<2x8x8xf32>
    %69 = tpu.matmul %64, %66, %cst_24 {dimension_numbers = #tpu.dot_dimension_numbers<[2], [2], [1], [1], [0, 0, 0, 1, 1, 1], [0], [0]>} : vector<2x8x8xf32>, vector<2x8x8xf32>, vector<2x8x8xf32> -> vector<2x8x8xf32>
    "tpu.trace_stop"() : () -> ()
    %cst_25 = arith.constant 1.250000e-01 : f32
    %70 = vector.broadcast %cst_25 : f32 to vector<2x8x8xf32>
    %71 = arith.mulf %69, %70 : vector<2x8x8xf32>
    %cst_26 = arith.constant 0.000000e+00 : f32
    %72 = vector.broadcast %cst_26 : f32 to vector<2x8x8xf32>
    %73 = arith.cmpf oeq, %1, %72 : vector<2x8x8xf32>
    %cst_27 = arith.constant -1.000000e+09 : f32
    %74 = vector.broadcast %cst_27 : f32 to vector<2x8x8xf32>
    %75 = arith.select %73, %74, %71 : vector<2x8x8xi1>, vector<2x8x8xf32>
    %cst_28 = arith.constant dense<0xFF800000> : vector<2x8xf32>
    %76 = vector.multi_reduction <maximumf>, %75, %cst_28 [2] : vector<2x8x8xf32> to vector<2x8xf32>
    %77 = vector.shape_cast %76 : vector<2x8xf32> to vector<2x8x1xf32>
    %78 = vector.broadcast %77 : vector<2x8x1xf32> to vector<2x8x8xf32>
    %79 = arith.subf %75, %78 : vector<2x8x8xf32>
    %80 = math.exp %79 : vector<2x8x8xf32>
    %cst_29 = arith.constant dense<0.000000e+00> : vector<2x8xf32>
    %81 = vector.multi_reduction <add>, %80, %cst_29 [2] : vector<2x8x8xf32> to vector<2x8xf32>
    %82 = vector.shape_cast %81 : vector<2x8xf32> to vector<2x8x1xf32>
    %83 = tpu.reciprocal %82 {approx = true} : vector<2x8x1xf32> -> vector<2x8x1xf32>
    %84 = vector.broadcast %83 : vector<2x8x1xf32> to vector<2x8x8xf32>
    %85 = arith.mulf %80, %84 : vector<2x8x8xf32>
    "tpu.trace_start"() <{level = 10 : i32, message = "bqk,bkd->bqd"}> : () -> ()
    %cst_30 = arith.constant dense<0.000000e+00> : vector<2x8x8xf32>
    %86 = tpu.matmul %85, %68, %cst_30 {dimension_numbers = #tpu.dot_dimension_numbers<[2], [1], [1], [2], [0, 0, 0, 1, 1, 2], [0], [0]>} : vector<2x8x8xf32>, vector<2x8x8xf32>, vector<2x8x8xf32> -> vector<2x8x8xf32>
    "tpu.trace_stop"() : () -> ()
    %87 = vector.shape_cast %86 : vector<2x8x8xf32> to vector<16x8xf32>
    %88 = vector.extract_strided_slice %7 {offsets = [16, 0], sizes = [8, 32], strides = [1, 1]} : vector<32x32xf32> to vector<8x32xf32>
    %cst_31 = arith.constant dense<0.000000e+00> : vector<16x32xf32>
    %89 = tpu.matmul %87, %88, %cst_31 {dimension_numbers = #tpu.dot_dimension_numbers<[1], [0], [0], [1], [0, 0, 1, 1], [], []>} : vector<16x8xf32>, vector<8x32xf32>, vector<16x32xf32> -> vector<16x32xf32>
    %90 = arith.addf %62, %89 : vector<16x32xf32>
    %91 = vector.extract_strided_slice %4 {offsets = [0, 24], sizes = [16, 8], strides = [1, 1]} : vector<16x32xf32> to vector<16x8xf32>
    %92 = vector.shape_cast %91 : vector<16x8xf32> to vector<2x8x8xf32>
    %93 = vector.extract_strided_slice %5 {offsets = [0, 24], sizes = [16, 8], strides = [1, 1]} : vector<16x32xf32> to vector<16x8xf32>
    %94 = vector.shape_cast %93 : vector<16x8xf32> to vector<2x8x8xf32>
    %95 = vector.extract_strided_slice %6 {offsets = [0, 24], sizes = [16, 8], strides = [1, 1]} : vector<16x32xf32> to vector<16x8xf32>
    %96 = vector.shape_cast %95 : vector<16x8xf32> to vector<2x8x8xf32>
    "tpu.trace_start"() <{level = 10 : i32, message = "bqd,bkd->bqk"}> : () -> ()
    %cst_32 = arith.constant dense<0.000000e+00> : vector<2x8x8xf32>
    %97 = tpu.matmul %92, %94, %cst_32 {dimension_numbers = #tpu.dot_dimension_numbers<[2], [2], [1], [1], [0, 0, 0, 1, 1, 1], [0], [0]>} : vector<2x8x8xf32>, vector<2x8x8xf32>, vector<2x8x8xf32> -> vector<2x8x8xf32>
    "tpu.trace_stop"() : () -> ()
    %cst_33 = arith.constant 1.250000e-01 : f32
    %98 = vector.broadcast %cst_33 : f32 to vector<2x8x8xf32>
    %99 = arith.mulf %97, %98 : vector<2x8x8xf32>
    %cst_34 = arith.constant 0.000000e+00 : f32
    %100 = vector.broadcast %cst_34 : f32 to vector<2x8x8xf32>
    %101 = arith.cmpf oeq, %1, %100 : vector<2x8x8xf32>
    %cst_35 = arith.constant -1.000000e+09 : f32
    %102 = vector.broadcast %cst_35 : f32 to vector<2x8x8xf32>
    %103 = arith.select %101, %102, %99 : vector<2x8x8xi1>, vector<2x8x8xf32>
    %cst_36 = arith.constant dense<0xFF800000> : vector<2x8xf32>
    %104 = vector.multi_reduction <maximumf>, %103, %cst_36 [2] : vector<2x8x8xf32> to vector<2x8xf32>
    %105 = vector.shape_cast %104 : vector<2x8xf32> to vector<2x8x1xf32>
    %106 = vector.broadcast %105 : vector<2x8x1xf32> to vector<2x8x8xf32>
    %107 = arith.subf %103, %106 : vector<2x8x8xf32>
    %108 = math.exp %107 : vector<2x8x8xf32>
    %cst_37 = arith.constant dense<0.000000e+00> : vector<2x8xf32>
    %109 = vector.multi_reduction <add>, %108, %cst_37 [2] : vector<2x8x8xf32> to vector<2x8xf32>
    %110 = vector.shape_cast %109 : vector<2x8xf32> to vector<2x8x1xf32>
    %111 = tpu.reciprocal %110 {approx = true} : vector<2x8x1xf32> -> vector<2x8x1xf32>
    %112 = vector.broadcast %111 : vector<2x8x1xf32> to vector<2x8x8xf32>
    %113 = arith.mulf %108, %112 : vector<2x8x8xf32>
    "tpu.trace_start"() <{level = 10 : i32, message = "bqk,bkd->bqd"}> : () -> ()
    %cst_38 = arith.constant dense<0.000000e+00> : vector<2x8x8xf32>
    %114 = tpu.matmul %113, %96, %cst_38 {dimension_numbers = #tpu.dot_dimension_numbers<[2], [1], [1], [2], [0, 0, 0, 1, 1, 2], [0], [0]>} : vector<2x8x8xf32>, vector<2x8x8xf32>, vector<2x8x8xf32> -> vector<2x8x8xf32>
    "tpu.trace_stop"() : () -> ()
    %115 = vector.shape_cast %114 : vector<2x8x8xf32> to vector<16x8xf32>
    %116 = vector.extract_strided_slice %7 {offsets = [24, 0], sizes = [8, 32], strides = [1, 1]} : vector<32x32xf32> to vector<8x32xf32>
    %cst_39 = arith.constant dense<0.000000e+00> : vector<16x32xf32>
    %117 = tpu.matmul %115, %116, %cst_39 {dimension_numbers = #tpu.dot_dimension_numbers<[1], [0], [0], [1], [0, 0, 1, 1], [], []>} : vector<16x8xf32>, vector<8x32xf32>, vector<16x32xf32> -> vector<16x32xf32>
    %118 = arith.addf %90, %117 : vector<16x32xf32>
    %119 = arith.addf %0, %118 : vector<16x32xf32>
    %c0_40 = arith.constant 0 : index
    %c0_41 = arith.constant 0 : index
    %120 = vector.load %arg4[%c0_40, %c0_41] : memref<1x32xf32, #tpu.memory_space<vmem>>, vector<1x32xf32>
    %c0_42 = arith.constant 0 : index
    %c0_43 = arith.constant 0 : index
    %121 = vector.load %arg5[%c0_42, %c0_43] : memref<1x32xf32, #tpu.memory_space<vmem>>, vector<1x32xf32>
    %cst_44 = arith.constant dense<0.000000e+00> : vector<16xf32>
    %122 = vector.multi_reduction <add>, %119, %cst_44 [1] : vector<16x32xf32> to vector<16xf32>
    %123 = vector.shape_cast %122 : vector<16xf32> to vector<16x1xf32>
    %cst_45 = arith.constant 3.200000e+01 : f32
    %124 = vector.broadcast %cst_45 : f32 to vector<16x1xf32>
    %125 = arith.divf %123, %124 : vector<16x1xf32>
    %126 = vector.broadcast %125 : vector<16x1xf32> to vector<16x32xf32>
    %127 = arith.subf %119, %126 : vector<16x32xf32>
    %128 = arith.mulf %127, %127 : vector<16x32xf32>
    %cst_46 = arith.constant dense<0.000000e+00> : vector<16xf32>
    %129 = vector.multi_reduction <add>, %128, %cst_46 [1] : vector<16x32xf32> to vector<16xf32>
    %130 = vector.shape_cast %129 : vector<16xf32> to vector<16x1xf32>
    %cst_47 = arith.constant 0.0322580636 : f32
    %131 = vector.broadcast %cst_47 : f32 to vector<16x1xf32>
    %132 = arith.mulf %130, %131 : vector<16x1xf32>
    %133 = math.sqrt %132 : vector<16x1xf32>
    %cst_48 = arith.constant 9.99999997E-7 : f32
    %134 = vector.broadcast %cst_48 : f32 to vector<16x1xf32>
    %135 = arith.addf %133, %134 : vector<16x1xf32>
    %136 = tpu.reciprocal %135 {approx = true} : vector<16x1xf32> -> vector<16x1xf32>
    %137 = vector.broadcast %136 : vector<16x1xf32> to vector<16x32xf32>
    %138 = arith.mulf %127, %137 : vector<16x32xf32>
    %139 = vector.broadcast %120 : vector<1x32xf32> to vector<16x32xf32>
    %140 = arith.mulf %139, %138 : vector<16x32xf32>
    %141 = vector.broadcast %121 : vector<1x32xf32> to vector<16x32xf32>
    %142 = arith.addf %140, %141 : vector<16x32xf32>
    %c0_49 = arith.constant 0 : index
    %c0_50 = arith.constant 0 : index
    %143 = vector.load %arg6[%c0_49, %c0_50] : memref<32x64xf32, #tpu.memory_space<vmem>>, vector<32x64xf32>
    %cst_51 = arith.constant dense<0.000000e+00> : vector<16x64xf32>
    %144 = tpu.matmul %142, %143, %cst_51 {dimension_numbers = #tpu.dot_dimension_numbers<[1], [0], [0], [1], [0, 0, 1, 1], [], []>} : vector<16x32xf32>, vector<32x64xf32>, vector<16x64xf32> -> vector<16x64xf32>
    %c0_52 = arith.constant 0 : index
    %c0_53 = arith.constant 0 : index
    %145 = vector.load %arg7[%c0_52, %c0_53] : memref<1x64xf32, #tpu.memory_space<vmem>>, vector<1x64xf32>
    %146 = vector.broadcast %145 : vector<1x64xf32> to vector<16x64xf32>
    %147 = arith.addf %144, %146 : vector<16x64xf32>
    %cst_54 = arith.constant 0.000000e+00 : f32
    %148 = vector.broadcast %cst_54 : f32 to vector<16x64xf32>
    %149 = arith.maximumf %147, %148 : vector<16x64xf32>
    %c0_55 = arith.constant 0 : index
    %c0_56 = arith.constant 0 : index
    %150 = vector.load %arg8[%c0_55, %c0_56] : memref<64x32xf32, #tpu.memory_space<vmem>>, vector<64x32xf32>
    %cst_57 = arith.constant dense<0.000000e+00> : vector<16x32xf32>
    %151 = tpu.matmul %149, %150, %cst_57 {dimension_numbers = #tpu.dot_dimension_numbers<[1], [0], [0], [1], [0, 0, 1, 1], [], []>} : vector<16x64xf32>, vector<64x32xf32>, vector<16x32xf32> -> vector<16x32xf32>
    %c0_58 = arith.constant 0 : index
    %c0_59 = arith.constant 0 : index
    %152 = vector.load %arg9[%c0_58, %c0_59] : memref<1x32xf32, #tpu.memory_space<vmem>>, vector<1x32xf32>
    %153 = vector.broadcast %152 : vector<1x32xf32> to vector<16x32xf32>
    %154 = arith.addf %151, %153 : vector<16x32xf32>
    %155 = arith.addf %142, %154 : vector<16x32xf32>
    %c0_60 = arith.constant 0 : index
    %c0_61 = arith.constant 0 : index
    %156 = vector.load %arg10[%c0_60, %c0_61] : memref<1x32xf32, #tpu.memory_space<vmem>>, vector<1x32xf32>
    %c0_62 = arith.constant 0 : index
    %c0_63 = arith.constant 0 : index
    %157 = vector.load %arg11[%c0_62, %c0_63] : memref<1x32xf32, #tpu.memory_space<vmem>>, vector<1x32xf32>
    %cst_64 = arith.constant dense<0.000000e+00> : vector<16xf32>
    %158 = vector.multi_reduction <add>, %155, %cst_64 [1] : vector<16x32xf32> to vector<16xf32>
    %159 = vector.shape_cast %158 : vector<16xf32> to vector<16x1xf32>
    %cst_65 = arith.constant 3.200000e+01 : f32
    %160 = vector.broadcast %cst_65 : f32 to vector<16x1xf32>
    %161 = arith.divf %159, %160 : vector<16x1xf32>
    %162 = vector.broadcast %161 : vector<16x1xf32> to vector<16x32xf32>
    %163 = arith.subf %155, %162 : vector<16x32xf32>
    %164 = arith.mulf %163, %163 : vector<16x32xf32>
    %cst_66 = arith.constant dense<0.000000e+00> : vector<16xf32>
    %165 = vector.multi_reduction <add>, %164, %cst_66 [1] : vector<16x32xf32> to vector<16xf32>
    %166 = vector.shape_cast %165 : vector<16xf32> to vector<16x1xf32>
    %cst_67 = arith.constant 0.0322580636 : f32
    %167 = vector.broadcast %cst_67 : f32 to vector<16x1xf32>
    %168 = arith.mulf %166, %167 : vector<16x1xf32>
    %169 = math.sqrt %168 : vector<16x1xf32>
    %cst_68 = arith.constant 9.99999997E-7 : f32
    %170 = vector.broadcast %cst_68 : f32 to vector<16x1xf32>
    %171 = arith.addf %169, %170 : vector<16x1xf32>
    %172 = tpu.reciprocal %171 {approx = true} : vector<16x1xf32> -> vector<16x1xf32>
    %173 = vector.broadcast %172 : vector<16x1xf32> to vector<16x32xf32>
    %174 = arith.mulf %163, %173 : vector<16x32xf32>
    %175 = vector.broadcast %156 : vector<1x32xf32> to vector<16x32xf32>
    %176 = arith.mulf %175, %174 : vector<16x32xf32>
    %177 = vector.broadcast %157 : vector<1x32xf32> to vector<16x32xf32>
    %178 = arith.addf %176, %177 : vector<16x32xf32>
    %c0_69 = arith.constant 0 : index
    %c0_70 = arith.constant 0 : index
    %179 = vector.load %arg12[%c0_69, %c0_70] : memref<16x32xf32, #tpu.memory_space<vmem>>, vector<16x32xf32>
    tpu.vector_store %arg12[%c0_69, %c0_70], %178 {strides = array<i32>} : memref<16x32xf32, #tpu.memory_space<vmem>>, vector<16x32xf32>,
    return
  }
}

module attributes {stable_mosaic.version = 11 : i64} {
  func.func @_linear_kernel(%arg0: memref<16x32xf32, #tpu.memory_space<vmem>>, %arg1: memref<32x128xf32, #tpu.memory_space<vmem>>, %arg2: memref<1x128xf32, #tpu.memory_space<vmem>>, %arg3: memref<16x128xf32, #tpu.memory_space<vmem>>) attributes {dimension_semantics = [], scalar_prefetch = 0 : i64, scratch_operands = 0 : i64, tpu.core_type = #tpu.core_type<tc>} {
    %c0 = arith.constant 0 : index
    %c0_0 = arith.constant 0 : index
    %0 = vector.load %arg0[%c0, %c0_0] : memref<16x32xf32, #tpu.memory_space<vmem>>, vector<16x32xf32>
    %c0_1 = arith.constant 0 : index
    %c0_2 = arith.constant 0 : index
    %1 = vector.load %arg1[%c0_1, %c0_2] : memref<32x128xf32, #tpu.memory_space<vmem>>, vector<32x128xf32>
    %cst = arith.constant dense<0.000000e+00> : vector<16x128xf32>
    %2 = tpu.matmul %0, %1, %cst {dimension_numbers = #tpu.dot_dimension_numbers<[1], [0], [0], [1], [0, 0, 1, 1], [], []>} : vector<16x32xf32>, vector<32x128xf32>, vector<16x128xf32> -> vector<16x128xf32>
    %c0_3 = arith.constant 0 : index
    %c0_4 = arith.constant 0 : index
    %3 = vector.load %arg2[%c0_3, %c0_4] : memref<1x128xf32, #tpu.memory_space<vmem>>, vector<1x128xf32>
    %4 = vector.broadcast %3 : vector<1x128xf32> to vector<16x128xf32>
    %5 = arith.addf %2, %4 : vector<16x128xf32>
    %c0_5 = arith.constant 0 : index
    %c0_6 = arith.constant 0 : index
    %6 = vector.load %arg3[%c0_5, %c0_6] : memref<16x128xf32, #tpu.memory_space<vmem>>, vector<16x128xf32>
    tpu.vector_store %arg3[%c0_5, %c0_6], %5 {strides = array<i32>} : memref<16x128xf32, #tpu.memory_space<vmem>>, vector<16x128xf32>,
    return
  }
}

module attributes {stable_mosaic.version = 11 : i64} {
  func.func @_decoder_block_kernel(%arg0: memref<16x32xf32, #tpu.memory_space<vmem>>, %arg1: memref<16x32xf32, #tpu.memory_space<vmem>>, %arg2: memref<2x8x8xf32, #tpu.memory_space<vmem>>, %arg3: memref<2x8x8xf32, #tpu.memory_space<vmem>>, %arg4: memref<32x96xf32, #tpu.memory_space<vmem>>, %arg5: memref<32x32xf32, #tpu.memory_space<vmem>>, %arg6: memref<1x32xf32, #tpu.memory_space<vmem>>, %arg7: memref<1x32xf32, #tpu.memory_space<vmem>>, %arg8: memref<32x32xf32, #tpu.memory_space<vmem>>, %arg9: memref<32x64xf32, #tpu.memory_space<vmem>>, %arg10: memref<32x32xf32, #tpu.memory_space<vmem>>, %arg11: memref<1x32xf32, #tpu.memory_space<vmem>>, %arg12: memref<1x32xf32, #tpu.memory_space<vmem>>, %arg13: memref<32x64xf32, #tpu.memory_space<vmem>>, %arg14: memref<1x64xf32, #tpu.memory_space<vmem>>, %arg15: memref<64x32xf32, #tpu.memory_space<vmem>>, %arg16: memref<1x32xf32, #tpu.memory_space<vmem>>, %arg17: memref<1x32xf32, #tpu.memory_space<vmem>>, %arg18: memref<1x32xf32, #tpu.memory_space<vmem>>, %arg19: memref<16x32xf32, #tpu.memory_space<vmem>>) attributes {dimension_semantics = [], scalar_prefetch = 0 : i64, scratch_operands = 0 : i64, tpu.core_type = #tpu.core_type<tc>} {
    %c0 = arith.constant 0 : index
    %c0_0 = arith.constant 0 : index
    %0 = vector.load %arg0[%c0, %c0_0] : memref<16x32xf32, #tpu.memory_space<vmem>>, vector<16x32xf32>
    %c0_1 = arith.constant 0 : index
    %c0_2 = arith.constant 0 : index
    %1 = vector.load %arg1[%c0_1, %c0_2] : memref<16x32xf32, #tpu.memory_space<vmem>>, vector<16x32xf32>
    %c0_3 = arith.constant 0 : index
    %c0_4 = arith.constant 0 : index
    %2 = vector.load %arg4[%c0_3, %c0_4] : memref<32x96xf32, #tpu.memory_space<vmem>>, vector<32x96xf32>
    %cst = arith.constant dense<0.000000e+00> : vector<16x96xf32>
    %3 = tpu.matmul %0, %2, %cst {dimension_numbers = #tpu.dot_dimension_numbers<[1], [0], [0], [1], [0, 0, 1, 1], [], []>} : vector<16x32xf32>, vector<32x96xf32>, vector<16x96xf32> -> vector<16x96xf32>
    %4 = vector.extract_strided_slice %3 {offsets = [0, 0], sizes = [16, 32], strides = [1, 1]} : vector<16x96xf32> to vector<16x32xf32>
    %5 = vector.extract_strided_slice %3 {offsets = [0, 32], sizes = [16, 32], strides = [1, 1]} : vector<16x96xf32> to vector<16x32xf32>
    %6 = vector.extract_strided_slice %3 {offsets = [0, 64], sizes = [16, 32], strides = [1, 1]} : vector<16x96xf32> to vector<16x32xf32>
    %c0_5 = arith.constant 0 : index
    %c0_6 = arith.constant 0 : index
    %7 = vector.load %arg5[%c0_5, %c0_6] : memref<32x32xf32, #tpu.memory_space<vmem>>, vector<32x32xf32>
    %c0_7 = arith.constant 0 : index
    %c0_8 = arith.constant 0 : index
    %c0_9 = arith.constant 0 : index
    %8 = vector.load %arg2[%c0_7, %c0_8, %c0_9] : memref<2x8x8xf32, #tpu.memory_space<vmem>>, vector<2x8x8xf32>
    %9 = vector.extract_strided_slice %4 {offsets = [0, 0], sizes = [16, 8], strides = [1, 1]} : vector<16x32xf32> to vector<16x8xf32>
    %10 = vector.shape_cast %9 : vector<16x8xf32> to vector<2x8x8xf32>
    %11 = vector.extract_strided_slice %5 {offsets = [0, 0], sizes = [16, 8], strides = [1, 1]} : vector<16x32xf32> to vector<16x8xf32>
    %12 = vector.shape_cast %11 : vector<16x8xf32> to vector<2x8x8xf32>
    %13 = vector.extract_strided_slice %6 {offsets = [0, 0], sizes = [16, 8], strides = [1, 1]} : vector<16x32xf32> to vector<16x8xf32>
    %14 = vector.shape_cast %13 : vector<16x8xf32> to vector<2x8x8xf32>
    "tpu.trace_start"() <{level = 10 : i32, message = "bqd,bkd->bqk"}> : () -> ()
    %cst_10 = arith.constant dense<0.000000e+00> : vector<2x8x8xf32>
    %15 = tpu.matmul %10, %12, %cst_10 {dimension_numbers = #tpu.dot_dimension_numbers<[2], [2], [1], [1], [0, 0, 0, 1, 1, 1], [0], [0]>} : vector<2x8x8xf32>, vector<2x8x8xf32>, vector<2x8x8xf32> -> vector<2x8x8xf32>
    "tpu.trace_stop"() : () -> ()
    %cst_11 = arith.constant 1.250000e-01 : f32
    %16 = vector.broadcast %cst_11 : f32 to vector<2x8x8xf32>
    %17 = arith.mulf %15, %16 : vector<2x8x8xf32>
    %cst_12 = arith.constant 0.000000e+00 : f32
    %18 = vector.broadcast %cst_12 : f32 to vector<2x8x8xf32>
    %19 = arith.cmpf oeq, %8, %18 : vector<2x8x8xf32>
    %cst_13 = arith.constant -1.000000e+09 : f32
    %20 = vector.broadcast %cst_13 : f32 to vector<2x8x8xf32>
    %21 = arith.select %19, %20, %17 : vector<2x8x8xi1>, vector<2x8x8xf32>
    %cst_14 = arith.constant dense<0xFF800000> : vector<2x8xf32>
    %22 = vector.multi_reduction <maximumf>, %21, %cst_14 [2] : vector<2x8x8xf32> to vector<2x8xf32>
    %23 = vector.shape_cast %22 : vector<2x8xf32> to vector<2x8x1xf32>
    %24 = vector.broadcast %23 : vector<2x8x1xf32> to vector<2x8x8xf32>
    %25 = arith.subf %21, %24 : vector<2x8x8xf32>
    %26 = math.exp %25 : vector<2x8x8xf32>
    %cst_15 = arith.constant dense<0.000000e+00> : vector<2x8xf32>
    %27 = vector.multi_reduction <add>, %26, %cst_15 [2] : vector<2x8x8xf32> to vector<2x8xf32>
    %28 = vector.shape_cast %27 : vector<2x8xf32> to vector<2x8x1xf32>
    %29 = tpu.reciprocal %28 {approx = true} : vector<2x8x1xf32> -> vector<2x8x1xf32>
    %30 = vector.broadcast %29 : vector<2x8x1xf32> to vector<2x8x8xf32>
    %31 = arith.mulf %26, %30 : vector<2x8x8xf32>
    "tpu.trace_start"() <{level = 10 : i32, message = "bqk,bkd->bqd"}> : () -> ()
    %cst_16 = arith.constant dense<0.000000e+00> : vector<2x8x8xf32>
    %32 = tpu.matmul %31, %14, %cst_16 {dimension_numbers = #tpu.dot_dimension_numbers<[2], [1], [1], [2], [0, 0, 0, 1, 1, 2], [0], [0]>} : vector<2x8x8xf32>, vector<2x8x8xf32>, vector<2x8x8xf32> -> vector<2x8x8xf32>
    "tpu.trace_stop"() : () -> ()
    %33 = vector.shape_cast %32 : vector<2x8x8xf32> to vector<16x8xf32>
    %34 = vector.extract_strided_slice %7 {offsets = [0, 0], sizes = [8, 32], strides = [1, 1]} : vector<32x32xf32> to vector<8x32xf32>
    %cst_17 = arith.constant dense<0.000000e+00> : vector<16x32xf32>
    %35 = tpu.matmul %33, %34, %cst_17 {dimension_numbers = #tpu.dot_dimension_numbers<[1], [0], [0], [1], [0, 0, 1, 1], [], []>} : vector<16x8xf32>, vector<8x32xf32>, vector<16x32xf32> -> vector<16x32xf32>
    %36 = vector.extract_strided_slice %4 {offsets = [0, 8], sizes = [16, 8], strides = [1, 1]} : vector<16x32xf32> to vector<16x8xf32>
    %37 = vector.shape_cast %36 : vector<16x8xf32> to vector<2x8x8xf32>
    %38 = vector.extract_strided_slice %5 {offsets = [0, 8], sizes = [16, 8], strides = [1, 1]} : vector<16x32xf32> to vector<16x8xf32>
    %39 = vector.shape_cast %38 : vector<16x8xf32> to vector<2x8x8xf32>
    %40 = vector.extract_strided_slice %6 {offsets = [0, 8], sizes = [16, 8], strides = [1, 1]} : vector<16x32xf32> to vector<16x8xf32>
    %41 = vector.shape_cast %40 : vector<16x8xf32> to vector<2x8x8xf32>
    "tpu.trace_start"() <{level = 10 : i32, message = "bqd,bkd->bqk"}> : () -> ()
    %cst_18 = arith.constant dense<0.000000e+00> : vector<2x8x8xf32>
    %42 = tpu.matmul %37, %39, %cst_18 {dimension_numbers = #tpu.dot_dimension_numbers<[2], [2], [1], [1], [0, 0, 0, 1, 1, 1], [0], [0]>} : vector<2x8x8xf32>, vector<2x8x8xf32>, vector<2x8x8xf32> -> vector<2x8x8xf32>
    "tpu.trace_stop"() : () -> ()
    %cst_19 = arith.constant 1.250000e-01 : f32
    %43 = vector.broadcast %cst_19 : f32 to vector<2x8x8xf32>
    %44 = arith.mulf %42, %43 : vector<2x8x8xf32>
    %cst_20 = arith.constant 0.000000e+00 : f32
    %45 = vector.broadcast %cst_20 : f32 to vector<2x8x8xf32>
    %46 = arith.cmpf oeq, %8, %45 : vector<2x8x8xf32>
    %cst_21 = arith.constant -1.000000e+09 : f32
    %47 = vector.broadcast %cst_21 : f32 to vector<2x8x8xf32>
    %48 = arith.select %46, %47, %44 : vector<2x8x8xi1>, vector<2x8x8xf32>
    %cst_22 = arith.constant dense<0xFF800000> : vector<2x8xf32>
    %49 = vector.multi_reduction <maximumf>, %48, %cst_22 [2] : vector<2x8x8xf32> to vector<2x8xf32>
    %50 = vector.shape_cast %49 : vector<2x8xf32> to vector<2x8x1xf32>
    %51 = vector.broadcast %50 : vector<2x8x1xf32> to vector<2x8x8xf32>
    %52 = arith.subf %48, %51 : vector<2x8x8xf32>
    %53 = math.exp %52 : vector<2x8x8xf32>
    %cst_23 = arith.constant dense<0.000000e+00> : vector<2x8xf32>
    %54 = vector.multi_reduction <add>, %53, %cst_23 [2] : vector<2x8x8xf32> to vector<2x8xf32>
    %55 = vector.shape_cast %54 : vector<2x8xf32> to vector<2x8x1xf32>
    %56 = tpu.reciprocal %55 {approx = true} : vector<2x8x1xf32> -> vector<2x8x1xf32>
    %57 = vector.broadcast %56 : vector<2x8x1xf32> to vector<2x8x8xf32>
    %58 = arith.mulf %53, %57 : vector<2x8x8xf32>
    "tpu.trace_start"() <{level = 10 : i32, message = "bqk,bkd->bqd"}> : () -> ()
    %cst_24 = arith.constant dense<0.000000e+00> : vector<2x8x8xf32>
    %59 = tpu.matmul %58, %41, %cst_24 {dimension_numbers = #tpu.dot_dimension_numbers<[2], [1], [1], [2], [0, 0, 0, 1, 1, 2], [0], [0]>} : vector<2x8x8xf32>, vector<2x8x8xf32>, vector<2x8x8xf32> -> vector<2x8x8xf32>
    "tpu.trace_stop"() : () -> ()
    %60 = vector.shape_cast %59 : vector<2x8x8xf32> to vector<16x8xf32>
    %61 = vector.extract_strided_slice %7 {offsets = [8, 0], sizes = [8, 32], strides = [1, 1]} : vector<32x32xf32> to vector<8x32xf32>
    %cst_25 = arith.constant dense<0.000000e+00> : vector<16x32xf32>
    %62 = tpu.matmul %60, %61, %cst_25 {dimension_numbers = #tpu.dot_dimension_numbers<[1], [0], [0], [1], [0, 0, 1, 1], [], []>} : vector<16x8xf32>, vector<8x32xf32>, vector<16x32xf32> -> vector<16x32xf32>
    %63 = arith.addf %35, %62 : vector<16x32xf32>
    %64 = vector.extract_strided_slice %4 {offsets = [0, 16], sizes = [16, 8], strides = [1, 1]} : vector<16x32xf32> to vector<16x8xf32>
    %65 = vector.shape_cast %64 : vector<16x8xf32> to vector<2x8x8xf32>
    %66 = vector.extract_strided_slice %5 {offsets = [0, 16], sizes = [16, 8], strides = [1, 1]} : vector<16x32xf32> to vector<16x8xf32>
    %67 = vector.shape_cast %66 : vector<16x8xf32> to vector<2x8x8xf32>
    %68 = vector.extract_strided_slice %6 {offsets = [0, 16], sizes = [16, 8], strides = [1, 1]} : vector<16x32xf32> to vector<16x8xf32>
    %69 = vector.shape_cast %68 : vector<16x8xf32> to vector<2x8x8xf32>
    "tpu.trace_start"() <{level = 10 : i32, message = "bqd,bkd->bqk"}> : () -> ()
    %cst_26 = arith.constant dense<0.000000e+00> : vector<2x8x8xf32>
    %70 = tpu.matmul %65, %67, %cst_26 {dimension_numbers = #tpu.dot_dimension_numbers<[2], [2], [1], [1], [0, 0, 0, 1, 1, 1], [0], [0]>} : vector<2x8x8xf32>, vector<2x8x8xf32>, vector<2x8x8xf32> -> vector<2x8x8xf32>
    "tpu.trace_stop"() : () -> ()
    %cst_27 = arith.constant 1.250000e-01 : f32
    %71 = vector.broadcast %cst_27 : f32 to vector<2x8x8xf32>
    %72 = arith.mulf %70, %71 : vector<2x8x8xf32>
    %cst_28 = arith.constant 0.000000e+00 : f32
    %73 = vector.broadcast %cst_28 : f32 to vector<2x8x8xf32>
    %74 = arith.cmpf oeq, %8, %73 : vector<2x8x8xf32>
    %cst_29 = arith.constant -1.000000e+09 : f32
    %75 = vector.broadcast %cst_29 : f32 to vector<2x8x8xf32>
    %76 = arith.select %74, %75, %72 : vector<2x8x8xi1>, vector<2x8x8xf32>
    %cst_30 = arith.constant dense<0xFF800000> : vector<2x8xf32>
    %77 = vector.multi_reduction <maximumf>, %76, %cst_30 [2] : vector<2x8x8xf32> to vector<2x8xf32>
    %78 = vector.shape_cast %77 : vector<2x8xf32> to vector<2x8x1xf32>
    %79 = vector.broadcast %78 : vector<2x8x1xf32> to vector<2x8x8xf32>
    %80 = arith.subf %76, %79 : vector<2x8x8xf32>
    %81 = math.exp %80 : vector<2x8x8xf32>
    %cst_31 = arith.constant dense<0.000000e+00> : vector<2x8xf32>
    %82 = vector.multi_reduction <add>, %81, %cst_31 [2] : vector<2x8x8xf32> to vector<2x8xf32>
    %83 = vector.shape_cast %82 : vector<2x8xf32> to vector<2x8x1xf32>
    %84 = tpu.reciprocal %83 {approx = true} : vector<2x8x1xf32> -> vector<2x8x1xf32>
    %85 = vector.broadcast %84 : vector<2x8x1xf32> to vector<2x8x8xf32>
    %86 = arith.mulf %81, %85 : vector<2x8x8xf32>
    "tpu.trace_start"() <{level = 10 : i32, message = "bqk,bkd->bqd"}> : () -> ()
    %cst_32 = arith.constant dense<0.000000e+00> : vector<2x8x8xf32>
    %87 = tpu.matmul %86, %69, %cst_32 {dimension_numbers = #tpu.dot_dimension_numbers<[2], [1], [1], [2], [0, 0, 0, 1, 1, 2], [0], [0]>} : vector<2x8x8xf32>, vector<2x8x8xf32>, vector<2x8x8xf32> -> vector<2x8x8xf32>
    "tpu.trace_stop"() : () -> ()
    %88 = vector.shape_cast %87 : vector<2x8x8xf32> to vector<16x8xf32>
    %89 = vector.extract_strided_slice %7 {offsets = [16, 0], sizes = [8, 32], strides = [1, 1]} : vector<32x32xf32> to vector<8x32xf32>
    %cst_33 = arith.constant dense<0.000000e+00> : vector<16x32xf32>
    %90 = tpu.matmul %88, %89, %cst_33 {dimension_numbers = #tpu.dot_dimension_numbers<[1], [0], [0], [1], [0, 0, 1, 1], [], []>} : vector<16x8xf32>, vector<8x32xf32>, vector<16x32xf32> -> vector<16x32xf32>
    %91 = arith.addf %63, %90 : vector<16x32xf32>
    %92 = vector.extract_strided_slice %4 {offsets = [0, 24], sizes = [16, 8], strides = [1, 1]} : vector<16x32xf32> to vector<16x8xf32>
    %93 = vector.shape_cast %92 : vector<16x8xf32> to vector<2x8x8xf32>
    %94 = vector.extract_strided_slice %5 {offsets = [0, 24], sizes = [16, 8], strides = [1, 1]} : vector<16x32xf32> to vector<16x8xf32>
    %95 = vector.shape_cast %94 : vector<16x8xf32> to vector<2x8x8xf32>
    %96 = vector.extract_strided_slice %6 {offsets = [0, 24], sizes = [16, 8], strides = [1, 1]} : vector<16x32xf32> to vector<16x8xf32>
    %97 = vector.shape_cast %96 : vector<16x8xf32> to vector<2x8x8xf32>
    "tpu.trace_start"() <{level = 10 : i32, message = "bqd,bkd->bqk"}> : () -> ()
    %cst_34 = arith.constant dense<0.000000e+00> : vector<2x8x8xf32>
    %98 = tpu.matmul %93, %95, %cst_34 {dimension_numbers = #tpu.dot_dimension_numbers<[2], [2], [1], [1], [0, 0, 0, 1, 1, 1], [0], [0]>} : vector<2x8x8xf32>, vector<2x8x8xf32>, vector<2x8x8xf32> -> vector<2x8x8xf32>
    "tpu.trace_stop"() : () -> ()
    %cst_35 = arith.constant 1.250000e-01 : f32
    %99 = vector.broadcast %cst_35 : f32 to vector<2x8x8xf32>
    %100 = arith.mulf %98, %99 : vector<2x8x8xf32>
    %cst_36 = arith.constant 0.000000e+00 : f32
    %101 = vector.broadcast %cst_36 : f32 to vector<2x8x8xf32>
    %102 = arith.cmpf oeq, %8, %101 : vector<2x8x8xf32>
    %cst_37 = arith.constant -1.000000e+09 : f32
    %103 = vector.broadcast %cst_37 : f32 to vector<2x8x8xf32>
    %104 = arith.select %102, %103, %100 : vector<2x8x8xi1>, vector<2x8x8xf32>
    %cst_38 = arith.constant dense<0xFF800000> : vector<2x8xf32>
    %105 = vector.multi_reduction <maximumf>, %104, %cst_38 [2] : vector<2x8x8xf32> to vector<2x8xf32>
    %106 = vector.shape_cast %105 : vector<2x8xf32> to vector<2x8x1xf32>
    %107 = vector.broadcast %106 : vector<2x8x1xf32> to vector<2x8x8xf32>
    %108 = arith.subf %104, %107 : vector<2x8x8xf32>
    %109 = math.exp %108 : vector<2x8x8xf32>
    %cst_39 = arith.constant dense<0.000000e+00> : vector<2x8xf32>
    %110 = vector.multi_reduction <add>, %109, %cst_39 [2] : vector<2x8x8xf32> to vector<2x8xf32>
    %111 = vector.shape_cast %110 : vector<2x8xf32> to vector<2x8x1xf32>
    %112 = tpu.reciprocal %111 {approx = true} : vector<2x8x1xf32> -> vector<2x8x1xf32>
    %113 = vector.broadcast %112 : vector<2x8x1xf32> to vector<2x8x8xf32>
    %114 = arith.mulf %109, %113 : vector<2x8x8xf32>
    "tpu.trace_start"() <{level = 10 : i32, message = "bqk,bkd->bqd"}> : () -> ()
    %cst_40 = arith.constant dense<0.000000e+00> : vector<2x8x8xf32>
    %115 = tpu.matmul %114, %97, %cst_40 {dimension_numbers = #tpu.dot_dimension_numbers<[2], [1], [1], [2], [0, 0, 0, 1, 1, 2], [0], [0]>} : vector<2x8x8xf32>, vector<2x8x8xf32>, vector<2x8x8xf32> -> vector<2x8x8xf32>
    "tpu.trace_stop"() : () -> ()
    %116 = vector.shape_cast %115 : vector<2x8x8xf32> to vector<16x8xf32>
    %117 = vector.extract_strided_slice %7 {offsets = [24, 0], sizes = [8, 32], strides = [1, 1]} : vector<32x32xf32> to vector<8x32xf32>
    %cst_41 = arith.constant dense<0.000000e+00> : vector<16x32xf32>
    %118 = tpu.matmul %116, %117, %cst_41 {dimension_numbers = #tpu.dot_dimension_numbers<[1], [0], [0], [1], [0, 0, 1, 1], [], []>} : vector<16x8xf32>, vector<8x32xf32>, vector<16x32xf32> -> vector<16x32xf32>
    %119 = arith.addf %91, %118 : vector<16x32xf32>
    %120 = arith.addf %0, %119 : vector<16x32xf32>
    %c0_42 = arith.constant 0 : index
    %c0_43 = arith.constant 0 : index
    %121 = vector.load %arg6[%c0_42, %c0_43] : memref<1x32xf32, #tpu.memory_space<vmem>>, vector<1x32xf32>
    %c0_44 = arith.constant 0 : index
    %c0_45 = arith.constant 0 : index
    %122 = vector.load %arg7[%c0_44, %c0_45] : memref<1x32xf32, #tpu.memory_space<vmem>>, vector<1x32xf32>
    %cst_46 = arith.constant dense<0.000000e+00> : vector<16xf32>
    %123 = vector.multi_reduction <add>, %120, %cst_46 [1] : vector<16x32xf32> to vector<16xf32>
    %124 = vector.shape_cast %123 : vector<16xf32> to vector<16x1xf32>
    %cst_47 = arith.constant 3.200000e+01 : f32
    %125 = vector.broadcast %cst_47 : f32 to vector<16x1xf32>
    %126 = arith.divf %124, %125 : vector<16x1xf32>
    %127 = vector.broadcast %126 : vector<16x1xf32> to vector<16x32xf32>
    %128 = arith.subf %120, %127 : vector<16x32xf32>
    %129 = arith.mulf %128, %128 : vector<16x32xf32>
    %cst_48 = arith.constant dense<0.000000e+00> : vector<16xf32>
    %130 = vector.multi_reduction <add>, %129, %cst_48 [1] : vector<16x32xf32> to vector<16xf32>
    %131 = vector.shape_cast %130 : vector<16xf32> to vector<16x1xf32>
    %cst_49 = arith.constant 0.0322580636 : f32
    %132 = vector.broadcast %cst_49 : f32 to vector<16x1xf32>
    %133 = arith.mulf %131, %132 : vector<16x1xf32>
    %134 = math.sqrt %133 : vector<16x1xf32>
    %cst_50 = arith.constant 9.99999997E-7 : f32
    %135 = vector.broadcast %cst_50 : f32 to vector<16x1xf32>
    %136 = arith.addf %134, %135 : vector<16x1xf32>
    %137 = tpu.reciprocal %136 {approx = true} : vector<16x1xf32> -> vector<16x1xf32>
    %138 = vector.broadcast %137 : vector<16x1xf32> to vector<16x32xf32>
    %139 = arith.mulf %128, %138 : vector<16x32xf32>
    %140 = vector.broadcast %121 : vector<1x32xf32> to vector<16x32xf32>
    %141 = arith.mulf %140, %139 : vector<16x32xf32>
    %142 = vector.broadcast %122 : vector<1x32xf32> to vector<16x32xf32>
    %143 = arith.addf %141, %142 : vector<16x32xf32>
    %c0_51 = arith.constant 0 : index
    %c0_52 = arith.constant 0 : index
    %144 = vector.load %arg8[%c0_51, %c0_52] : memref<32x32xf32, #tpu.memory_space<vmem>>, vector<32x32xf32>
    %cst_53 = arith.constant dense<0.000000e+00> : vector<16x32xf32>
    %145 = tpu.matmul %143, %144, %cst_53 {dimension_numbers = #tpu.dot_dimension_numbers<[1], [0], [0], [1], [0, 0, 1, 1], [], []>} : vector<16x32xf32>, vector<32x32xf32>, vector<16x32xf32> -> vector<16x32xf32>
    %c0_54 = arith.constant 0 : index
    %c0_55 = arith.constant 0 : index
    %146 = vector.load %arg9[%c0_54, %c0_55] : memref<32x64xf32, #tpu.memory_space<vmem>>, vector<32x64xf32>
    %cst_56 = arith.constant dense<0.000000e+00> : vector<16x64xf32>
    %147 = tpu.matmul %1, %146, %cst_56 {dimension_numbers = #tpu.dot_dimension_numbers<[1], [0], [0], [1], [0, 0, 1, 1], [], []>} : vector<16x32xf32>, vector<32x64xf32>, vector<16x64xf32> -> vector<16x64xf32>
    %148 = vector.extract_strided_slice %147 {offsets = [0, 0], sizes = [16, 32], strides = [1, 1]} : vector<16x64xf32> to vector<16x32xf32>
    %149 = vector.extract_strided_slice %147 {offsets = [0, 32], sizes = [16, 32], strides = [1, 1]} : vector<16x64xf32> to vector<16x32xf32>
    %c0_57 = arith.constant 0 : index
    %c0_58 = arith.constant 0 : index
    %150 = vector.load %arg10[%c0_57, %c0_58] : memref<32x32xf32, #tpu.memory_space<vmem>>, vector<32x32xf32>
    %c0_59 = arith.constant 0 : index
    %c0_60 = arith.constant 0 : index
    %c0_61 = arith.constant 0 : index
    %151 = vector.load %arg3[%c0_59, %c0_60, %c0_61] : memref<2x8x8xf32, #tpu.memory_space<vmem>>, vector<2x8x8xf32>
    %152 = vector.extract_strided_slice %145 {offsets = [0, 0], sizes = [16, 8], strides = [1, 1]} : vector<16x32xf32> to vector<16x8xf32>
    %153 = vector.shape_cast %152 : vector<16x8xf32> to vector<2x8x8xf32>
    %154 = vector.extract_strided_slice %148 {offsets = [0, 0], sizes = [16, 8], strides = [1, 1]} : vector<16x32xf32> to vector<16x8xf32>
    %155 = vector.shape_cast %154 : vector<16x8xf32> to vector<2x8x8xf32>
    %156 = vector.extract_strided_slice %149 {offsets = [0, 0], sizes = [16, 8], strides = [1, 1]} : vector<16x32xf32> to vector<16x8xf32>
    %157 = vector.shape_cast %156 : vector<16x8xf32> to vector<2x8x8xf32>
    "tpu.trace_start"() <{level = 10 : i32, message = "bqd,bkd->bqk"}> : () -> ()
    %cst_62 = arith.constant dense<0.000000e+00> : vector<2x8x8xf32>
    %158 = tpu.matmul %153, %155, %cst_62 {dimension_numbers = #tpu.dot_dimension_numbers<[2], [2], [1], [1], [0, 0, 0, 1, 1, 1], [0], [0]>} : vector<2x8x8xf32>, vector<2x8x8xf32>, vector<2x8x8xf32> -> vector<2x8x8xf32>
    "tpu.trace_stop"() : () -> ()
    %cst_63 = arith.constant 1.250000e-01 : f32
    %159 = vector.broadcast %cst_63 : f32 to vector<2x8x8xf32>
    %160 = arith.mulf %158, %159 : vector<2x8x8xf32>
    %cst_64 = arith.constant 0.000000e+00 : f32
    %161 = vector.broadcast %cst_64 : f32 to vector<2x8x8xf32>
    %162 = arith.cmpf oeq, %151, %161 : vector<2x8x8xf32>
    %cst_65 = arith.constant -1.000000e+09 : f32
    %163 = vector.broadcast %cst_65 : f32 to vector<2x8x8xf32>
    %164 = arith.select %162, %163, %160 : vector<2x8x8xi1>, vector<2x8x8xf32>
    %cst_66 = arith.constant dense<0xFF800000> : vector<2x8xf32>
    %165 = vector.multi_reduction <maximumf>, %164, %cst_66 [2] : vector<2x8x8xf32> to vector<2x8xf32>
    %166 = vector.shape_cast %165 : vector<2x8xf32> to vector<2x8x1xf32>
    %167 = vector.broadcast %166 : vector<2x8x1xf32> to vector<2x8x8xf32>
    %168 = arith.subf %164, %167 : vector<2x8x8xf32>
    %169 = math.exp %168 : vector<2x8x8xf32>
    %cst_67 = arith.constant dense<0.000000e+00> : vector<2x8xf32>
    %170 = vector.multi_reduction <add>, %169, %cst_67 [2] : vector<2x8x8xf32> to vector<2x8xf32>
    %171 = vector.shape_cast %170 : vector<2x8xf32> to vector<2x8x1xf32>
    %172 = tpu.reciprocal %171 {approx = true} : vector<2x8x1xf32> -> vector<2x8x1xf32>
    %173 = vector.broadcast %172 : vector<2x8x1xf32> to vector<2x8x8xf32>
    %174 = arith.mulf %169, %173 : vector<2x8x8xf32>
    "tpu.trace_start"() <{level = 10 : i32, message = "bqk,bkd->bqd"}> : () -> ()
    %cst_68 = arith.constant dense<0.000000e+00> : vector<2x8x8xf32>
    %175 = tpu.matmul %174, %157, %cst_68 {dimension_numbers = #tpu.dot_dimension_numbers<[2], [1], [1], [2], [0, 0, 0, 1, 1, 2], [0], [0]>} : vector<2x8x8xf32>, vector<2x8x8xf32>, vector<2x8x8xf32> -> vector<2x8x8xf32>
    "tpu.trace_stop"() : () -> ()
    %176 = vector.shape_cast %175 : vector<2x8x8xf32> to vector<16x8xf32>
    %177 = vector.extract_strided_slice %150 {offsets = [0, 0], sizes = [8, 32], strides = [1, 1]} : vector<32x32xf32> to vector<8x32xf32>
    %cst_69 = arith.constant dense<0.000000e+00> : vector<16x32xf32>
    %178 = tpu.matmul %176, %177, %cst_69 {dimension_numbers = #tpu.dot_dimension_numbers<[1], [0], [0], [1], [0, 0, 1, 1], [], []>} : vector<16x8xf32>, vector<8x32xf32>, vector<16x32xf32> -> vector<16x32xf32>
    %179 = vector.extract_strided_slice %145 {offsets = [0, 8], sizes = [16, 8], strides = [1, 1]} : vector<16x32xf32> to vector<16x8xf32>
    %180 = vector.shape_cast %179 : vector<16x8xf32> to vector<2x8x8xf32>
    %181 = vector.extract_strided_slice %148 {offsets = [0, 8], sizes = [16, 8], strides = [1, 1]} : vector<16x32xf32> to vector<16x8xf32>
    %182 = vector.shape_cast %181 : vector<16x8xf32> to vector<2x8x8xf32>
    %183 = vector.extract_strided_slice %149 {offsets = [0, 8], sizes = [16, 8], strides = [1, 1]} : vector<16x32xf32> to vector<16x8xf32>
    %184 = vector.shape_cast %183 : vector<16x8xf32> to vector<2x8x8xf32>
    "tpu.trace_start"() <{level = 10 : i32, message = "bqd,bkd->bqk"}> : () -> ()
    %cst_70 = arith.constant dense<0.000000e+00> : vector<2x8x8xf32>
    %185 = tpu.matmul %180, %182, %cst_70 {dimension_numbers = #tpu.dot_dimension_numbers<[2], [2], [1], [1], [0, 0, 0, 1, 1, 1], [0], [0]>} : vector<2x8x8xf32>, vector<2x8x8xf32>, vector<2x8x8xf32> -> vector<2x8x8xf32>
    "tpu.trace_stop"() : () -> ()
    %cst_71 = arith.constant 1.250000e-01 : f32
    %186 = vector.broadcast %cst_71 : f32 to vector<2x8x8xf32>
    %187 = arith.mulf %185, %186 : vector<2x8x8xf32>
    %cst_72 = arith.constant 0.000000e+00 : f32
    %188 = vector.broadcast %cst_72 : f32 to vector<2x8x8xf32>
    %189 = arith.cmpf oeq, %151, %188 : vector<2x8x8xf32>
    %cst_73 = arith.constant -1.000000e+09 : f32
    %190 = vector.broadcast %cst_73 : f32 to vector<2x8x8xf32>
    %191 = arith.select %189, %190, %187 : vector<2x8x8xi1>, vector<2x8x8xf32>
    %cst_74 = arith.constant dense<0xFF800000> : vector<2x8xf32>
    %192 = vector.multi_reduction <maximumf>, %191, %cst_74 [2] : vector<2x8x8xf32> to vector<2x8xf32>
    %193 = vector.shape_cast %192 : vector<2x8xf32> to vector<2x8x1xf32>
    %194 = vector.broadcast %193 : vector<2x8x1xf32> to vector<2x8x8xf32>
    %195 = arith.subf %191, %194 : vector<2x8x8xf32>
    %196 = math.exp %195 : vector<2x8x8xf32>
    %cst_75 = arith.constant dense<0.000000e+00> : vector<2x8xf32>
    %197 = vector.multi_reduction <add>, %196, %cst_75 [2] : vector<2x8x8xf32> to vector<2x8xf32>
    %198 = vector.shape_cast %197 : vector<2x8xf32> to vector<2x8x1xf32>
    %199 = tpu.reciprocal %198 {approx = true} : vector<2x8x1xf32> -> vector<2x8x1xf32>
    %200 = vector.broadcast %199 : vector<2x8x1xf32> to vector<2x8x8xf32>
    %201 = arith.mulf %196, %200 : vector<2x8x8xf32>
    "tpu.trace_start"() <{level = 10 : i32, message = "bqk,bkd->bqd"}> : () -> ()
    %cst_76 = arith.constant dense<0.000000e+00> : vector<2x8x8xf32>
    %202 = tpu.matmul %201, %184, %cst_76 {dimension_numbers = #tpu.dot_dimension_numbers<[2], [1], [1], [2], [0, 0, 0, 1, 1, 2], [0], [0]>} : vector<2x8x8xf32>, vector<2x8x8xf32>, vector<2x8x8xf32> -> vector<2x8x8xf32>
    "tpu.trace_stop"() : () -> ()
    %203 = vector.shape_cast %202 : vector<2x8x8xf32> to vector<16x8xf32>
    %204 = vector.extract_strided_slice %150 {offsets = [8, 0], sizes = [8, 32], strides = [1, 1]} : vector<32x32xf32> to vector<8x32xf32>
    %cst_77 = arith.constant dense<0.000000e+00> : vector<16x32xf32>
    %205 = tpu.matmul %203, %204, %cst_77 {dimension_numbers = #tpu.dot_dimension_numbers<[1], [0], [0], [1], [0, 0, 1, 1], [], []>} : vector<16x8xf32>, vector<8x32xf32>, vector<16x32xf32> -> vector<16x32xf32>
    %206 = arith.addf %178, %205 : vector<16x32xf32>
    %207 = vector.extract_strided_slice %145 {offsets = [0, 16], sizes = [16, 8], strides = [1, 1]} : vector<16x32xf32> to vector<16x8xf32>
    %208 = vector.shape_cast %207 : vector<16x8xf32> to vector<2x8x8xf32>
    %209 = vector.extract_strided_slice %148 {offsets = [0, 16], sizes = [16, 8], strides = [1, 1]} : vector<16x32xf32> to vector<16x8xf32>
    %210 = vector.shape_cast %209 : vector<16x8xf32> to vector<2x8x8xf32>
    %211 = vector.extract_strided_slice %149 {offsets = [0, 16], sizes = [16, 8], strides = [1, 1]} : vector<16x32xf32> to vector<16x8xf32>
    %212 = vector.shape_cast %211 : vector<16x8xf32> to vector<2x8x8xf32>
    "tpu.trace_start"() <{level = 10 : i32, message = "bqd,bkd->bqk"}> : () -> ()
    %cst_78 = arith.constant dense<0.000000e+00> : vector<2x8x8xf32>
    %213 = tpu.matmul %208, %210, %cst_78 {dimension_numbers = #tpu.dot_dimension_numbers<[2], [2], [1], [1], [0, 0, 0, 1, 1, 1], [0], [0]>} : vector<2x8x8xf32>, vector<2x8x8xf32>, vector<2x8x8xf32> -> vector<2x8x8xf32>
    "tpu.trace_stop"() : () -> ()
    %cst_79 = arith.constant 1.250000e-01 : f32
    %214 = vector.broadcast %cst_79 : f32 to vector<2x8x8xf32>
    %215 = arith.mulf %213, %214 : vector<2x8x8xf32>
    %cst_80 = arith.constant 0.000000e+00 : f32
    %216 = vector.broadcast %cst_80 : f32 to vector<2x8x8xf32>
    %217 = arith.cmpf oeq, %151, %216 : vector<2x8x8xf32>
    %cst_81 = arith.constant -1.000000e+09 : f32
    %218 = vector.broadcast %cst_81 : f32 to vector<2x8x8xf32>
    %219 = arith.select %217, %218, %215 : vector<2x8x8xi1>, vector<2x8x8xf32>
    %cst_82 = arith.constant dense<0xFF800000> : vector<2x8xf32>
    %220 = vector.multi_reduction <maximumf>, %219, %cst_82 [2] : vector<2x8x8xf32> to vector<2x8xf32>
    %221 = vector.shape_cast %220 : vector<2x8xf32> to vector<2x8x1xf32>
    %222 = vector.broadcast %221 : vector<2x8x1xf32> to vector<2x8x8xf32>
    %223 = arith.subf %219, %222 : vector<2x8x8xf32>
    %224 = math.exp %223 : vector<2x8x8xf32>
    %cst_83 = arith.constant dense<0.000000e+00> : vector<2x8xf32>
    %225 = vector.multi_reduction <add>, %224, %cst_83 [2] : vector<2x8x8xf32> to vector<2x8xf32>
    %226 = vector.shape_cast %225 : vector<2x8xf32> to vector<2x8x1xf32>
    %227 = tpu.reciprocal %226 {approx = true} : vector<2x8x1xf32> -> vector<2x8x1xf32>
    %228 = vector.broadcast %227 : vector<2x8x1xf32> to vector<2x8x8xf32>
    %229 = arith.mulf %224, %228 : vector<2x8x8xf32>
    "tpu.trace_start"() <{level = 10 : i32, message = "bqk,bkd->bqd"}> : () -> ()
    %cst_84 = arith.constant dense<0.000000e+00> : vector<2x8x8xf32>
    %230 = tpu.matmul %229, %212, %cst_84 {dimension_numbers = #tpu.dot_dimension_numbers<[2], [1], [1], [2], [0, 0, 0, 1, 1, 2], [0], [0]>} : vector<2x8x8xf32>, vector<2x8x8xf32>, vector<2x8x8xf32> -> vector<2x8x8xf32>
    "tpu.trace_stop"() : () -> ()
    %231 = vector.shape_cast %230 : vector<2x8x8xf32> to vector<16x8xf32>
    %232 = vector.extract_strided_slice %150 {offsets = [16, 0], sizes = [8, 32], strides = [1, 1]} : vector<32x32xf32> to vector<8x32xf32>
    %cst_85 = arith.constant dense<0.000000e+00> : vector<16x32xf32>
    %233 = tpu.matmul %231, %232, %cst_85 {dimension_numbers = #tpu.dot_dimension_numbers<[1], [0], [0], [1], [0, 0, 1, 1], [], []>} : vector<16x8xf32>, vector<8x32xf32>, vector<16x32xf32> -> vector<16x32xf32>
    %234 = arith.addf %206, %233 : vector<16x32xf32>
    %235 = vector.extract_strided_slice %145 {offsets = [0, 24], sizes = [16, 8], strides = [1, 1]} : vector<16x32xf32> to vector<16x8xf32>
    %236 = vector.shape_cast %235 : vector<16x8xf32> to vector<2x8x8xf32>
    %237 = vector.extract_strided_slice %148 {offsets = [0, 24], sizes = [16, 8], strides = [1, 1]} : vector<16x32xf32> to vector<16x8xf32>
    %238 = vector.shape_cast %237 : vector<16x8xf32> to vector<2x8x8xf32>
    %239 = vector.extract_strided_slice %149 {offsets = [0, 24], sizes = [16, 8], strides = [1, 1]} : vector<16x32xf32> to vector<16x8xf32>
    %240 = vector.shape_cast %239 : vector<16x8xf32> to vector<2x8x8xf32>
    "tpu.trace_start"() <{level = 10 : i32, message = "bqd,bkd->bqk"}> : () -> ()
    %cst_86 = arith.constant dense<0.000000e+00> : vector<2x8x8xf32>
    %241 = tpu.matmul %236, %238, %cst_86 {dimension_numbers = #tpu.dot_dimension_numbers<[2], [2], [1], [1], [0, 0, 0, 1, 1, 1], [0], [0]>} : vector<2x8x8xf32>, vector<2x8x8xf32>, vector<2x8x8xf32> -> vector<2x8x8xf32>
    "tpu.trace_stop"() : () -> ()
    %cst_87 = arith.constant 1.250000e-01 : f32
    %242 = vector.broadcast %cst_87 : f32 to vector<2x8x8xf32>
    %243 = arith.mulf %241, %242 : vector<2x8x8xf32>
    %cst_88 = arith.constant 0.000000e+00 : f32
    %244 = vector.broadcast %cst_88 : f32 to vector<2x8x8xf32>
    %245 = arith.cmpf oeq, %151, %244 : vector<2x8x8xf32>
    %cst_89 = arith.constant -1.000000e+09 : f32
    %246 = vector.broadcast %cst_89 : f32 to vector<2x8x8xf32>
    %247 = arith.select %245, %246, %243 : vector<2x8x8xi1>, vector<2x8x8xf32>
    %cst_90 = arith.constant dense<0xFF800000> : vector<2x8xf32>
    %248 = vector.multi_reduction <maximumf>, %247, %cst_90 [2] : vector<2x8x8xf32> to vector<2x8xf32>
    %249 = vector.shape_cast %248 : vector<2x8xf32> to vector<2x8x1xf32>
    %250 = vector.broadcast %249 : vector<2x8x1xf32> to vector<2x8x8xf32>
    %251 = arith.subf %247, %250 : vector<2x8x8xf32>
    %252 = math.exp %251 : vector<2x8x8xf32>
    %cst_91 = arith.constant dense<0.000000e+00> : vector<2x8xf32>
    %253 = vector.multi_reduction <add>, %252, %cst_91 [2] : vector<2x8x8xf32> to vector<2x8xf32>
    %254 = vector.shape_cast %253 : vector<2x8xf32> to vector<2x8x1xf32>
    %255 = tpu.reciprocal %254 {approx = true} : vector<2x8x1xf32> -> vector<2x8x1xf32>
    %256 = vector.broadcast %255 : vector<2x8x1xf32> to vector<2x8x8xf32>
    %257 = arith.mulf %252, %256 : vector<2x8x8xf32>
    "tpu.trace_start"() <{level = 10 : i32, message = "bqk,bkd->bqd"}> : () -> ()
    %cst_92 = arith.constant dense<0.000000e+00> : vector<2x8x8xf32>
    %258 = tpu.matmul %257, %240, %cst_92 {dimension_numbers = #tpu.dot_dimension_numbers<[2], [1], [1], [2], [0, 0, 0, 1, 1, 2], [0], [0]>} : vector<2x8x8xf32>, vector<2x8x8xf32>, vector<2x8x8xf32> -> vector<2x8x8xf32>
    "tpu.trace_stop"() : () -> ()
    %259 = vector.shape_cast %258 : vector<2x8x8xf32> to vector<16x8xf32>
    %260 = vector.extract_strided_slice %150 {offsets = [24, 0], sizes = [8, 32], strides = [1, 1]} : vector<32x32xf32> to vector<8x32xf32>
    %cst_93 = arith.constant dense<0.000000e+00> : vector<16x32xf32>
    %261 = tpu.matmul %259, %260, %cst_93 {dimension_numbers = #tpu.dot_dimension_numbers<[1], [0], [0], [1], [0, 0, 1, 1], [], []>} : vector<16x8xf32>, vector<8x32xf32>, vector<16x32xf32> -> vector<16x32xf32>
    %262 = arith.addf %234, %261 : vector<16x32xf32>
    %263 = arith.addf %143, %262 : vector<16x32xf32>
    %c0_94 = arith.constant 0 : index
    %c0_95 = arith.constant 0 : index
    %264 = vector.load %arg11[%c0_94, %c0_95] : memref<1x32xf32, #tpu.memory_space<vmem>>, vector<1x32xf32>
    %c0_96 = arith.constant 0 : index
    %c0_97 = arith.constant 0 : index
    %265 = vector.load %arg12[%c0_96, %c0_97] : memref<1x32xf32, #tpu.memory_space<vmem>>, vector<1x32xf32>
    %cst_98 = arith.constant dense<0.000000e+00> : vector<16xf32>
    %266 = vector.multi_reduction <add>, %263, %cst_98 [1] : vector<16x32xf32> to vector<16xf32>
    %267 = vector.shape_cast %266 : vector<16xf32> to vector<16x1xf32>
    %cst_99 = arith.constant 3.200000e+01 : f32
    %268 = vector.broadcast %cst_99 : f32 to vector<16x1xf32>
    %269 = arith.divf %267, %268 : vector<16x1xf32>
    %270 = vector.broadcast %269 : vector<16x1xf32> to vector<16x32xf32>
    %271 = arith.subf %263, %270 : vector<16x32xf32>
    %272 = arith.mulf %271, %271 : vector<16x32xf32>
    %cst_100 = arith.constant dense<0.000000e+00> : vector<16xf32>
    %273 = vector.multi_reduction <add>, %272, %cst_100 [1] : vector<16x32xf32> to vector<16xf32>
    %274 = vector.shape_cast %273 : vector<16xf32> to vector<16x1xf32>
    %cst_101 = arith.constant 0.0322580636 : f32
    %275 = vector.broadcast %cst_101 : f32 to vector<16x1xf32>
    %276 = arith.mulf %274, %275 : vector<16x1xf32>
    %277 = math.sqrt %276 : vector<16x1xf32>
    %cst_102 = arith.constant 9.99999997E-7 : f32
    %278 = vector.broadcast %cst_102 : f32 to vector<16x1xf32>
    %279 = arith.addf %277, %278 : vector<16x1xf32>
    %280 = tpu.reciprocal %279 {approx = true} : vector<16x1xf32> -> vector<16x1xf32>
    %281 = vector.broadcast %280 : vector<16x1xf32> to vector<16x32xf32>
    %282 = arith.mulf %271, %281 : vector<16x32xf32>
    %283 = vector.broadcast %264 : vector<1x32xf32> to vector<16x32xf32>
    %284 = arith.mulf %283, %282 : vector<16x32xf32>
    %285 = vector.broadcast %265 : vector<1x32xf32> to vector<16x32xf32>
    %286 = arith.addf %284, %285 : vector<16x32xf32>
    %c0_103 = arith.constant 0 : index
    %c0_104 = arith.constant 0 : index
    %287 = vector.load %arg13[%c0_103, %c0_104] : memref<32x64xf32, #tpu.memory_space<vmem>>, vector<32x64xf32>
    %cst_105 = arith.constant dense<0.000000e+00> : vector<16x64xf32>
    %288 = tpu.matmul %286, %287, %cst_105 {dimension_numbers = #tpu.dot_dimension_numbers<[1], [0], [0], [1], [0, 0, 1, 1], [], []>} : vector<16x32xf32>, vector<32x64xf32>, vector<16x64xf32> -> vector<16x64xf32>
    %c0_106 = arith.constant 0 : index
    %c0_107 = arith.constant 0 : index
    %289 = vector.load %arg14[%c0_106, %c0_107] : memref<1x64xf32, #tpu.memory_space<vmem>>, vector<1x64xf32>
    %290 = vector.broadcast %289 : vector<1x64xf32> to vector<16x64xf32>
    %291 = arith.addf %288, %290 : vector<16x64xf32>
    %cst_108 = arith.constant 0.000000e+00 : f32
    %292 = vector.broadcast %cst_108 : f32 to vector<16x64xf32>
    %293 = arith.maximumf %291, %292 : vector<16x64xf32>
    %c0_109 = arith.constant 0 : index
    %c0_110 = arith.constant 0 : index
    %294 = vector.load %arg15[%c0_109, %c0_110] : memref<64x32xf32, #tpu.memory_space<vmem>>, vector<64x32xf32>
    %cst_111 = arith.constant dense<0.000000e+00> : vector<16x32xf32>
    %295 = tpu.matmul %293, %294, %cst_111 {dimension_numbers = #tpu.dot_dimension_numbers<[1], [0], [0], [1], [0, 0, 1, 1], [], []>} : vector<16x64xf32>, vector<64x32xf32>, vector<16x32xf32> -> vector<16x32xf32>
    %c0_112 = arith.constant 0 : index
    %c0_113 = arith.constant 0 : index
    %296 = vector.load %arg16[%c0_112, %c0_113] : memref<1x32xf32, #tpu.memory_space<vmem>>, vector<1x32xf32>
    %297 = vector.broadcast %296 : vector<1x32xf32> to vector<16x32xf32>
    %298 = arith.addf %295, %297 : vector<16x32xf32>
    %299 = arith.addf %286, %298 : vector<16x32xf32>
    %c0_114 = arith.constant 0 : index
    %c0_115 = arith.constant 0 : index
    %300 = vector.load %arg17[%c0_114, %c0_115] : memref<1x32xf32, #tpu.memory_space<vmem>>, vector<1x32xf32>
    %c0_116 = arith.constant 0 : index
    %c0_117 = arith.constant 0 : index
    %301 = vector.load %arg18[%c0_116, %c0_117] : memref<1x32xf32, #tpu.memory_space<vmem>>, vector<1x32xf32>
    %cst_118 = arith.constant dense<0.000000e+00> : vector<16xf32>
    %302 = vector.multi_reduction <add>, %299, %cst_118 [1] : vector<16x32xf32> to vector<16xf32>
    %303 = vector.shape_cast %302 : vector<16xf32> to vector<16x1xf32>
    %cst_119 = arith.constant 3.200000e+01 : f32
    %304 = vector.broadcast %cst_119 : f32 to vector<16x1xf32>
    %305 = arith.divf %303, %304 : vector<16x1xf32>
    %306 = vector.broadcast %305 : vector<16x1xf32> to vector<16x32xf32>
    %307 = arith.subf %299, %306 : vector<16x32xf32>
    %308 = arith.mulf %307, %307 : vector<16x32xf32>
    %cst_120 = arith.constant dense<0.000000e+00> : vector<16xf32>
    %309 = vector.multi_reduction <add>, %308, %cst_120 [1] : vector<16x32xf32> to vector<16xf32>
    %310 = vector.shape_cast %309 : vector<16xf32> to vector<16x1xf32>
    %cst_121 = arith.constant 0.0322580636 : f32
    %311 = vector.broadcast %cst_121 : f32 to vector<16x1xf32>
    %312 = arith.mulf %310, %311 : vector<16x1xf32>
    %313 = math.sqrt %312 : vector<16x1xf32>
    %cst_122 = arith.constant 9.99999997E-7 : f32
    %314 = vector.broadcast %cst_122 : f32 to vector<16x1xf32>
    %315 = arith.addf %313, %314 : vector<16x1xf32>
    %316 = tpu.reciprocal %315 {approx = true} : vector<16x1xf32> -> vector<16x1xf32>
    %317 = vector.broadcast %316 : vector<16x1xf32> to vector<16x32xf32>
    %318 = arith.mulf %307, %317 : vector<16x32xf32>
    %319 = vector.broadcast %300 : vector<1x32xf32> to vector<16x32xf32>
    %320 = arith.mulf %319, %318 : vector<16x32xf32>
    %321 = vector.broadcast %301 : vector<1x32xf32> to vector<16x32xf32>
    %322 = arith.addf %320, %321 : vector<16x32xf32>
    %c0_123 = arith.constant 0 : index
    %c0_124 = arith.constant 0 : index
    %323 = vector.load %arg19[%c0_123, %c0_124] : memref<16x32xf32, #tpu.memory_space<vmem>>, vector<16x32xf32>
    tpu.vector_store %arg19[%c0_123, %c0_124], %322 {strides = array<i32>} : memref<16x32xf32, #tpu.memory_space<vmem>>, vector<16x32xf32>,
    return
  }
}

</mosaic_0001>

<bundles_post_ra>
// kernel: transformer_apply.7
= control target key start
LH: loop header
LB: loop body
LE: loop exit
PB: predicated region body
PF: predicated region fallthrough
CT: control target
= control target key end

     0   :  { %vm25_vm0 = vcmask 261120   ;;  %s154_s0 = inlined_call_operand.vmem [shape: f32[16,32], index: 0, kind: input, shape index: {}]   ;;  %s155_s1 = inlined_call_operand.vmem [shape: f32[16,32], index: 1, kind: input, shape index: {}]   ;;  %s156_s2 = inlined_call_operand.vmem [shape: f32[1,32], index: 2, kind: input, shape index: {}]   ;;  %s157_s3 = inlined_call_operand.vmem [shape: f32[1,32], index: 3, kind: input, shape index: {}]   ;;  %s158_s4 = inlined_call_operand.vmem [shape: f32[16,32], index: 4, kind: output, shape index: {}]  }
   0x1   :  { %v17_v0 = vld [vmem:[%s154_s0] sm:$0xff]  ;;  %v18_v2 = vld [vmem:[%s154_s0 + $0x8] sm:$0xff] }
   0x2   :  { %v19_v1 = vld [vmem:[%s155_s1] sm:$0xff]  ;;  %v20_v4 = vld [vmem:[%s155_s1 + $0x8] sm:$0xff] }
   0x3   :  { %v21_v3 = vadd.f32 %v19_v1, %v17_v0  ;;  %v22_v5 = vadd.f32 %v20_v4, %v18_v2  ;;  %v89_v35 = vld [vmem:[%s156_s2] ss:$0 sm:$0xff] }
   0x4   :  { %v90_v37 = vld [vmem:[%s157_s3] ss:$0 sm:$0xff] }
   0x5   :  { %v26_v6 = vsel %vm25_vm0, %v21_v3, 0.0  ;;  %v29_v7 = vsel %vm25_vm0, %v22_v5, 0.0 }
   0x6   :  { %27 = vadd.xlane.f32.xlu0 %v26_v6 }
   0xa   :  { %30 = vadd.xlane.f32.xlu0 %v29_v7 }
  0x8f   :  { %v28_v8 = vpop.xlane.xlu0 %27 }
  0x90   :  { %v33_v9 = vmul.f32 0.03125, %v28_v8 }
  0x92   :  { %v35_v10 = vsub.f32 %v21_v3, %v33_v9 }
  0x93   :  { %v31_v11 = vpop.xlane.xlu0 %30 }
  0x94   :  { %v34_v12 = vmul.f32 0.03125, %v31_v11  ;;  %v37_v13 = vmul.f32 %v35_v10, %v35_v10 }
  0x96   :  { %v36_v14 = vsub.f32 %v22_v5, %v34_v12  ;;  %v39_v15 = vsel %vm25_vm0, %v37_v13, 0.0 }
  0x97   :  { %40 = vadd.xlane.f32.xlu1 %v39_v15 }
  0x98   :  { %v38_v16 = vmul.f32 %v36_v14, %v36_v14 }
  0x9a   :  { %v42_v17 = vsel %vm25_vm0, %v38_v16, 0.0 }
  0x9b   :  { %43 = vadd.xlane.f32.xlu1 %v42_v17 }
 0x120   :  { %v41_v18 = vpop.xlane.xlu1 %40 }
 0x121   :  { %v45_v19 = vmul.f32 0.032258064, %v41_v18 }
 0x123   :  { %91 = vrsqrt.f32 %v45_v19  ;;  %vm49_vm1 = vcmp.eq.f32.partialorder %v45_v19, inf  ;;  %v52_v24 = vand.u32 2147483648, %v45_v19  ;;  %vm51_vm2 = vcmp.eq.f32.partialorder %v45_v19, 0.0 }
 0x124   :  { %v44_v20 = vpop.xlane.xlu1 %43 }
 0x125   :  { %v46_v21 = vmul.f32 0.032258064, %v44_v20 }
 0x127   :  { %93 = vrsqrt.f32 %v46_v21  ;;  %vm56_vm3 = vcmp.eq.f32.partialorder %v46_v21, inf  ;;  %v59_v30 = vand.u32 2147483648, %v46_v21  ;;  %vm58_vm4 = vcmp.eq.f32.partialorder %v46_v21, 0.0 }
 0x130   :  { %v92_v22 = vpop.eup %91 }
 0x131   :  { %v48_v23 = vmul.f32 %v92_v22, %v45_v19 }
 0x133   :  { %v50_v25 = vsel %vm49_vm1, %v45_v19, %v48_v23 }
 0x134   :  { %v94_v26 = vpop.eup %93  ;;  %v53_v27 = vsel %vm51_vm2, %v52_v24, %v50_v25 }
 0x135   :  { %v61_v28 = vadd.f32 1e-06, %v53_v27  ;;  %v55_v29 = vmul.f32 %v94_v26, %v46_v21 }
 0x137   :  { %95 = vrcp.f32 %v61_v28  ;;  %v57_v31 = vsel %vm56_vm3, %v46_v21, %v55_v29 }
 0x138   :  { %v60_v32 = vsel %vm58_vm4, %v59_v30, %v57_v31 }
 0x139   :  { %v62_v33 = vadd.f32 1e-06, %v60_v32 }
 0x13b   :  { %97 = vrcp.f32 %v62_v33 }
 0x144   :  { %v96_v34 = vpop.eup %95 }
 0x145   :  { %v65_v36 = vmul.f32 %v96_v34, %v35_v10 }
 0x147   :  { %v73_v38 = vmul.f32 %v89_v35, %v65_v36 }
 0x148   :  { %v98_v39 = vpop.eup %97 }
 0x149   :  { %v81_v40 = vadd.f32 %v90_v37, %v73_v38  ;;  %v66_v41 = vmul.f32 %v98_v39, %v36_v14 }
 0x14b   :  { %83 = vst.msk [vmem:[%s158_s4] sm:$0xff] %vm25_vm0, %v81_v40  ;;  %v74_v42 = vmul.f32 %v89_v35, %v66_v41 }
 0x14d   :  { %v82_v43 = vadd.f32 %v90_v37, %v74_v42 }
 0x14f   :  { %84 = vst.msk [vmem:[%s158_s4 + $0x8] sm:$0xff] %vm25_vm0, %v82_v43 }

// kernel: transformer_apply.13
= control target key start
LH: loop header
LB: loop body
LE: loop exit
PB: predicated region body
PF: predicated region fallthrough
CT: control target
= control target key end

     0   :  { %vm27_vm0 = vcmask 261120   ;;  %s184_s1 = inlined_call_operand.vmem [shape: f32[32,128], index: 1, kind: input, shape index: {}]   ;;  %s185_s0 = inlined_call_operand.vmem [shape: f32[16,32], index: 0, kind: input, shape index: {}]   ;;  %s186_s2 = inlined_call_operand.vmem [shape: f32[1,128], index: 2, kind: input, shape index: {}]   ;;  %s187_s3 = inlined_call_operand.vmem [shape: f32[16,128], index: 3, kind: output, shape index: {}]  }
   0x1   :  { %v19_v0 = vld [vmem:[%s184_s1 + $0x18] sm:$0xff]  ;;  %v18_v1 = vld [vmem:[%s184_s1 + $0x10] sm:$0xff]  ;;  %v14_v2 = vld [vmem:[%s185_s0] sm:$0xff] }
   0x2   :  { %124 = vmatprep.subr.mxu0 %v19_v0  ;;  %v17_v3 = vld [vmem:[%s184_s1 + $0x8] sm:$0xff]  ;;  %132 = vmatprep.mubr.msk.f32.mxu0 %vm27_vm0, %v14_v2  ;;  %v16_v4 = vld [vmem:[%s184_s1] sm:$0xff] }
   0x3   :  { %125 = vmatpush3.msra.mxu0 %v19_v0  ;;  %v15_v5 = vld [vmem:[%s185_s0 + $0x8] sm:$0xff]  ;;  %v115_v6 = vld [vmem:[%s186_s2] ss:$0 sm:$0xff] }
   0x4   :  { %126 = vmatprep.subr.mxu0 %v18_v1 }
   0x5   :  { %127 = vmatpush3.msra.mxu0 %v18_v1 }
   0x6   :  { %128 = vmatprep.subr.mxu0 %v17_v3 }
   0x7   :  { %129 = vmatpush3.msra.mxu0 %v17_v3 }
   0x8   :  { %130 = vmatprep.subr.mxu0 %v16_v4 }
   0x9   :  { %131 = vmatpush3.msra.mxu0 %v16_v4 }
   0xa   :  { %133 = vmatmul.mubr.msk.f32.vlgmr.msra.gmra.mxu0 %vm27_vm0, %v15_v5 }
  0xca   :  { %v134_v7 = vpop.f32.mrf.mxu0 }
  0xcb   :  { %v106_v8 = vadd.f32 %v134_v7, %v115_v6 }
  0xcc   :  { %v100_v9 = vpop.f32.mrf.mxu0 }
  0xcd   :  { %110 = vst [vmem:[%s187_s3 + $0x8] sm:$0xff] %v106_v8  ;;  %v101_v10 = vadd.f32 %v115_v6, %v100_v9 }
  0xcf   :  { %109 = vst [vmem:[%s187_s3] sm:$0xff] %v101_v10 }

// kernel: transformer_apply.8
= control target key start
LH: loop header
LB: loop body
LE: loop exit
PB: predicated region body
PF: predicated region fallthrough
CT: control target
= control target key end

     0   :  { %vm49_vm0 = vcmask 261120   ;;  %v2430_v6 = vmov 0.0   ;;  %vm2431_vm1 = vmmov 0   ;;  %vm138_vm2 = vcmask 64512   ;;  %s2434_s18 = smov 120   ;;  %s2435_s19 = smov 88   ;;  %s2791_s2 = inlined_call_operand.vmem [shape: f32[32,96], index: 2, kind: input, shape index: {}]   ;;  %s2792_s0 = inlined_call_operand.vmem [shape: f32[16,32], index: 0, kind: input, shape index: {}]   ;;  %s2793_s1 = inlined_call_operand.vmem [shape: f32[2,8,8], index: 1, kind: input, shape index: {}]   ;;  %s2794_s3 = inlined_call_operand.vmem [shape: f32[32,32], index: 3, kind: input, shape index: {}]   ;;  %s2795_s6 = inlined_call_operand.vmem [shape: f32[32,64], index: 6, kind: input, shape index: {}]   ;;  %s2796_s8 = inlined_call_operand.vmem [shape: f32[64,32], index: 8, kind: input, shape index: {}]   ;;  %s2797_s4 = inlined_call_operand.vmem [shape: f32[1,32], index: 4, kind: input, shape index: {}]   ;;  %s2798_s5 = inlined_call_operand.vmem [shape: f32[1,32], index: 5, kind: input, shape index: {}]   ;;  %s2799_s7 = inlined_call_operand.vmem [shape: f32[1,64], index: 7, kind: input, shape index: {}]   ;;  %s2800_s9 = inlined_call_operand.vmem [shape: f32[1,32], index: 9, kind: input, shape index: {}]   ;;  %s2801_s10 = inlined_call_operand.vmem [shape: f32[1,32], index: 10, kind: input, shape index: {}]   ;;  %s2802_s11 = inlined_call_operand.vmem [shape: f32[1,32], index: 11, kind: input, shape index: {}]   ;;  %s2803_s12 = inlined_call_operand.vmem [shape: f32[16,32], index: 12, kind: output, shape index: {}]  }
   0x1   :  { %v48_v0 = vld [vmem:[%s2791_s2 + $0x18] sm:$0xff]  ;;  %v47_v1 = vld [vmem:[%s2791_s2 + $0x10] sm:$0xff]  ;;  %v2517_v2 = vld [vmem:[%s2792_s0] sm:$0xff]  ;;  %2244 = vmatprep.subr.mxu1 %v2430_v6  ;;  %2246 = vmatprep.mubr.msk.f32.mxu1 %vm2431_vm1, %v2430_v6  ;;  %s2436_s20 = smov 56   ;;  %s2437_s21 = smov 112   ;;  %vm1970_vm9 = vcmask 523264  }
   0x2   :  { %2228 = vmatprep.subr.mxu0 %v48_v0  ;;  %v46_v3 = vld [vmem:[%s2791_s2 + $0x8] sm:$0xff]  ;;  %2236 = vmatprep.mubr.msk.f32.mxu0 %vm49_vm0, %v2517_v2  ;;  %v45_v4 = vld [vmem:[%s2791_s2] sm:$0xff]  ;;  %s2438_s22 = smov 80   ;;  %s2439_s27 = smov 48  }
   0x3   :  { %2229 = vmatpush3.msra.mxu0 %v48_v0  ;;  %v2530_v5 = vld [vmem:[%s2792_s0 + $0x8] sm:$0xff]  ;;  %s2432_s0 = smov 96   ;;  %v2561_v11 = vld [vmem:[%s2793_s1] sm:$0xff]  ;;  %s2440_s28 = smov 72  }
   0x4   :  { %2230 = vmatprep.subr.mxu0 %v47_v1  ;;  %vm292_vm3 = vcmp.eq.f32.partialorder %v2561_v11, 0.0  ;;  %v2567_v14 = vld [vmem:[%s2793_s1 + $0x8] sm:$0xff]  ;;  %s2433_s1 = smov 64   ;;  %s2441_s29 = smov 104  }
   0x5   :  { %2231 = vmatpush3.msra.mxu0 %v47_v1  ;;  %vm293_vm4 = vcmp.eq.f32.partialorder %v2567_v14, 0.0  ;;  %s2442_s14 = smov 40  }
   0x6   :  { %2232 = vmatprep.subr.mxu0 %v46_v3 }
   0x7   :  { %2233 = vmatpush3.msra.mxu0 %v46_v3 }
   0x8   :  { %2234 = vmatprep.subr.mxu0 %v45_v4 }
   0x9   :  { %2235 = vmatpush3.msra.mxu0 %v45_v4 }
   0xa   :  { %2237 = vmatmul.mubr.msk.f32.vlgmr.msra.gmra.mxu0 %vm49_vm0, %v2530_v5  ;;  %2239 = vmatprep.subr.mxu0 %v2430_v6 }
   0xb   :  { %2241 = vmatprep.mubr.msk.f32.mxu0 %vm2431_vm1, %v2430_v6 }
  0xca   :  { %v2540_v7 = vpop.f32.mrf.mxu0 }
  0xcc   :  { %v2542_v8 = vpop.f32.mrf.mxu0 }
  0xcd   :  { %136 = vrot.lane.b32.xlu0 %v2542_v8, %s2432_s0 }
  0xd1   :  { %214 = vrot.lane.b32.xlu0 %v2540_v7, %s2432_s0 }
 0x13f   :  { %v137_v9 = vpop.permute.xlu0 %136 }
 0x140   :  { %2240 = vmatpush3.xpose.msk.msra.mxu0 %vm138_vm2, %v137_v9 }
 0x141   :  { %2249 = vmatprep.subr.mxu0 %v2430_v6 }
 0x143   :  { %2242 = vmatmul.mubr.msk.f32.vlgmr.msra.gmra.mxu0 %vm138_vm2, %v2542_v8  ;;  %v215_v10 = vpop.permute.xlu0 %214 }
 0x144   :  { %2245 = vmatpush3.xpose.msk.msra.mxu1 %vm138_vm2, %v215_v10  ;;  %2251 = vmatprep.mubr.msk.f32.mxu0 %vm2431_vm1, %v2430_v6 }
 0x145   :  { %2254 = vmatprep.subr.mxu1 %v2430_v6 }
 0x147   :  { %2247 = vmatmul.mubr.msk.f32.vlgmr.msra.gmra.mxu1 %vm138_vm2, %v2540_v7 }
 0x148   :  { %2256 = vmatprep.mubr.msk.f32.mxu1 %vm2431_vm1, %v2430_v6 }
 0x203   :  { %v209_v12 = vpop.f32.mrf.mxu0 }
 0x204   :  { %v290_v13 = vmul.f32 0.125, %v209_v12  ;;  %v131_v12 = vld [vmem:[%s2794_s3] sm:$0xff] }
 0x205   :  { %v2243_v15 = vpop.f32.mrf.mxu0 }
 0x206   :  { %v294_v16 = vsel %vm292_vm3, -1e+09, %v290_v13 }
 0x207   :  { %v286_v17 = vpop.f32.mrf.mxu1  ;;  %v296_v18 = vsel %vm138_vm2, %v294_v16, -inf }
 0x208   :  { %v291_v19 = vmul.f32 0.125, %v286_v17  ;;  %297 = vmax.xlane.f32.xlu1 %v296_v18 }
 0x209   :  { %v2248_v20 = vpop.f32.mrf.mxu1 }
 0x20a   :  { %v295_v21 = vsel %vm293_vm4, -1e+09, %v291_v19 }
 0x20b   :  { %v299_v22 = vsel %vm138_vm2, %v295_v21, -inf }
 0x20c   :  { %300 = vmax.xlane.f32.xlu1 %v299_v22 }
 0x291   :  { %v298_v23 = vpop.xlane.xlu1 %297 }
 0x292   :  { %v302_v24 = vsub.f32 %v294_v16, %v298_v23 }
 0x294   :  { %v304_v25 = vmul.f32 1.442695, %v302_v24  ;;  %v132_v24 = vld [vmem:[%s2794_s3 + $0x8] sm:$0xff] }
 0x295   :  { %v301_v26 = vpop.xlane.xlu1 %300 }
 0x296   :  { %2382 = vpow2.f32 %v304_v25  ;;  %v303_v27 = vsub.f32 %v295_v21, %v301_v26 }
 0x298   :  { %v306_v28 = vmul.f32 1.442695, %v303_v27 }
 0x29a   :  { %2384 = vpow2.f32 %v306_v28 }
 0x2a3   :  { %v2383_v29 = vpop.eup %2382 }
 0x2a4   :  { %v308_v30 = vsel %vm138_vm2, %v2383_v29, 0.0 }
 0x2a5   :  { %309 = vadd.xlane.f32.xlu0 %v308_v30 }
 0x2a7   :  { %v2385_v31 = vpop.eup %2384 }
 0x2a8   :  { %v311_v32 = vsel %vm138_vm2, %v2385_v31, 0.0 }
 0x2a9   :  { %312 = vadd.xlane.f32.xlu1 %v311_v32 }
 0x2ba   :  { %318 = vrot.lane.b32.xlu1 %v2542_v8, %s2433_s1 }
 0x2bb   :  { %470 = vrot.lane.b32.xlu0 %v2542_v8, %s2434_s18 }
 0x2be   :  { %394 = vrot.lane.b32.xlu1 %v2540_v7, %s2433_s1 }
 0x2c2   :  { %472 = vrot.lane.b32.xlu1 %v2542_v8, %s2435_s19 }
 0x2c6   :  { %550 = vrot.lane.b32.xlu1 %v2540_v7, %s2435_s19 }
 0x2ca   :  { %548 = vrot.lane.b32.xlu1 %v2540_v7, %s2434_s18 }
 0x32e   :  { %v310_v33 = vpop.xlane.xlu0 %309 }
 0x32f   :  { %2386 = vrcp.f32 %v310_v33 }
 0x332   :  { %v313_v34 = vpop.xlane.xlu1 %312  ;;  %v471_v42 = vpop.permute.xlu0 %470 }
 0x333   :  { %2388 = vrcp.f32 %v313_v34 }
 0x336   :  { %v319_v35 = vpop.permute.xlu1 %318 }
 0x337   :  { %2250 = vmatpush3.msra.mxu0 %v319_v35 }
 0x338   :  { %2259 = vmatprep.subr.mxu0 %v2430_v6 }
 0x33a   :  { %v395_v36 = vpop.permute.xlu1 %394 }
 0x33b   :  { %2255 = vmatpush3.msra.mxu1 %v395_v36 }
 0x33c   :  { %v2387_v37 = vpop.eup %2386  ;;  %2264 = vmatprep.subr.mxu1 %v2430_v6 }
 0x33d   :  { %v316_v38 = vmul.f32 %v2387_v37, %v2383_v29 }
 0x33e   :  { %v473_v39 = vpop.permute.xlu1 %472 }
 0x33f   :  { %2252 = vmatmul.mubr.msk.f32.vlgmr.msra.gmra.mxu0 %vm138_vm2, %v316_v38 }
 0x340   :  { %v2389_v40 = vpop.eup %2388  ;;  %2260 = vmatpush3.xpose.msk.msra.mxu0 %vm138_vm2, %v473_v39  ;;  %2261 = vmatprep.mubr.msk.f32.mxu0 %vm2431_vm1, %v2430_v6 }
 0x341   :  { %v317_v41 = vmul.f32 %v2389_v40, %v2385_v31  ;;  %2269 = vmatprep.subr.mxu0 %v2430_v6 }
 0x342   :  { %v551_v43 = vpop.permute.xlu1 %550 }
 0x343   :  { %2257 = vmatmul.mubr.msk.f32.vlgmr.msra.gmra.mxu1 %vm138_vm2, %v317_v41  ;;  %2262 = vmatmul.mubr.msk.f32.vlgmr.msra.gmra.mxu0 %vm138_vm2, %v471_v42 }
 0x344   :  { %2265 = vmatpush3.xpose.msk.msra.mxu1 %vm138_vm2, %v551_v43  ;;  %2266 = vmatprep.mubr.msk.f32.mxu1 %vm2431_vm1, %v2430_v6 }
 0x345   :  { %2274 = vmatprep.subr.mxu1 %v2430_v6  ;;  %2271 = vmatprep.mubr.msk.f32.mxu0 %vm2431_vm1, %v2430_v6 }
 0x346   :  { %v549_v44 = vpop.permute.xlu1 %548 }
 0x347   :  { %2267 = vmatmul.mubr.msk.f32.vlgmr.msra.gmra.mxu1 %vm138_vm2, %v549_v44 }
 0x348   :  { %2276 = vmatprep.mubr.msk.f32.mxu1 %vm2431_vm1, %v2430_v6 }
 0x3ff   :  { %v390_v45 = vpop.f32.mrf.mxu0 }
 0x401   :  { %v2253_v46 = vpop.f32.mrf.mxu0 }
 0x403   :  { %v466_v47 = vpop.f32.mrf.mxu1  ;;  %v544_v48 = vpop.f32.mrf.mxu0 }
 0x404   :  { %v626_v49 = vmul.f32 0.125, %v544_v48 }
 0x405   :  { %v2258_v50 = vpop.f32.mrf.mxu1  ;;  %v2263_v51 = vpop.f32.mrf.mxu0 }
 0x406   :  { %v628_v52 = vsel %vm292_vm3, -1e+09, %v626_v49 }
 0x407   :  { %v622_v53 = vpop.f32.mrf.mxu1  ;;  %v630_v54 = vsel %vm138_vm2, %v628_v52, -inf }
 0x408   :  { %v627_v55 = vmul.f32 0.125, %v622_v53  ;;  %631 = vmax.xlane.f32.xlu1 %v630_v54 }
 0x409   :  { %v2268_v56 = vpop.f32.mrf.mxu1 }
 0x40a   :  { %v629_v57 = vsel %vm293_vm4, -1e+09, %v627_v55 }
 0x40b   :  { %v633_v58 = vsel %vm138_vm2, %v629_v57, -inf }
 0x40c   :  { %634 = vmax.xlane.f32.xlu0 %v633_v58 }
 0x422   :  { %728 = vrot.lane.b32.xlu0 %v2540_v7, %s2436_s20 }
 0x426   :  { %966 = vrot.lane.b32.xlu0 %v2542_v8, %s2437_s21 }
 0x491   :  { %v632_v59 = vpop.xlane.xlu1 %631 }
 0x492   :  { %v636_v60 = vsub.f32 %v628_v52, %v632_v59 }
 0x494   :  { %v638_v63 = vmul.f32 1.442695, %v636_v60 }
 0x495   :  { %v635_v61 = vpop.xlane.xlu0 %634 }
 0x496   :  { %v637_v62 = vsub.f32 %v629_v57, %v635_v61 }
 0x498   :  { %v640_v0 = vmul.f32 1.442695, %v637_v62 }
 0x499   :  { %v729_v1 = vpop.permute.xlu0 %728 }
 0x49a   :  { %2390 = vpow2.f32 %v640_v0  ;;  %2275 = vmatpush3.msra.mxu1 %v729_v1  ;;  %v133_v0 = vld [vmem:[%s2794_s3 + $0x10] sm:$0xff] }
 0x49b   :  { %2392 = vpow2.f32 %v638_v63  ;;  %2284 = vmatprep.subr.mxu1 %v131_v12 }
 0x49d   :  { %v967_v32 = vpop.permute.xlu0 %966 }
 0x4a7   :  { %v2391_v3 = vpop.eup %2390 }
 0x4a8   :  { %v645_v4 = vsel %vm138_vm2, %v2391_v3, 0.0  ;;  %v2393_v9 = vpop.eup %2392 }
 0x4a9   :  { %646 = vadd.xlane.f32.xlu1 %v645_v4  ;;  %v642_v10 = vsel %vm138_vm2, %v2393_v9, 0.0 }
 0x4ad   :  { %643 = vadd.xlane.f32.xlu1 %v642_v10 }
 0x4be   :  { %652 = vrot.lane.b32.xlu1 %v2542_v8, %s2436_s20 }
 0x4c2   :  { %968 = vrot.lane.b32.xlu1 %v2542_v8, %s2438_s22 }
 0x4c6   :  { %1046 = vrot.lane.b32.xlu1 %v2540_v7, %s2438_s22 }
 0x4ca   :  { %1044 = vrot.lane.b32.xlu1 %v2540_v7, %s2437_s21 }
 0x532   :  { %v647_v13 = vpop.xlane.xlu1 %646 }
 0x533   :  { %2394 = vrcp.f32 %v647_v13 }
 0x536   :  { %v644_v15 = vpop.xlane.xlu1 %643 }
 0x537   :  { %2396 = vrcp.f32 %v644_v15 }
 0x53a   :  { %v653_v16 = vpop.permute.xlu1 %652 }
 0x53b   :  { %2270 = vmatpush3.msra.mxu0 %v653_v16 }
 0x53c   :  { %2279 = vmatprep.subr.mxu0 %v132_v24 }
 0x53e   :  { %v969_v17 = vpop.permute.xlu1 %968 }
 0x540   :  { %v2395_v18 = vpop.eup %2394 }
 0x541   :  { %v651_v19 = vmul.f32 %v2395_v18, %v2391_v3 }
 0x542   :  { %v1047_v21 = vpop.permute.xlu1 %1046 }
 0x543   :  { %2277 = vmatmul.mubr.msk.f32.vlgmr.msra.gmra.mxu1 %vm138_vm2, %v651_v19 }
 0x544   :  { %v2397_v20 = vpop.eup %2396  ;;  %2286 = vmatprep.mubr.msk.f32.mxu1 %vm138_vm2, %v390_v45  ;;  %2285 = vmatpush3.msra.mxu1 %v131_v12 }
 0x545   :  { %2294 = vmatprep.subr.mxu1 %v2430_v6  ;;  %v650_v22 = vmul.f32 %v2397_v20, %v2393_v9 }
 0x546   :  { %v1045_v23 = vpop.permute.xlu1 %1044 }
 0x547   :  { %2272 = vmatmul.mubr.msk.f32.vlgmr.msra.gmra.mxu0 %vm138_vm2, %v650_v22  ;;  %2287 = vmatmul.mubr.msk.f32.vlgmr.msra.gmra.mxu1 %vm138_vm2, %v466_v47 }
 0x548   :  { %2295 = vmatpush3.xpose.msk.msra.mxu1 %vm138_vm2, %v1047_v21  ;;  %2296 = vmatprep.mubr.msk.f32.mxu1 %vm2431_vm1, %v2430_v6 }
 0x549   :  { %2304 = vmatprep.subr.mxu1 %v2430_v6  ;;  %2280 = vmatpush3.msra.mxu0 %v132_v24 }
 0x54a   :  { %2289 = vmatprep.subr.mxu0 %v2430_v6 }
 0x54b   :  { %2297 = vmatmul.mubr.msk.f32.vlgmr.msra.gmra.mxu1 %vm138_vm2, %v1045_v23 }
 0x54c   :  { %2306 = vmatprep.mubr.msk.f32.mxu1 %vm2431_vm1, %v2430_v6 }
 0x603   :  { %v800_v25 = vpop.f32.mrf.mxu1 }
 0x605   :  { %v2278_v26 = vpop.f32.mrf.mxu1 }
 0x607   :  { %v724_v27 = vpop.f32.mrf.mxu0  ;;  %v2635_v28 = vpop.f32.mrf.mxu1 }
 0x608   :  { %2281 = vmatprep.mubr.msk.f32.mxu0 %vm138_vm2, %v724_v27 }
 0x609   :  { %v2273_v29 = vpop.f32.mrf.mxu0  ;;  %2282 = vmatmul.mubr.msk.f32.vlgmr.msra.gmra.mxu0 %vm138_vm2, %v800_v25  ;;  %v2639_v30 = vpop.f32.mrf.mxu1 }
 0x60a   :  { %2290 = vmatpush3.xpose.msk.msra.mxu0 %vm138_vm2, %v969_v17  ;;  %2291 = vmatprep.mubr.msk.f32.mxu0 %vm2431_vm1, %v2430_v6 }
 0x60b   :  { %v1118_v31 = vpop.f32.mrf.mxu1  ;;  %2299 = vmatprep.subr.mxu0 %v2430_v6 }
 0x60c   :  { %v1123_v33 = vmul.f32 0.125, %v1118_v31 }
 0x60d   :  { %2292 = vmatmul.mubr.msk.f32.vlgmr.msra.gmra.mxu0 %vm138_vm2, %v967_v32  ;;  %v2298_v34 = vpop.f32.mrf.mxu1 }
 0x60e   :  { %v1125_v35 = vsel %vm293_vm4, -1e+09, %v1123_v33  ;;  %2301 = vmatprep.mubr.msk.f32.mxu0 %vm2431_vm1, %v2430_v6 }
 0x60f   :  { %v1129_v36 = vsel %vm138_vm2, %v1125_v35, -inf }
 0x610   :  { %1130 = vmax.xlane.f32.xlu1 %v1129_v36 }
 0x621   :  { %1148 = vrot.lane.b32.xlu1 %v2542_v8, %s2439_s27 }
 0x625   :  { %1385 = vrot.lane.b32.xlu1 %v2542_v8, %s2440_s28 }
 0x629   :  { %1463 = vrot.lane.b32.xlu1 %v2540_v7, %s2440_s28 }
 0x62d   :  { %1461 = vrot.lane.b32.xlu1 %v2540_v7, %s2441_s29 }
 0x699   :  { %v1131_v37 = vpop.xlane.xlu1 %1130 }
 0x69a   :  { %v1133_v39 = vsub.f32 %v1125_v35, %v1131_v37 }
 0x69c   :  { %v1136_v40 = vmul.f32 1.442695, %v1133_v39 }
 0x69d   :  { %v1149_v38 = vpop.permute.xlu1 %1148 }
 0x69e   :  { %2300 = vmatpush3.msra.mxu0 %v1149_v38  ;;  %2398 = vpow2.f32 %v1136_v40 }
 0x69f   :  { %2309 = vmatprep.subr.mxu0 %v133_v0 }
 0x6a1   :  { %v1386_v60 = vpop.permute.xlu1 %1385 }
 0x6a5   :  { %v1464_v15 = vpop.permute.xlu1 %1463 }
 0x6a9   :  { %v1462_v18 = vpop.permute.xlu1 %1461 }
 0x6ab   :  { %v2399_v48 = vpop.eup %2398 }
 0x6ac   :  { %v1141_v49 = vsel %vm138_vm2, %v2399_v48, 0.0 }
 0x6c9   :  { %v2656_v41 = vpop.f32.mrf.mxu0 }
 0x6ca   :  { %v963_v23 = vadd.f32 %v2635_v28, %v2656_v41 }
 0x6cb   :  { %v2658_v42 = vpop.f32.mrf.mxu0 }
 0x6cc   :  { %v958_v25 = vadd.f32 %v2639_v30, %v2658_v42 }
 0x6cd   :  { %v1040_v43 = vpop.f32.mrf.mxu0 }
 0x6ce   :  { %v1122_v44 = vmul.f32 0.125, %v1040_v43 }
 0x6cf   :  { %v2293_v45 = vpop.f32.mrf.mxu0 }
 0x6d0   :  { %v1124_v46 = vsel %vm292_vm3, -1e+09, %v1122_v44 }
 0x6d1   :  { %v1126_v47 = vsel %vm138_vm2, %v1124_v46, -inf }
 0x6d2   :  { %1127 = vmax.xlane.f32.xlu0 %v1126_v47 }
 0x6d6   :  { %1142 = vadd.xlane.f32.xlu0 %v1141_v49 }
 0x75b   :  { %v1128_v50 = vpop.xlane.xlu0 %1127 }
 0x75c   :  { %v1132_v51 = vsub.f32 %v1124_v46, %v1128_v50 }
 0x75e   :  { %v1134_v52 = vmul.f32 1.442695, %v1132_v51 }
 0x75f   :  { %v1143_v55 = vpop.xlane.xlu0 %1142 }
 0x760   :  { %2400 = vpow2.f32 %v1134_v52 }
 0x761   :  { %2402 = vrcp.f32 %v1143_v55 }
 0x76d   :  { %v2401_v53 = vpop.eup %2400 }
 0x76e   :  { %v1138_v54 = vsel %vm138_vm2, %v2401_v53, 0.0  ;;  %v2403_v57 = vpop.eup %2402 }
 0x76f   :  { %1139 = vadd.xlane.f32.xlu0 %v1138_v54  ;;  %v1147_v59 = vmul.f32 %v2403_v57, %v2399_v48 }
 0x785   :  { %1224 = vrot.lane.b32.xlu0 %v2540_v7, %s2439_s27 }
 0x789   :  { %1383 = vrot.lane.b32.xlu0 %v2542_v8, %s2441_s29 }
 0x7f8   :  { %v1140_v56 = vpop.xlane.xlu0 %1139 }
 0x7f9   :  { %2404 = vrcp.f32 %v1140_v56 }
 0x7fc   :  { %v1225_v58 = vpop.permute.xlu0 %1224 }
 0x7fd   :  { %2305 = vmatpush3.msra.mxu1 %v1225_v58 }
 0x7fe   :  { %2307 = vmatmul.mubr.msk.f32.vlgmr.msra.gmra.mxu1 %vm138_vm2, %v1147_v59  ;;  %2314 = vmatprep.subr.mxu1 %v2430_v6 }
 0x7ff   :  { %2315 = vmatpush3.xpose.msk.msra.mxu1 %vm138_vm2, %v1386_v60  ;;  %2316 = vmatprep.mubr.msk.f32.mxu1 %vm2431_vm1, %v2430_v6 }
 0x800   :  { %v1384_v61 = vpop.permute.xlu0 %1383  ;;  %2324 = vmatprep.subr.mxu1 %v2430_v6 }
 0x802   :  { %2317 = vmatmul.mubr.msk.f32.vlgmr.msra.gmra.mxu1 %vm138_vm2, %v1384_v61 }
 0x803   :  { %2326 = vmatprep.mubr.msk.f32.mxu1 %vm2431_vm1, %v2430_v6 }
 0x806   :  { %v2405_v62 = vpop.eup %2404 }
 0x807   :  { %v1146_v63 = vmul.f32 %v2405_v62, %v2401_v53 }
 0x809   :  { %2302 = vmatmul.mubr.msk.f32.vlgmr.msra.gmra.mxu0 %vm138_vm2, %v1146_v63 }
 0x80a   :  { %2310 = vmatpush3.msra.mxu0 %v133_v0  ;;  %v1864_v0 = vld [vmem:[%s2795_s6 + $0x18] sm:$0xff] }
 0x80b   :  { %2319 = vmatprep.subr.mxu0 %v2430_v6 }
 0x8be   :  { %v1296_v1 = vpop.f32.mrf.mxu1 }
 0x8c0   :  { %v2308_v3 = vpop.f32.mrf.mxu1 }
 0x8c1   :  { %v1862_v3 = vld [vmem:[%s2795_s6 + $0x8] sm:$0xff] }
 0x8c2   :  { %v1457_v4 = vpop.f32.mrf.mxu1 }
 0x8c3   :  { %v1539_v9 = vmul.f32 0.125, %v1457_v4  ;;  %v1861_v4 = vld [vmem:[%s2795_s6] sm:$0xff] }
 0x8c4   :  { %v2318_v10 = vpop.f32.mrf.mxu1 }
 0x8c5   :  { %v1541_v12 = vsel %vm292_vm3, -1e+09, %v1539_v9  ;;  %v1962_v9 = vld [vmem:[%s2796_s8 + $0x38] sm:$0xff]  ;;  %v1961_v10 = vld [vmem:[%s2796_s8 + $0x30] sm:$0xff] }
 0x8c6   :  { %v1543_v13 = vsel %vm138_vm2, %v1541_v12, -inf }
 0x8c7   :  { %1544 = vmax.xlane.f32.xlu0 %v1543_v13  ;;  %v1959_v13 = vld [vmem:[%s2796_s8 + $0x20] sm:$0xff] }
 0x8c9   :  { %v1220_v16 = vpop.f32.mrf.mxu0 }
 0x8ca   :  { %2311 = vmatprep.mubr.msk.f32.mxu0 %vm138_vm2, %v1220_v16 }
 0x8cb   :  { %v2303_v17 = vpop.f32.mrf.mxu0  ;;  %2312 = vmatmul.mubr.msk.f32.vlgmr.msra.gmra.mxu0 %vm138_vm2, %v1296_v1  ;;  %v1863_v1 = vld [vmem:[%s2795_s6 + $0x10] sm:$0xff] }
 0x8cc   :  { %2320 = vmatpush3.xpose.msk.msra.mxu0 %vm138_vm2, %v1464_v15  ;;  %2321 = vmatprep.mubr.msk.f32.mxu0 %vm2431_vm1, %v2430_v6 }
 0x8cd   :  { %2329 = vmatprep.subr.mxu0 %v2430_v6 }
 0x8cf   :  { %2322 = vmatmul.mubr.msk.f32.vlgmr.msra.gmra.mxu0 %vm138_vm2, %v1462_v18 }
 0x8d0   :  { %2331 = vmatprep.mubr.msk.f32.mxu0 %vm2431_vm1, %v2430_v6 }
 0x950   :  { %v1545_v11 = vpop.xlane.xlu0 %1544 }
 0x951   :  { %v1549_v19 = vsub.f32 %v1541_v12, %v1545_v11  ;;  %v1960_v12 = vld [vmem:[%s2796_s8 + $0x28] sm:$0xff] }
 0x953   :  { %v1551_v20 = vmul.f32 1.442695, %v1549_v19 }
 0x955   :  { %2406 = vpow2.f32 %v1551_v20 }
 0x962   :  { %v2407_v21 = vpop.eup %2406 }
 0x963   :  { %v1555_v22 = vsel %vm138_vm2, %v2407_v21, 0.0 }
 0x964   :  { %1556 = vadd.xlane.f32.xlu0 %v1555_v22 }
 0x98b   :  { %v2313_v24 = vpop.f32.mrf.mxu0 }
 0x98c   :  { %v1382_v26 = vadd.f32 %v2313_v24, %v963_v23 }
 0x98d   :  { %v1372_v27 = vpop.f32.mrf.mxu0 }
 0x98e   :  { %v1381_v29 = vadd.f32 %v1372_v27, %v958_v25 }
 0x98f   :  { %v1535_v31 = vpop.f32.mrf.mxu0 }
 0x990   :  { %v1540_v6 = vmul.f32 0.125, %v1535_v31 }
 0x991   :  { %v2323_v32 = vpop.f32.mrf.mxu0 }
 0x992   :  { %v1542_v33 = vsel %vm293_vm4, -1e+09, %v1540_v6 }
 0x993   :  { %v1546_v34 = vsel %vm138_vm2, %v1542_v33, -inf }
 0x994   :  { %1547 = vmax.xlane.f32.xlu1 %v1546_v34 }
 0x9a5   :  { %1565 = vrot.lane.b32.xlu1 %v2542_v8, %s2442_s14  ;;  %v134_v8 = vld [vmem:[%s2794_s3 + $0x18] sm:$0xff] }
 0x9ed   :  { %v1557_v28 = vpop.xlane.xlu0 %1556 }
 0x9ee   :  { %2408 = vrcp.f32 %v1557_v28 }
 0x9fb   :  { %v2409_v36 = vpop.eup %2408 }
 0x9fc   :  { %v1563_v39 = vmul.f32 %v2409_v36, %v2407_v21  ;;  %v2153_v36 = vld [vmem:[%s2798_s5] ss:$0 sm:$0xff] }
 0xa1d   :  { %v1548_v35 = vpop.xlane.xlu1 %1547 }
 0xa1e   :  { %v1550_v30 = vsub.f32 %v1542_v33, %v1548_v35  ;;  %v2152_v33 = vld [vmem:[%s2797_s4] ss:$0 sm:$0xff] }
 0xa20   :  { %v1553_v37 = vmul.f32 1.442695, %v1550_v30 }
 0xa21   :  { %v1566_v38 = vpop.permute.xlu1 %1565 }
 0xa22   :  { %2410 = vpow2.f32 %v1553_v37  ;;  %2325 = vmatpush3.msra.mxu1 %v1566_v38 }
 0xa23   :  { %2327 = vmatmul.mubr.msk.f32.vlgmr.msra.gmra.mxu1 %vm138_vm2, %v1563_v39  ;;  %2334 = vmatprep.subr.mxu1 %v134_v8  ;;  %v1958_v39 = vld [vmem:[%s2796_s8 + $0x18] sm:$0xff] }
 0xa24   :  { %2335 = vmatpush3.msra.mxu1 %v134_v8  ;;  %v1955_v8 = vld [vmem:[%s2796_s8] sm:$0xff] }
 0xa25   :  { %2350 = vmatprep.subr.mxu1 %v1962_v9 }
 0xa2f   :  { %v2411_v14 = vpop.eup %2410 }
 0xa30   :  { %v1558_v40 = vsel %vm138_vm2, %v2411_v14, 0.0 }
 0xa31   :  { %1559 = vadd.xlane.f32.xlu0 %v1558_v40  ;;  %v1956_v40 = vld [vmem:[%s2796_s8 + $0x8] sm:$0xff] }
 0xa47   :  { %1641 = vrot.lane.b32.xlu0 %v2540_v7, %s2442_s14 }
 0xaba   :  { %v1560_v41 = vpop.xlane.xlu0 %1559 }
 0xabb   :  { %2412 = vrcp.f32 %v1560_v41  ;;  %v2154_v41 = vld [vmem:[%s2799_s7] ss:$0 sm:$0xff] }
 0xabe   :  { %v1642_v42 = vpop.permute.xlu0 %1641 }
 0xabf   :  { %2330 = vmatpush3.msra.mxu0 %v1642_v42 }
 0xac0   :  { %2339 = vmatprep.subr.mxu0 %v1864_v0 }
 0xac8   :  { %v2413_v43 = vpop.eup %2412 }
 0xac9   :  { %v1564_v44 = vmul.f32 %v2413_v43, %v2411_v14  ;;  %v1957_v14 = vld [vmem:[%s2796_s8 + $0x10] sm:$0xff] }
 0xacb   :  { %2332 = vmatmul.mubr.msk.f32.vlgmr.msra.gmra.mxu0 %vm138_vm2, %v1564_v44 }
 0xacc   :  { %2340 = vmatpush3.msra.mxu0 %v1864_v0 }
 0xacd   :  { %2341 = vmatprep.subr.mxu0 %v1863_v1 }
 0xace   :  { %2342 = vmatpush3.msra.mxu0 %v1863_v1 }
 0xacf   :  { %2343 = vmatprep.subr.mxu0 %v1862_v3 }
 0xad0   :  { %2344 = vmatpush3.msra.mxu0 %v1862_v3 }
 0xad1   :  { %2345 = vmatprep.subr.mxu0 %v1861_v4 }
 0xad2   :  { %2346 = vmatpush3.msra.mxu0 %v1861_v4 }
 0xae3   :  { %v1637_v45 = vpop.f32.mrf.mxu1 }
 0xae4   :  { %2336 = vmatprep.mubr.msk.f32.mxu1 %vm138_vm2, %v1637_v45 }
 0xae5   :  { %v2328_v46 = vpop.f32.mrf.mxu1 }
 0xb8b   :  { %v1713_v47 = vpop.f32.mrf.mxu0 }
 0xb8c   :  { %2337 = vmatmul.mubr.msk.f32.vlgmr.msra.gmra.mxu1 %vm138_vm2, %v1713_v47 }
 0xb8d   :  { %v2333_v7 = vpop.f32.mrf.mxu0  ;;  %2351 = vmatpush3.msra.mxu1 %v1962_v9 }
 0xb8e   :  { %2352 = vmatprep.subr.mxu1 %v1961_v10  ;;  %v2157_v7 = vld [vmem:[%s2800_s9] ss:$0 sm:$0xff] }
 0xb8f   :  { %2353 = vmatpush3.msra.mxu1 %v1961_v10 }
 0xb90   :  { %2354 = vmatprep.subr.mxu1 %v1960_v12 }
 0xb91   :  { %2355 = vmatpush3.msra.mxu1 %v1960_v12 }
 0xb92   :  { %2356 = vmatprep.subr.mxu1 %v1959_v13 }
 0xb93   :  { %2357 = vmatpush3.msra.mxu1 %v1959_v13 }
 0xb94   :  { %2358 = vmatprep.subr.mxu1 %v1958_v39 }
 0xb95   :  { %2359 = vmatpush3.msra.mxu1 %v1958_v39 }
 0xb96   :  { %2360 = vmatprep.subr.mxu1 %v1957_v14 }
 0xb97   :  { %2361 = vmatpush3.msra.mxu1 %v1957_v14 }
 0xb98   :  { %2362 = vmatprep.subr.mxu1 %v1956_v40 }
 0xb99   :  { %2363 = vmatpush3.msra.mxu1 %v1956_v40 }
 0xb9a   :  { %2364 = vmatprep.subr.mxu1 %v1955_v8 }
 0xb9b   :  { %2365 = vmatpush3.msra.mxu1 %v1955_v8 }
 0xc4c   :  { %v2338_v48 = vpop.f32.mrf.mxu1 }
 0xc4d   :  { %v1799_v49 = vadd.f32 %v2338_v48, %v1382_v26 }
 0xc4e   :  { %v1789_v50 = vpop.f32.mrf.mxu1 }
 0xc4f   :  { %v1798_v51 = vadd.f32 %v1789_v50, %v1381_v29  ;;  %v1801_v52 = vadd.f32 %v1799_v49, %v2530_v5 }
 0xc51   :  { %v1807_v53 = vsel %vm49_vm0, %v1801_v52, 0.0  ;;  %v1800_v54 = vadd.f32 %v1798_v51, %v2517_v2 }
 0xc52   :  { %1808 = vadd.xlane.f32.xlu0 %v1807_v53 }
 0xc53   :  { %v1804_v55 = vsel %vm49_vm0, %v1800_v54, 0.0 }
 0xc54   :  { %1805 = vadd.xlane.f32.xlu1 %v1804_v55 }
 0xcdb   :  { %v1809_v56 = vpop.xlane.xlu0 %1808 }
 0xcdc   :  { %v1812_v57 = vmul.f32 0.03125, %v1809_v56 }
 0xcdd   :  { %v1806_v58 = vpop.xlane.xlu1 %1805 }
 0xcde   :  { %v1814_v59 = vsub.f32 %v1801_v52, %v1812_v57  ;;  %v1811_v60 = vmul.f32 0.03125, %v1806_v58 }
 0xce0   :  { %v2716_v61 = vsub.f32 %v1800_v54, %v1811_v60  ;;  %v1816_v62 = vmul.f32 %v1814_v59, %v1814_v59 }
 0xce2   :  { %v1820_v63 = vsel %vm49_vm0, %v1816_v62, 0.0  ;;  %v1815_v5 = vmul.f32 %v2716_v61, %v2716_v61 }
 0xce3   :  { %1821 = vadd.xlane.f32.xlu0 %v1820_v63 }
 0xce4   :  { %v1817_v2 = vsel %vm49_vm0, %v1815_v5, 0.0 }
 0xce5   :  { %1818 = vadd.xlane.f32.xlu1 %v1817_v2 }
 0xd6c   :  { %v1822_v15 = vpop.xlane.xlu0 %1821 }
 0xd6d   :  { %v1824_v16 = vmul.f32 0.032258064, %v1822_v15 }
 0xd6e   :  { %v1819_v17 = vpop.xlane.xlu1 %1818 }
 0xd6f   :  { %2414 = vrsqrt.f32 %v1824_v16  ;;  %v1823_v18 = vmul.f32 0.032258064, %v1819_v17  ;;  %vm1834_vm5 = vcmp.eq.f32.partialorder %v1824_v16, inf  ;;  %v1837_v20 = vand.u32 2147483648, %v1824_v16 }
 0xd70   :  { %vm1836_vm6 = vcmp.eq.f32.partialorder %v1824_v16, 0.0 }
 0xd71   :  { %2416 = vrsqrt.f32 %v1823_v18  ;;  %vm1827_vm7 = vcmp.eq.f32.partialorder %v1823_v18, inf  ;;  %v1830_v26 = vand.u32 2147483648, %v1823_v18  ;;  %vm1829_vm8 = vcmp.eq.f32.partialorder %v1823_v18, 0.0 }
 0xd7c   :  { %v2415_v11 = vpop.eup %2414 }
 0xd7d   :  { %v1833_v19 = vmul.f32 %v2415_v11, %v1824_v16 }
 0xd7e   :  { %v2417_v21 = vpop.eup %2416 }
 0xd7f   :  { %v1835_v22 = vsel %vm1834_vm5, %v1824_v16, %v1833_v19  ;;  %v1826_v24 = vmul.f32 %v2417_v21, %v1823_v18 }
 0xd80   :  { %v1838_v23 = vsel %vm1836_vm6, %v1837_v20, %v1835_v22 }
 0xd81   :  { %v1840_v25 = vadd.f32 1e-06, %v1838_v23  ;;  %v1828_v27 = vsel %vm1827_vm7, %v1823_v18, %v1826_v24  ;;  %v2160_v23 = vld [vmem:[%s2801_s10] ss:$0 sm:$0xff] }
 0xd82   :  { %v1831_v29 = vsel %vm1829_vm8, %v1830_v26, %v1828_v27 }
 0xd83   :  { %2418 = vrcp.f32 %v1840_v25  ;;  %v1839_v31 = vadd.f32 1e-06, %v1831_v29  ;;  %v2161_v25 = vld [vmem:[%s2802_s11] ss:$0 sm:$0xff] }
 0xd85   :  { %2420 = vrcp.f32 %v1839_v31 }
 0xd90   :  { %v2419_v6 = vpop.eup %2418 }
 0xd91   :  { %v1844_v32 = vmul.f32 %v2419_v6, %v1814_v59 }
 0xd92   :  { %v2421_v34 = vpop.eup %2420 }
 0xd93   :  { %v1843_v28 = vmul.f32 %v2421_v34, %v2716_v61  ;;  %v1852_v35 = vmul.f32 %v2152_v33, %v1844_v32 }
 0xd95   :  { %v1851_v30 = vmul.f32 %v2152_v33, %v1843_v28  ;;  %v1860_v38 = vadd.f32 %v2153_v36, %v1852_v35 }
 0xd97   :  { %v1859_v37 = vadd.f32 %v2153_v36, %v1851_v30 }
 0xd99   :  { %2347 = vmatprep.mubr.msk.f32.mxu0 %vm49_vm0, %v1859_v37 }
 0xd9a   :  { %2348 = vmatmul.mubr.msk.f32.vlgmr.msra.gmra.mxu0 %vm49_vm0, %v1860_v38 }
 0xe5a   :  { %v2349_v42 = vpop.f32.mrf.mxu0 }
 0xe5b   :  { %v1950_v43 = vadd.f32 %v2349_v42, %v2154_v41 }
 0xe5c   :  { %v1944_v44 = vpop.f32.mrf.mxu0 }
 0xe5d   :  { %v1945_v45 = vadd.f32 %v2154_v41, %v1944_v44  ;;  %v1954_v47 = vmax.f32 %v1950_v43, 0.0 }
 0xe5f   :  { %v1953_v46 = vmax.f32 %v1945_v45, 0.0 }
 0xe61   :  { %2366 = vmatprep.mubr.msk.f32.mxu1 %vm1970_vm9, %v1953_v46 }
 0xe62   :  { %2367 = vmatmul.mubr.msk.f32.vlgmr.msra.gmra.mxu1 %vm1970_vm9, %v1954_v47 }
 0xf22   :  { %v2368_v48 = vpop.f32.mrf.mxu1 }
 0xf23   :  { %v2049_v49 = vadd.f32 %v2368_v48, %v2157_v7 }
 0xf24   :  { %v2043_v50 = vpop.f32.mrf.mxu1 }
 0xf25   :  { %v2044_v51 = vadd.f32 %v2157_v7, %v2043_v50  ;;  %v2053_v52 = vadd.f32 %v2049_v49, %v1860_v38 }
 0xf27   :  { %v2059_v53 = vsel %vm49_vm0, %v2053_v52, 0.0  ;;  %v2052_v54 = vadd.f32 %v2044_v51, %v1859_v37 }
 0xf28   :  { %2060 = vadd.xlane.f32.xlu0 %v2059_v53 }
 0xf29   :  { %v2056_v55 = vsel %vm49_vm0, %v2052_v54, 0.0 }
 0xf2a   :  { %2057 = vadd.xlane.f32.xlu1 %v2056_v55 }
 0xfb1   :  { %v2061_v56 = vpop.xlane.xlu0 %2060 }
 0xfb2   :  { %v2063_v57 = vmul.f32 0.03125, %v2061_v56 }
 0xfb3   :  { %v2058_v58 = vpop.xlane.xlu1 %2057 }
 0xfb4   :  { %v2065_v59 = vsub.f32 %v2053_v52, %v2063_v57  ;;  %v2062_v60 = vmul.f32 0.03125, %v2058_v58 }
 0xfb6   :  { %v2064_v61 = vsub.f32 %v2052_v54, %v2062_v60  ;;  %v2067_v62 = vmul.f32 %v2065_v59, %v2065_v59 }
 0xfb8   :  { %v2071_v63 = vsel %vm49_vm0, %v2067_v62, 0.0  ;;  %v2066_v5 = vmul.f32 %v2064_v61, %v2064_v61 }
 0xfb9   :  { %2072 = vadd.xlane.f32.xlu0 %v2071_v63 }
 0xfba   :  { %v2068_v2 = vsel %vm49_vm0, %v2066_v5, 0.0 }
 0xfbb   :  { %2069 = vadd.xlane.f32.xlu1 %v2068_v2 }
0x1042   :  { %v2073_v0 = vpop.xlane.xlu0 %2072 }
0x1043   :  { %v2075_v1 = vmul.f32 0.032258064, %v2073_v0 }
0x1044   :  { %v2070_v3 = vpop.xlane.xlu1 %2069 }
0x1045   :  { %2422 = vrsqrt.f32 %v2075_v1  ;;  %v2074_v4 = vmul.f32 0.032258064, %v2070_v3  ;;  %vm2085_vm10 = vcmp.eq.f32.partialorder %v2075_v1, inf  ;;  %v2088_v12 = vand.u32 2147483648, %v2075_v1 }
0x1046   :  { %vm2087_vm11 = vcmp.eq.f32.partialorder %v2075_v1, 0.0 }
0x1047   :  { %2424 = vrsqrt.f32 %v2074_v4  ;;  %vm2078_vm12 = vcmp.eq.f32.partialorder %v2074_v4, inf  ;;  %v2081_v11 = vand.u32 2147483648, %v2074_v4  ;;  %vm2080_vm13 = vcmp.eq.f32.partialorder %v2074_v4, 0.0 }
0x1052   :  { %v2423_v9 = vpop.eup %2422 }
0x1053   :  { %v2084_v10 = vmul.f32 %v2423_v9, %v2075_v1 }
0x1054   :  { %v2425_v13 = vpop.eup %2424 }
0x1055   :  { %v2086_v15 = vsel %vm2085_vm10, %v2075_v1, %v2084_v10  ;;  %v2077_v17 = vmul.f32 %v2425_v13, %v2074_v4 }
0x1056   :  { %v2089_v16 = vsel %vm2087_vm11, %v2088_v12, %v2086_v15 }
0x1057   :  { %v2091_v18 = vadd.f32 1e-06, %v2089_v16  ;;  %v2079_v19 = vsel %vm2078_vm12, %v2074_v4, %v2077_v17 }
0x1058   :  { %v2082_v20 = vsel %vm2080_vm13, %v2081_v11, %v2079_v19 }
0x1059   :  { %2426 = vrcp.f32 %v2091_v18  ;;  %v2090_v21 = vadd.f32 1e-06, %v2082_v20 }
0x105b   :  { %2428 = vrcp.f32 %v2090_v21 }
0x1066   :  { %v2427_v22 = vpop.eup %2426 }
0x1067   :  { %v2095_v24 = vmul.f32 %v2427_v22, %v2065_v59 }
0x1068   :  { %v2429_v26 = vpop.eup %2428 }
0x1069   :  { %v2103_v27 = vmul.f32 %v2160_v23, %v2095_v24  ;;  %v2094_v29 = vmul.f32 %v2429_v26, %v2064_v61 }
0x106b   :  { %v2111_v31 = vadd.f32 %v2161_v25, %v2103_v27  ;;  %v2102_v6 = vmul.f32 %v2160_v23, %v2094_v29 }
0x106d   :  { %2113 = vst.msk [vmem:[%s2803_s12 + $0x8] sm:$0xff] %vm49_vm0, %v2111_v31  ;;  %v2110_v32 = vadd.f32 %v2161_v25, %v2102_v6 }
0x106f   :  { %2112 = vst.msk [vmem:[%s2803_s12] sm:$0xff] %vm49_vm0, %v2110_v32 }

// kernel: transformer_apply.11
= control target key start
LH: loop header
LB: loop body
LE: loop exit
PB: predicated region body
PF: predicated region fallthrough
CT: control target
= control target key end

     0   :  { %vm70_vm0 = vcmask 261120   ;;  %v4607_v6 = vmov 0.0   ;;  %vm4608_vm1 = vmmov 0   ;;  %s4609_s29 = smov 96   ;;  %vm161_vm2 = vcmask 64512   ;;  %s4610_s22 = smov 64   ;;  %s5279_s4 = inlined_call_operand.vmem [shape: f32[32,96], index: 4, kind: input, shape index: {}]   ;;  %s5280_s0 = inlined_call_operand.vmem [shape: f32[16,32], index: 0, kind: input, shape index: {}]   ;;  %s5281_s2 = inlined_call_operand.vmem [shape: f32[2,8,8], index: 2, kind: input, shape index: {}]   ;;  %s5282_s5 = inlined_call_operand.vmem [shape: f32[32,32], index: 5, kind: input, shape index: {}]   ;;  %s5283_s9 = inlined_call_operand.vmem [shape: f32[32,64], index: 9, kind: input, shape index: {}]   ;;  %s5284_s8 = inlined_call_operand.vmem [shape: f32[32,32], index: 8, kind: input, shape index: {}]   ;;  %s5285_s1 = inlined_call_operand.vmem [shape: f32[16,32], index: 1, kind: input, shape index: {}]   ;;  %s5286_s6 = inlined_call_operand.vmem [shape: f32[1,32], index: 6, kind: input, shape index: {}]   ;;  %s5287_s7 = inlined_call_operand.vmem [shape: f32[1,32], index: 7, kind: input, shape index: {}]   ;;  %s5288_s3 = inlined_call_operand.vmem [shape: f32[2,8,8], index: 3, kind: input, shape index: {}]   ;;  %s5289_s10 = inlined_call_operand.vmem [shape: f32[32,32], index: 10, kind: input, shape index: {}]   ;;  %s5290_s13 = inlined_call_operand.vmem [shape: f32[32,64], index: 13, kind: input, shape index: {}]   ;;  %s5291_s15 = inlined_call_operand.vmem [shape: f32[64,32], index: 15, kind: input, shape index: {}]   ;;  %s5292_s11 = inlined_call_operand.vmem [shape: f32[1,32], index: 11, kind: input, shape index: {}]   ;;  %s5293_s12 = inlined_call_operand.vmem [shape: f32[1,32], index: 12, kind: input, shape index: {}]   ;;  %s5294_s14 = inlined_call_operand.vmem [shape: f32[1,64], index: 14, kind: input, shape index: {}]   ;;  %s5295_s16 = inlined_call_operand.vmem [shape: f32[1,32], index: 16, kind: input, shape index: {}]   ;;  %s5296_s17 = inlined_call_operand.vmem [shape: f32[1,32], index: 17, kind: input, shape index: {}]   ;;  %s5297_s18 = inlined_call_operand.vmem [shape: f32[1,32], index: 18, kind: input, shape index: {}]   ;;  %s5298_s19 = inlined_call_operand.vmem [shape: f32[16,32], index: 19, kind: output, shape index: {}]  }
   0x1   :  { %5307 = sst [smem:[#allocation2_spill]] %s5279_s4  ;;  %4259 = vmatprep.subr.mxu1 %v4607_v6  ;;  %4261 = vmatprep.mubr.msk.f32.mxu1 %vm4608_vm1, %v4607_v6  ;;  %s4613_s24 = smov 56   ;;  %vm3891_vm15 = vcmask 523264  }
   0x2   :  { %5308 = sst [smem:[#allocation3_spill]] %s5280_s0  ;;  %s4614_s25 = smov 112  }
   0x3   :  { %5309 = sst [smem:[#allocation4_spill]] %s5281_s2  ;;  %s4611_s2 = smov 120  }
   0x4   :  { %5310 = sst [smem:[#allocation5_spill]] %s5282_s5  ;;  %s4615_s5 = smov 80  }
   0x5   :  { %s5311_s20 = sld [smem:[#allocation2_spill]]  ;;  %s5303_s21 = smov 72  }
   0x6   :  { %s5312_s23 = sld [smem:[#allocation3_spill]]  ;;  %s5305_s0 = smov 104  }
   0x7   :  { %s5314_s28 = sld [smem:[#allocation5_spill]]  ;;  %s4619_s26 = smov 40  }
   0xb   :  { %v69_v0 = vld [vmem:[%s5311_s20 + $0x18] sm:$0xff]  ;;  %v68_v1 = vld [vmem:[%s5311_s20 + $0x10] sm:$0xff]  ;;  %v67_v3 = vld [vmem:[%s5311_s20 + $0x8] sm:$0xff] }
   0xc   :  { %4243 = vmatprep.subr.mxu0 %v69_v0  ;;  %v4729_v2 = vld [vmem:[%s5312_s23] sm:$0xff]  ;;  %v4742_v5 = vld [vmem:[%s5312_s23 + $0x8] sm:$0xff]  ;;  %s4612_s23 = smov 88  }
   0xd   :  { %4244 = vmatpush3.msra.mxu0 %v69_v0  ;;  %4251 = vmatprep.mubr.msk.f32.mxu0 %vm70_vm0, %v4729_v2  ;;  %v66_v4 = vld [vmem:[%s5311_s20] sm:$0xff]  ;;  %s5313_s20 = sld [smem:[#allocation4_spill]] }
   0xe   :  { %4245 = vmatprep.subr.mxu0 %v68_v1 }
   0xf   :  { %4246 = vmatpush3.msra.mxu0 %v68_v1 }
  0x10   :  { %4247 = vmatprep.subr.mxu0 %v67_v3 }
  0x11   :  { %4248 = vmatpush3.msra.mxu0 %v67_v3 }
  0x12   :  { %4249 = vmatprep.subr.mxu0 %v66_v4 }
  0x13   :  { %4250 = vmatpush3.msra.mxu0 %v66_v4  ;;  %v4775_v11 = vld [vmem:[%s5313_s20] sm:$0xff]  ;;  %v4781_v14 = vld [vmem:[%s5313_s20 + $0x8] sm:$0xff]  ;;  %s4616_s20 = smov 48  }
  0x14   :  { %4252 = vmatmul.mubr.msk.f32.vlgmr.msra.gmra.mxu0 %vm70_vm0, %v4742_v5  ;;  %4254 = vmatprep.subr.mxu0 %v4607_v6  ;;  %vm315_vm3 = vcmp.eq.f32.partialorder %v4775_v11, 0.0  ;;  %vm316_vm4 = vcmp.eq.f32.partialorder %v4781_v14, 0.0 }
  0x15   :  { %4256 = vmatprep.mubr.msk.f32.mxu0 %vm4608_vm1, %v4607_v6 }
  0xd4   :  { %v4752_v7 = vpop.f32.mrf.mxu0 }
  0xd6   :  { %v4754_v8 = vpop.f32.mrf.mxu0 }
  0xd7   :  { %159 = vrot.lane.b32.xlu0 %v4754_v8, %s4609_s29 }
  0xdb   :  { %237 = vrot.lane.b32.xlu0 %v4752_v7, %s4609_s29 }
 0x149   :  { %v160_v9 = vpop.permute.xlu0 %159 }
 0x14a   :  { %4255 = vmatpush3.xpose.msk.msra.mxu0 %vm161_vm2, %v160_v9 }
 0x14b   :  { %4264 = vmatprep.subr.mxu0 %v4607_v6 }
 0x14d   :  { %4257 = vmatmul.mubr.msk.f32.vlgmr.msra.gmra.mxu0 %vm161_vm2, %v4754_v8  ;;  %v238_v10 = vpop.permute.xlu0 %237 }
 0x14e   :  { %4260 = vmatpush3.xpose.msk.msra.mxu1 %vm161_vm2, %v238_v10  ;;  %4266 = vmatprep.mubr.msk.f32.mxu0 %vm4608_vm1, %v4607_v6 }
 0x14f   :  { %4269 = vmatprep.subr.mxu1 %v4607_v6 }
 0x151   :  { %4262 = vmatmul.mubr.msk.f32.vlgmr.msra.gmra.mxu1 %vm161_vm2, %v4752_v7 }
 0x152   :  { %4271 = vmatprep.mubr.msk.f32.mxu1 %vm4608_vm1, %v4607_v6 }
 0x20d   :  { %v232_v12 = vpop.f32.mrf.mxu0 }
 0x20e   :  { %v313_v13 = vmul.f32 0.125, %v232_v12  ;;  %v152_v12 = vld [vmem:[%s5314_s28] sm:$0xff] }
 0x20f   :  { %v4258_v15 = vpop.f32.mrf.mxu0 }
 0x210   :  { %v317_v16 = vsel %vm315_vm3, -1e+09, %v313_v13 }
 0x211   :  { %v309_v17 = vpop.f32.mrf.mxu1  ;;  %v319_v18 = vsel %vm161_vm2, %v317_v16, -inf }
 0x212   :  { %v314_v19 = vmul.f32 0.125, %v309_v17  ;;  %320 = vmax.xlane.f32.xlu1 %v319_v18 }
 0x213   :  { %v4263_v20 = vpop.f32.mrf.mxu1 }
 0x214   :  { %v318_v21 = vsel %vm316_vm4, -1e+09, %v314_v19 }
 0x215   :  { %v322_v22 = vsel %vm161_vm2, %v318_v21, -inf }
 0x216   :  { %323 = vmax.xlane.f32.xlu1 %v322_v22 }
 0x29b   :  { %v321_v23 = vpop.xlane.xlu1 %320 }
 0x29c   :  { %v325_v24 = vsub.f32 %v317_v16, %v321_v23 }
 0x29e   :  { %v327_v25 = vmul.f32 1.442695, %v325_v24  ;;  %v153_v24 = vld [vmem:[%s5314_s28 + $0x8] sm:$0xff] }
 0x29f   :  { %v324_v26 = vpop.xlane.xlu1 %323 }
 0x2a0   :  { %4519 = vpow2.f32 %v327_v25  ;;  %v326_v27 = vsub.f32 %v318_v21, %v324_v26 }
 0x2a2   :  { %v329_v28 = vmul.f32 1.442695, %v326_v27 }
 0x2a4   :  { %4521 = vpow2.f32 %v329_v28 }
 0x2ad   :  { %v4520_v29 = vpop.eup %4519 }
 0x2ae   :  { %v331_v30 = vsel %vm161_vm2, %v4520_v29, 0.0 }
 0x2af   :  { %332 = vadd.xlane.f32.xlu0 %v331_v30 }
 0x2b1   :  { %v4522_v31 = vpop.eup %4521 }
 0x2b2   :  { %v334_v32 = vsel %vm161_vm2, %v4522_v31, 0.0 }
 0x2b3   :  { %335 = vadd.xlane.f32.xlu1 %v334_v32 }
 0x2c4   :  { %341 = vrot.lane.b32.xlu1 %v4754_v8, %s4610_s22 }
 0x2c5   :  { %493 = vrot.lane.b32.xlu0 %v4754_v8, %s4611_s2 }
 0x2c8   :  { %417 = vrot.lane.b32.xlu1 %v4752_v7, %s4610_s22 }
 0x2cc   :  { %495 = vrot.lane.b32.xlu1 %v4754_v8, %s4612_s23 }
 0x2d0   :  { %573 = vrot.lane.b32.xlu1 %v4752_v7, %s4612_s23 }
 0x2d4   :  { %571 = vrot.lane.b32.xlu1 %v4752_v7, %s4611_s2 }
 0x338   :  { %v333_v33 = vpop.xlane.xlu0 %332 }
 0x339   :  { %4523 = vrcp.f32 %v333_v33 }
 0x33c   :  { %v336_v34 = vpop.xlane.xlu1 %335  ;;  %v494_v42 = vpop.permute.xlu0 %493 }
 0x33d   :  { %4525 = vrcp.f32 %v336_v34 }
 0x340   :  { %v342_v35 = vpop.permute.xlu1 %341 }
 0x341   :  { %4265 = vmatpush3.msra.mxu0 %v342_v35 }
 0x342   :  { %4274 = vmatprep.subr.mxu0 %v4607_v6 }
 0x344   :  { %v418_v36 = vpop.permute.xlu1 %417 }
 0x345   :  { %4270 = vmatpush3.msra.mxu1 %v418_v36 }
 0x346   :  { %v4524_v37 = vpop.eup %4523  ;;  %4279 = vmatprep.subr.mxu1 %v4607_v6 }
 0x347   :  { %v339_v38 = vmul.f32 %v4524_v37, %v4520_v29 }
 0x348   :  { %v496_v39 = vpop.permute.xlu1 %495 }
 0x349   :  { %4267 = vmatmul.mubr.msk.f32.vlgmr.msra.gmra.mxu0 %vm161_vm2, %v339_v38 }
 0x34a   :  { %v4526_v40 = vpop.eup %4525  ;;  %4275 = vmatpush3.xpose.msk.msra.mxu0 %vm161_vm2, %v496_v39  ;;  %4276 = vmatprep.mubr.msk.f32.mxu0 %vm4608_vm1, %v4607_v6 }
 0x34b   :  { %v340_v41 = vmul.f32 %v4526_v40, %v4522_v31  ;;  %4284 = vmatprep.subr.mxu0 %v4607_v6 }
 0x34c   :  { %v574_v43 = vpop.permute.xlu1 %573 }
 0x34d   :  { %4272 = vmatmul.mubr.msk.f32.vlgmr.msra.gmra.mxu1 %vm161_vm2, %v340_v41  ;;  %4277 = vmatmul.mubr.msk.f32.vlgmr.msra.gmra.mxu0 %vm161_vm2, %v494_v42 }
 0x34e   :  { %4280 = vmatpush3.xpose.msk.msra.mxu1 %vm161_vm2, %v574_v43  ;;  %4281 = vmatprep.mubr.msk.f32.mxu1 %vm4608_vm1, %v4607_v6 }
 0x34f   :  { %4289 = vmatprep.subr.mxu1 %v4607_v6  ;;  %4286 = vmatprep.mubr.msk.f32.mxu0 %vm4608_vm1, %v4607_v6 }
 0x350   :  { %v572_v44 = vpop.permute.xlu1 %571 }
 0x351   :  { %4282 = vmatmul.mubr.msk.f32.vlgmr.msra.gmra.mxu1 %vm161_vm2, %v572_v44 }
 0x352   :  { %4291 = vmatprep.mubr.msk.f32.mxu1 %vm4608_vm1, %v4607_v6 }
 0x409   :  { %v413_v45 = vpop.f32.mrf.mxu0 }
 0x40b   :  { %v4268_v46 = vpop.f32.mrf.mxu0 }
 0x40d   :  { %v489_v47 = vpop.f32.mrf.mxu1  ;;  %v567_v48 = vpop.f32.mrf.mxu0 }
 0x40e   :  { %v649_v49 = vmul.f32 0.125, %v567_v48 }
 0x40f   :  { %v4273_v50 = vpop.f32.mrf.mxu1  ;;  %v4278_v51 = vpop.f32.mrf.mxu0 }
 0x410   :  { %v651_v52 = vsel %vm315_vm3, -1e+09, %v649_v49 }
 0x411   :  { %v645_v53 = vpop.f32.mrf.mxu1  ;;  %v653_v54 = vsel %vm161_vm2, %v651_v52, -inf }
 0x412   :  { %v650_v55 = vmul.f32 0.125, %v645_v53  ;;  %654 = vmax.xlane.f32.xlu1 %v653_v54 }
 0x413   :  { %v4283_v56 = vpop.f32.mrf.mxu1 }
 0x414   :  { %v652_v57 = vsel %vm316_vm4, -1e+09, %v650_v55 }
 0x415   :  { %v656_v58 = vsel %vm161_vm2, %v652_v57, -inf }
 0x416   :  { %657 = vmax.xlane.f32.xlu0 %v656_v58 }
 0x42c   :  { %751 = vrot.lane.b32.xlu0 %v4752_v7, %s4613_s24 }
 0x430   :  { %989 = vrot.lane.b32.xlu0 %v4754_v8, %s4614_s25 }
 0x49b   :  { %v655_v59 = vpop.xlane.xlu1 %654 }
 0x49c   :  { %v659_v60 = vsub.f32 %v651_v52, %v655_v59 }
 0x49e   :  { %v661_v63 = vmul.f32 1.442695, %v659_v60 }
 0x49f   :  { %v658_v61 = vpop.xlane.xlu0 %657 }
 0x4a0   :  { %v660_v62 = vsub.f32 %v652_v57, %v658_v61 }
 0x4a2   :  { %v663_v0 = vmul.f32 1.442695, %v660_v62 }
 0x4a3   :  { %v752_v1 = vpop.permute.xlu0 %751 }
 0x4a4   :  { %4527 = vpow2.f32 %v663_v0  ;;  %4290 = vmatpush3.msra.mxu1 %v752_v1  ;;  %v154_v0 = vld [vmem:[%s5314_s28 + $0x10] sm:$0xff] }
 0x4a5   :  { %4529 = vpow2.f32 %v661_v63  ;;  %4299 = vmatprep.subr.mxu1 %v152_v12 }
 0x4a7   :  { %v990_v32 = vpop.permute.xlu0 %989 }
 0x4b1   :  { %v4528_v3 = vpop.eup %4527 }
 0x4b2   :  { %v668_v4 = vsel %vm161_vm2, %v4528_v3, 0.0  ;;  %v4530_v9 = vpop.eup %4529 }
 0x4b3   :  { %669 = vadd.xlane.f32.xlu1 %v668_v4  ;;  %v665_v10 = vsel %vm161_vm2, %v4530_v9, 0.0 }
 0x4b7   :  { %666 = vadd.xlane.f32.xlu1 %v665_v10 }
 0x4c8   :  { %675 = vrot.lane.b32.xlu1 %v4754_v8, %s4613_s24  ;;  %s5316_s24 = smov 72  }
 0x4cc   :  { %991 = vrot.lane.b32.xlu1 %v4754_v8, %s4615_s5 }
 0x4d0   :  { %1069 = vrot.lane.b32.xlu1 %v4752_v7, %s4615_s5 }
 0x4d4   :  { %1067 = vrot.lane.b32.xlu1 %v4752_v7, %s4614_s25 }
 0x53c   :  { %v670_v13 = vpop.xlane.xlu1 %669 }
 0x53d   :  { %4531 = vrcp.f32 %v670_v13 }
 0x540   :  { %v667_v15 = vpop.xlane.xlu1 %666 }
 0x541   :  { %4533 = vrcp.f32 %v667_v15 }
 0x544   :  { %v676_v16 = vpop.permute.xlu1 %675 }
 0x545   :  { %4285 = vmatpush3.msra.mxu0 %v676_v16 }
 0x546   :  { %4294 = vmatprep.subr.mxu0 %v153_v24 }
 0x548   :  { %v992_v17 = vpop.permute.xlu1 %991 }
 0x54a   :  { %v4532_v18 = vpop.eup %4531 }
 0x54b   :  { %v674_v19 = vmul.f32 %v4532_v18, %v4528_v3 }
 0x54c   :  { %v1070_v21 = vpop.permute.xlu1 %1069 }
 0x54d   :  { %4292 = vmatmul.mubr.msk.f32.vlgmr.msra.gmra.mxu1 %vm161_vm2, %v674_v19 }
 0x54e   :  { %v4534_v20 = vpop.eup %4533  ;;  %4301 = vmatprep.mubr.msk.f32.mxu1 %vm161_vm2, %v413_v45  ;;  %4300 = vmatpush3.msra.mxu1 %v152_v12 }
 0x54f   :  { %4309 = vmatprep.subr.mxu1 %v4607_v6  ;;  %v673_v22 = vmul.f32 %v4534_v20, %v4530_v9 }
 0x550   :  { %v1068_v23 = vpop.permute.xlu1 %1067 }
 0x551   :  { %4287 = vmatmul.mubr.msk.f32.vlgmr.msra.gmra.mxu0 %vm161_vm2, %v673_v22  ;;  %4302 = vmatmul.mubr.msk.f32.vlgmr.msra.gmra.mxu1 %vm161_vm2, %v489_v47 }
 0x552   :  { %4310 = vmatpush3.xpose.msk.msra.mxu1 %vm161_vm2, %v1070_v21  ;;  %4311 = vmatprep.mubr.msk.f32.mxu1 %vm4608_vm1, %v4607_v6 }
 0x553   :  { %4319 = vmatprep.subr.mxu1 %v4607_v6  ;;  %4295 = vmatpush3.msra.mxu0 %v153_v24 }
 0x554   :  { %4304 = vmatprep.subr.mxu0 %v4607_v6 }
 0x555   :  { %4312 = vmatmul.mubr.msk.f32.vlgmr.msra.gmra.mxu1 %vm161_vm2, %v1068_v23 }
 0x556   :  { %4321 = vmatprep.mubr.msk.f32.mxu1 %vm4608_vm1, %v4607_v6 }
 0x60d   :  { %v823_v25 = vpop.f32.mrf.mxu1 }
 0x60f   :  { %v4293_v26 = vpop.f32.mrf.mxu1 }
 0x611   :  { %v747_v27 = vpop.f32.mrf.mxu0  ;;  %v4857_v28 = vpop.f32.mrf.mxu1 }
 0x612   :  { %4296 = vmatprep.mubr.msk.f32.mxu0 %vm161_vm2, %v747_v27 }
 0x613   :  { %v4288_v29 = vpop.f32.mrf.mxu0  ;;  %4297 = vmatmul.mubr.msk.f32.vlgmr.msra.gmra.mxu0 %vm161_vm2, %v823_v25  ;;  %v4861_v30 = vpop.f32.mrf.mxu1 }
 0x614   :  { %4305 = vmatpush3.xpose.msk.msra.mxu0 %vm161_vm2, %v992_v17  ;;  %4306 = vmatprep.mubr.msk.f32.mxu0 %vm4608_vm1, %v4607_v6 }
 0x615   :  { %v1141_v31 = vpop.f32.mrf.mxu1  ;;  %4314 = vmatprep.subr.mxu0 %v4607_v6 }
 0x616   :  { %v1146_v33 = vmul.f32 0.125, %v1141_v31 }
 0x617   :  { %4307 = vmatmul.mubr.msk.f32.vlgmr.msra.gmra.mxu0 %vm161_vm2, %v990_v32  ;;  %v4313_v34 = vpop.f32.mrf.mxu1 }
 0x618   :  { %v1148_v35 = vsel %vm316_vm4, -1e+09, %v1146_v33  ;;  %4316 = vmatprep.mubr.msk.f32.mxu0 %vm4608_vm1, %v4607_v6 }
 0x619   :  { %v1152_v36 = vsel %vm161_vm2, %v1148_v35, -inf }
 0x61a   :  { %1153 = vmax.xlane.f32.xlu1 %v1152_v36 }
 0x62b   :  { %1171 = vrot.lane.b32.xlu1 %v4754_v8, %s4616_s20 }
 0x62f   :  { %1408 = vrot.lane.b32.xlu1 %v4754_v8, %s5303_s21 }
 0x633   :  { %1486 = vrot.lane.b32.xlu1 %v4752_v7, %s5303_s21 }
 0x637   :  { %1484 = vrot.lane.b32.xlu1 %v4752_v7, %s5305_s0 }
 0x6a3   :  { %v1154_v37 = vpop.xlane.xlu1 %1153 }
 0x6a4   :  { %v1156_v39 = vsub.f32 %v1148_v35, %v1154_v37 }
 0x6a6   :  { %v1159_v40 = vmul.f32 1.442695, %v1156_v39 }
 0x6a7   :  { %v1172_v38 = vpop.permute.xlu1 %1171 }
 0x6a8   :  { %4315 = vmatpush3.msra.mxu0 %v1172_v38  ;;  %4535 = vpow2.f32 %v1159_v40 }
 0x6a9   :  { %4324 = vmatprep.subr.mxu0 %v154_v0 }
 0x6ab   :  { %v1409_v60 = vpop.permute.xlu1 %1408 }
 0x6af   :  { %v1487_v15 = vpop.permute.xlu1 %1486 }
 0x6b3   :  { %v1485_v18 = vpop.permute.xlu1 %1484 }
 0x6b5   :  { %v4536_v48 = vpop.eup %4535 }
 0x6b6   :  { %v1164_v49 = vsel %vm161_vm2, %v4536_v48, 0.0 }
 0x6d3   :  { %v4881_v41 = vpop.f32.mrf.mxu0 }
 0x6d4   :  { %v986_v23 = vadd.f32 %v4857_v28, %v4881_v41 }
 0x6d5   :  { %v4883_v42 = vpop.f32.mrf.mxu0 }
 0x6d6   :  { %v981_v25 = vadd.f32 %v4861_v30, %v4883_v42 }
 0x6d7   :  { %v1063_v43 = vpop.f32.mrf.mxu0 }
 0x6d8   :  { %v1145_v44 = vmul.f32 0.125, %v1063_v43 }
 0x6d9   :  { %v4308_v45 = vpop.f32.mrf.mxu0 }
 0x6da   :  { %v1147_v46 = vsel %vm315_vm3, -1e+09, %v1145_v44 }
 0x6db   :  { %v1149_v47 = vsel %vm161_vm2, %v1147_v46, -inf }
 0x6dc   :  { %1150 = vmax.xlane.f32.xlu0 %v1149_v47 }
 0x6e0   :  { %1165 = vadd.xlane.f32.xlu0 %v1164_v49 }
 0x765   :  { %v1151_v50 = vpop.xlane.xlu0 %1150 }
 0x766   :  { %v1155_v51 = vsub.f32 %v1147_v46, %v1151_v50 }
 0x768   :  { %v1157_v52 = vmul.f32 1.442695, %v1155_v51 }
 0x769   :  { %v1166_v55 = vpop.xlane.xlu0 %1165 }
 0x76a   :  { %4537 = vpow2.f32 %v1157_v52 }
 0x76b   :  { %4539 = vrcp.f32 %v1166_v55 }
 0x777   :  { %v4538_v53 = vpop.eup %4537 }
 0x778   :  { %v1161_v54 = vsel %vm161_vm2, %v4538_v53, 0.0  ;;  %v4540_v57 = vpop.eup %4539 }
 0x779   :  { %1162 = vadd.xlane.f32.xlu0 %v1161_v54  ;;  %v1170_v59 = vmul.f32 %v4540_v57, %v4536_v48 }
 0x78f   :  { %1247 = vrot.lane.b32.xlu0 %v4752_v7, %s4616_s20 }
 0x793   :  { %1406 = vrot.lane.b32.xlu0 %v4754_v8, %s5305_s0 }
 0x802   :  { %v1163_v56 = vpop.xlane.xlu0 %1162 }
 0x803   :  { %4541 = vrcp.f32 %v1163_v56 }
 0x806   :  { %v1248_v58 = vpop.permute.xlu0 %1247 }
 0x807   :  { %4320 = vmatpush3.msra.mxu1 %v1248_v58 }
 0x808   :  { %4322 = vmatmul.mubr.msk.f32.vlgmr.msra.gmra.mxu1 %vm161_vm2, %v1170_v59  ;;  %4329 = vmatprep.subr.mxu1 %v4607_v6 }
 0x809   :  { %4330 = vmatpush3.xpose.msk.msra.mxu1 %vm161_vm2, %v1409_v60  ;;  %4331 = vmatprep.mubr.msk.f32.mxu1 %vm4608_vm1, %v4607_v6 }
 0x80a   :  { %v1407_v61 = vpop.permute.xlu0 %1406  ;;  %4339 = vmatprep.subr.mxu1 %v4607_v6 }
 0x80c   :  { %4332 = vmatmul.mubr.msk.f32.vlgmr.msra.gmra.mxu1 %vm161_vm2, %v1407_v61 }
 0x80d   :  { %4341 = vmatprep.mubr.msk.f32.mxu1 %vm4608_vm1, %v4607_v6 }
 0x810   :  { %v4542_v62 = vpop.eup %4541 }
 0x811   :  { %v1169_v63 = vmul.f32 %v4542_v62, %v4538_v53 }
 0x813   :  { %4317 = vmatmul.mubr.msk.f32.vlgmr.msra.gmra.mxu0 %vm161_vm2, %v1169_v63 }
 0x814   :  { %4325 = vmatpush3.msra.mxu0 %v154_v0 }
 0x815   :  { %4334 = vmatprep.subr.mxu0 %v4607_v6 }
 0x8c8   :  { %v1319_v1 = vpop.f32.mrf.mxu1 }
 0x8ca   :  { %v4323_v3 = vpop.f32.mrf.mxu1 }
 0x8cb   :  { %v1971_v3 = vld [vmem:[%s5283_s9 + $0x10] sm:$0xff] }
 0x8cc   :  { %v1480_v4 = vpop.f32.mrf.mxu1 }
 0x8cd   :  { %v1562_v9 = vmul.f32 0.125, %v1480_v4  ;;  %v1887_v4 = vld [vmem:[%s5284_s8 + $0x18] sm:$0xff] }
 0x8ce   :  { %v4333_v10 = vpop.f32.mrf.mxu1 }
 0x8cf   :  { %v1564_v12 = vsel %vm315_vm3, -1e+09, %v1562_v9  ;;  %v1886_v9 = vld [vmem:[%s5284_s8 + $0x10] sm:$0xff]  ;;  %v1970_v10 = vld [vmem:[%s5283_s9 + $0x8] sm:$0xff] }
 0x8d0   :  { %v1566_v13 = vsel %vm161_vm2, %v1564_v12, -inf }
 0x8d1   :  { %1567 = vmax.xlane.f32.xlu0 %v1566_v13  ;;  %v1969_v13 = vld [vmem:[%s5283_s9] sm:$0xff] }
 0x8d3   :  { %v1243_v16 = vpop.f32.mrf.mxu0 }
 0x8d4   :  { %4326 = vmatprep.mubr.msk.f32.mxu0 %vm161_vm2, %v1243_v16  ;;  %v65_v16 = vld [vmem:[%s5285_s1 + $0x8] sm:$0xff] }
 0x8d5   :  { %v4318_v17 = vpop.f32.mrf.mxu0  ;;  %4327 = vmatmul.mubr.msk.f32.vlgmr.msra.gmra.mxu0 %vm161_vm2, %v1319_v1  ;;  %v1972_v1 = vld [vmem:[%s5283_s9 + $0x18] sm:$0xff] }
 0x8d6   :  { %4335 = vmatpush3.xpose.msk.msra.mxu0 %vm161_vm2, %v1487_v15  ;;  %4336 = vmatprep.mubr.msk.f32.mxu0 %vm4608_vm1, %v4607_v6  ;;  %v1885_v15 = vld [vmem:[%s5284_s8 + $0x8] sm:$0xff]  ;;  %v1884_v17 = vld [vmem:[%s5284_s8] sm:$0xff] }
 0x8d7   :  { %4344 = vmatprep.subr.mxu0 %v4607_v6 }
 0x8d9   :  { %4337 = vmatmul.mubr.msk.f32.vlgmr.msra.gmra.mxu0 %vm161_vm2, %v1485_v18 }
 0x8da   :  { %4346 = vmatprep.mubr.msk.f32.mxu0 %vm4608_vm1, %v4607_v6 }
 0x95a   :  { %v1568_v11 = vpop.xlane.xlu0 %1567 }
 0x95b   :  { %v1572_v19 = vsub.f32 %v1564_v12, %v1568_v11  ;;  %v64_v12 = vld [vmem:[%s5285_s1] sm:$0xff] }
 0x95d   :  { %v1574_v20 = vmul.f32 1.442695, %v1572_v19 }
 0x95f   :  { %4543 = vpow2.f32 %v1574_v20 }
 0x96c   :  { %v4544_v21 = vpop.eup %4543 }
 0x96d   :  { %v1578_v22 = vsel %vm161_vm2, %v4544_v21, 0.0 }
 0x96e   :  { %1579 = vadd.xlane.f32.xlu0 %v1578_v22 }
 0x995   :  { %v4328_v24 = vpop.f32.mrf.mxu0 }
 0x996   :  { %v1405_v26 = vadd.f32 %v4328_v24, %v986_v23 }
 0x997   :  { %v1395_v27 = vpop.f32.mrf.mxu0 }
 0x998   :  { %v1404_v29 = vadd.f32 %v1395_v27, %v981_v25 }
 0x999   :  { %v1558_v31 = vpop.f32.mrf.mxu0 }
 0x99a   :  { %v1563_v32 = vmul.f32 0.125, %v1558_v31 }
 0x99b   :  { %v4338_v33 = vpop.f32.mrf.mxu0 }
 0x99c   :  { %v1565_v34 = vsel %vm316_vm4, -1e+09, %v1563_v32 }
 0x99d   :  { %v1569_v35 = vsel %vm161_vm2, %v1565_v34, -inf }
 0x99e   :  { %1570 = vmax.xlane.f32.xlu1 %v1569_v35 }
 0x9af   :  { %1588 = vrot.lane.b32.xlu1 %v4754_v8, %s4619_s26  ;;  %v155_v8 = vld [vmem:[%s5314_s28 + $0x18] sm:$0xff] }
 0x9f7   :  { %v1580_v28 = vpop.xlane.xlu0 %1579 }
 0x9f8   :  { %4545 = vrcp.f32 %v1580_v28 }
 0xa05   :  { %v4546_v37 = vpop.eup %4545 }
 0xa06   :  { %v1586_v40 = vmul.f32 %v4546_v37, %v4544_v21 }
 0xa27   :  { %v1571_v36 = vpop.xlane.xlu1 %1570 }
 0xa28   :  { %v1573_v30 = vsub.f32 %v1565_v34, %v1571_v36  ;;  %v4073_v36 = vld [vmem:[%s5286_s6] ss:$0 sm:$0xff] }
 0xa2a   :  { %v1576_v38 = vmul.f32 1.442695, %v1573_v30 }
 0xa2b   :  { %v1589_v39 = vpop.permute.xlu1 %1588 }
 0xa2c   :  { %4547 = vpow2.f32 %v1576_v38  ;;  %4340 = vmatpush3.msra.mxu1 %v1589_v39  ;;  %v4074_v39 = vld [vmem:[%s5287_s7] ss:$0 sm:$0xff] }
 0xa2d   :  { %4342 = vmatmul.mubr.msk.f32.vlgmr.msra.gmra.mxu1 %vm161_vm2, %v1586_v40  ;;  %4349 = vmatprep.subr.mxu1 %v155_v8 }
 0xa2e   :  { %4350 = vmatpush3.msra.mxu1 %v155_v8 }
 0xa2f   :  { %4365 = vmatprep.subr.mxu1 %v1972_v1 }
 0xa39   :  { %v4548_v14 = vpop.eup %4547 }
 0xa3a   :  { %v1581_v41 = vsel %vm161_vm2, %v4548_v14, 0.0 }
 0xa3b   :  { %1582 = vadd.xlane.f32.xlu0 %v1581_v41 }
 0xa51   :  { %1664 = vrot.lane.b32.xlu0 %v4752_v7, %s4619_s26 }
 0xac4   :  { %v1583_v42 = vpop.xlane.xlu0 %1582 }
 0xac5   :  { %4549 = vrcp.f32 %v1583_v42 }
 0xac8   :  { %v1665_v43 = vpop.permute.xlu0 %1664 }
 0xac9   :  { %4345 = vmatpush3.msra.mxu0 %v1665_v43 }
 0xaca   :  { %4354 = vmatprep.subr.mxu0 %v1887_v4 }
 0xad2   :  { %v4550_v44 = vpop.eup %4549 }
 0xad3   :  { %v1587_v45 = vmul.f32 %v4550_v44, %v4548_v14 }
 0xad5   :  { %4347 = vmatmul.mubr.msk.f32.vlgmr.msra.gmra.mxu0 %vm161_vm2, %v1587_v45  ;;  %v5031_v45 = vld [vmem:[%s5288_s3 + $0x8] sm:$0xff] }
 0xad6   :  { %4355 = vmatpush3.msra.mxu0 %v1887_v4  ;;  %vm2215_vm9 = vcmp.eq.f32.partialorder %v5031_v45, 0.0 }
 0xad7   :  { %4356 = vmatprep.subr.mxu0 %v1886_v9 }
 0xad8   :  { %4357 = vmatpush3.msra.mxu0 %v1886_v9 }
 0xad9   :  { %4358 = vmatprep.subr.mxu0 %v1885_v15 }
 0xada   :  { %4359 = vmatpush3.msra.mxu0 %v1885_v15 }
 0xadb   :  { %4360 = vmatprep.subr.mxu0 %v1884_v17 }
 0xadc   :  { %4361 = vmatpush3.msra.mxu0 %v1884_v17 }
 0xadd   :  { %4376 = vmatprep.subr.mxu0 %v4607_v6 }
 0xaed   :  { %v1660_v46 = vpop.f32.mrf.mxu1 }
 0xaee   :  { %4351 = vmatprep.mubr.msk.f32.mxu1 %vm161_vm2, %v1660_v46  ;;  %v5036_v46 = vld [vmem:[%s5288_s3] sm:$0xff] }
 0xaef   :  { %v4343_v47 = vpop.f32.mrf.mxu1  ;;  %vm2214_vm10 = vcmp.eq.f32.partialorder %v5036_v46, 0.0 }
 0xb95   :  { %v1736_v48 = vpop.f32.mrf.mxu0 }
 0xb96   :  { %4352 = vmatmul.mubr.msk.f32.vlgmr.msra.gmra.mxu1 %vm161_vm2, %v1736_v48 }
 0xb97   :  { %v4348_v7 = vpop.f32.mrf.mxu0  ;;  %4366 = vmatpush3.msra.mxu1 %v1972_v1  ;;  %4373 = vmatprep.mubr.msk.f32.mxu1 %vm70_vm0, %v64_v12 }
 0xb98   :  { %4367 = vmatprep.subr.mxu1 %v1971_v3 }
 0xb99   :  { %4368 = vmatpush3.msra.mxu1 %v1971_v3 }
 0xb9a   :  { %4369 = vmatprep.subr.mxu1 %v1970_v10 }
 0xb9b   :  { %4370 = vmatpush3.msra.mxu1 %v1970_v10 }
 0xb9c   :  { %4371 = vmatprep.subr.mxu1 %v1969_v13 }
 0xb9d   :  { %4372 = vmatpush3.msra.mxu1 %v1969_v13 }
 0xb9e   :  { %4374 = vmatmul.mubr.msk.f32.vlgmr.msra.gmra.mxu1 %vm70_vm0, %v65_v16  ;;  %4381 = vmatprep.subr.mxu1 %v4607_v6 }
 0xb9f   :  { %4383 = vmatprep.mubr.msk.f32.mxu1 %vm4608_vm1, %v4607_v6 }
 0xc56   :  { %v4353_v49 = vpop.f32.mrf.mxu1 }
 0xc57   :  { %v1822_v50 = vadd.f32 %v4353_v49, %v1405_v26 }
 0xc58   :  { %v1812_v51 = vpop.f32.mrf.mxu1 }
 0xc59   :  { %v1821_v52 = vadd.f32 %v1812_v51, %v1404_v29  ;;  %v1824_v53 = vadd.f32 %v1822_v50, %v4742_v5 }
 0xc5b   :  { %v1830_v54 = vsel %vm70_vm0, %v1824_v53, 0.0  ;;  %v1823_v55 = vadd.f32 %v1821_v52, %v4729_v2 }
 0xc5c   :  { %1831 = vadd.xlane.f32.xlu0 %v1830_v54 }
 0xc5d   :  { %v1827_v56 = vsel %vm70_vm0, %v1823_v55, 0.0 }
 0xc5e   :  { %1828 = vadd.xlane.f32.xlu1 %v1827_v56  ;;  %v5006_v8 = vpop.f32.mrf.mxu1 }
 0xc5f   :  { %4382 = vmatpush3.xpose.msk.msra.mxu1 %vm161_vm2, %v5006_v8 }
 0xc60   :  { %v5010_v42 = vpop.f32.mrf.mxu1  ;;  %4391 = vmatprep.subr.mxu1 %v4607_v6 }
 0xce5   :  { %v1832_v57 = vpop.xlane.xlu0 %1831 }
 0xce6   :  { %v1835_v58 = vmul.f32 0.03125, %v1832_v57 }
 0xce7   :  { %v1829_v59 = vpop.xlane.xlu1 %1828 }
 0xce8   :  { %v4942_v60 = vsub.f32 %v1824_v53, %v1835_v58  ;;  %v1834_v61 = vmul.f32 0.03125, %v1829_v59 }
 0xcea   :  { %v4944_v62 = vsub.f32 %v1823_v55, %v1834_v61  ;;  %v1839_v63 = vmul.f32 %v4942_v60, %v4942_v60 }
 0xcec   :  { %v1843_v5 = vsel %vm70_vm0, %v1839_v63, 0.0  ;;  %v1838_v2 = vmul.f32 %v4944_v62, %v4944_v62 }
 0xced   :  { %1844 = vadd.xlane.f32.xlu0 %v1843_v5 }
 0xcee   :  { %v1840_v0 = vsel %vm70_vm0, %v1838_v2, 0.0 }
 0xcef   :  { %1841 = vadd.xlane.f32.xlu1 %v1840_v0 }
 0xd76   :  { %v1845_v18 = vpop.xlane.xlu0 %1844 }
 0xd77   :  { %v1847_v11 = vmul.f32 0.032258064, %v1845_v18 }
 0xd78   :  { %v1842_v19 = vpop.xlane.xlu1 %1841 }
 0xd79   :  { %4551 = vrsqrt.f32 %v1847_v11  ;;  %v1846_v20 = vmul.f32 0.032258064, %v1842_v19  ;;  %vm1857_vm5 = vcmp.eq.f32.partialorder %v1847_v11, inf  ;;  %v1860_v23 = vand.u32 2147483648, %v1847_v11 }
 0xd7a   :  { %vm1859_vm6 = vcmp.eq.f32.partialorder %v1847_v11, 0.0 }
 0xd7b   :  { %4553 = vrsqrt.f32 %v1846_v20  ;;  %vm1850_vm7 = vcmp.eq.f32.partialorder %v1846_v20, inf  ;;  %v1853_v31 = vand.u32 2147483648, %v1846_v20  ;;  %vm1852_vm8 = vcmp.eq.f32.partialorder %v1846_v20, 0.0 }
 0xd86   :  { %v4552_v21 = vpop.eup %4551 }
 0xd87   :  { %v1856_v22 = vmul.f32 %v4552_v21, %v1847_v11 }
 0xd88   :  { %v4554_v24 = vpop.eup %4553 }
 0xd89   :  { %v1858_v25 = vsel %vm1857_vm5, %v1847_v11, %v1856_v22  ;;  %v1849_v27 = vmul.f32 %v4554_v24, %v1846_v20 }
 0xd8a   :  { %v1861_v26 = vsel %vm1859_vm6, %v1860_v23, %v1858_v25 }
 0xd8b   :  { %v1863_v29 = vadd.f32 1e-06, %v1861_v26  ;;  %v1851_v32 = vsel %vm1850_vm7, %v1846_v20, %v1849_v27 }
 0xd8c   :  { %v1854_v33 = vsel %vm1852_vm8, %v1853_v31, %v1851_v32 }
 0xd8d   :  { %4555 = vrcp.f32 %v1863_v29  ;;  %v1862_v34 = vadd.f32 1e-06, %v1854_v33 }
 0xd8f   :  { %4557 = vrcp.f32 %v1862_v34 }
 0xd9a   :  { %v4556_v35 = vpop.eup %4555 }
 0xd9b   :  { %v1867_v28 = vmul.f32 %v4556_v35, %v4942_v60 }
 0xd9c   :  { %v4558_v37 = vpop.eup %4557 }
 0xd9d   :  { %v1866_v30 = vmul.f32 %v4558_v37, %v4944_v62  ;;  %v1875_v38 = vmul.f32 %v4073_v36, %v1867_v28 }
 0xd9f   :  { %v1874_v40 = vmul.f32 %v4073_v36, %v1866_v30  ;;  %v4998_v41 = vadd.f32 %v4074_v39, %v1875_v38 }
 0xda1   :  { %v4996_v14 = vadd.f32 %v4074_v39, %v1874_v40 }
 0xda3   :  { %4362 = vmatprep.mubr.msk.f32.mxu0 %vm70_vm0, %v4996_v14 }
 0xda4   :  { %4363 = vmatmul.mubr.msk.f32.vlgmr.msra.gmra.mxu0 %vm70_vm0, %v4998_v41 }
 0xda5   :  { %4378 = vmatprep.mubr.msk.f32.mxu0 %vm4608_vm1, %v4607_v6  ;;  %4377 = vmatpush3.xpose.msk.msra.mxu0 %vm161_vm2, %v5010_v42 }
 0xda6   :  { %4386 = vmatprep.subr.mxu0 %v4607_v6 }
 0xe64   :  { %v5016_v43 = vpop.f32.mrf.mxu0 }
 0xe65   :  { %4384 = vmatmul.mubr.msk.f32.vlgmr.msra.gmra.mxu1 %vm161_vm2, %v5016_v43 }
 0xe66   :  { %v5020_v44 = vpop.f32.mrf.mxu0  ;;  %4393 = vmatprep.mubr.msk.f32.mxu1 %vm4608_vm1, %v4607_v6 }
 0xe67   :  { %4379 = vmatmul.mubr.msk.f32.vlgmr.msra.gmra.mxu0 %vm161_vm2, %v5020_v44 }
 0xe68   :  { %4388 = vmatprep.mubr.msk.f32.mxu0 %vm4608_vm1, %v4607_v6 }
 0xf25   :  { %v2208_v47 = vpop.f32.mrf.mxu1 }
 0xf26   :  { %v2213_v48 = vmul.f32 0.125, %v2208_v47 }
 0xf27   :  { %v2132_v7 = vpop.f32.mrf.mxu0  ;;  %v4385_v49 = vpop.f32.mrf.mxu1 }
 0xf28   :  { %v2212_v50 = vmul.f32 0.125, %v2132_v7  ;;  %v2217_v51 = vsel %vm2215_vm9, -1e+09, %v2213_v48 }
 0xf29   :  { %v4380_v52 = vpop.f32.mrf.mxu0  ;;  %v2221_v53 = vsel %vm161_vm2, %v2217_v51, -inf }
 0xf2a   :  { %2222 = vmax.xlane.f32.xlu0 %v2221_v53  ;;  %v2216_v54 = vsel %vm2214_vm10, -1e+09, %v2212_v50  ;;  %v2054_v50 = vld [vmem:[%s5289_s10] sm:$0xff] }
 0xf2b   :  { %v2218_v55 = vsel %vm161_vm2, %v2216_v54, -inf }
 0xf2c   :  { %2219 = vmax.xlane.f32.xlu1 %v2218_v55 }
 0xf3d   :  { %2240 = vrot.lane.b32.xlu1 %v5010_v42, %s4609_s29 }
 0xf40   :  { %2316 = vrot.lane.b32.xlu0 %v5006_v8, %s4609_s29 }
 0xf41   :  { %2394 = vrot.lane.b32.xlu1 %v5010_v42, %s4611_s2 }
 0xf45   :  { %2472 = vrot.lane.b32.xlu1 %v5006_v8, %s4611_s2 }
 0xfb3   :  { %v2223_v56 = vpop.xlane.xlu0 %2222 }
 0xfb4   :  { %v2225_v57 = vsub.f32 %v2217_v51, %v2223_v56 }
 0xfb5   :  { %v2220_v58 = vpop.xlane.xlu1 %2219 }
 0xfb6   :  { %v2228_v59 = vmul.f32 1.442695, %v2225_v57  ;;  %v2224_v60 = vsub.f32 %v2216_v54, %v2220_v58 }
 0xfb7   :  { %v2317_v61 = vpop.permute.xlu0 %2316 }
 0xfb8   :  { %4559 = vpow2.f32 %v2228_v59  ;;  %v2226_v62 = vmul.f32 1.442695, %v2224_v60  ;;  %4392 = vmatpush3.msra.mxu1 %v2317_v61  ;;  %v2055_v59 = vld [vmem:[%s5289_s10 + $0x8] sm:$0xff] }
 0xfb9   :  { %v2241_v63 = vpop.permute.xlu1 %2240  ;;  %4401 = vmatprep.subr.mxu1 %v4607_v6 }
 0xfba   :  { %4561 = vpow2.f32 %v2226_v62  ;;  %4387 = vmatpush3.msra.mxu0 %v2241_v63 }
 0xfbb   :  { %4396 = vmatprep.subr.mxu0 %v4607_v6 }
 0xfbd   :  { %v2395_v3 = vpop.permute.xlu1 %2394 }
 0xfc1   :  { %v2473_v4 = vpop.permute.xlu1 %2472 }
 0xfc5   :  { %v4560_v5 = vpop.eup %4559 }
 0xfc6   :  { %v2233_v2 = vsel %vm161_vm2, %v4560_v5, 0.0 }
 0xfc7   :  { %v4562_v0 = vpop.eup %4561  ;;  %2234 = vadd.xlane.f32.xlu0 %v2233_v2 }
 0xfc8   :  { %v2230_v1 = vsel %vm161_vm2, %v4562_v0, 0.0 }
 0xfc9   :  { %2231 = vadd.xlane.f32.xlu1 %v2230_v1 }
 0xfda   :  { %2470 = vrot.lane.b32.xlu1 %v5016_v43, %s4611_s2 }
 0xfdd   :  { %2392 = vrot.lane.b32.xlu0 %v5020_v44, %s4611_s2 }
0x1050   :  { %v2235_v9 = vpop.xlane.xlu0 %2234 }
0x1051   :  { %4563 = vrcp.f32 %v2235_v9 }
0x1052   :  { %v2232_v10 = vpop.xlane.xlu1 %2231 }
0x1053   :  { %4565 = vrcp.f32 %v2232_v10 }
0x1054   :  { %v2393_v18 = vpop.permute.xlu0 %2392 }
0x1056   :  { %v2471_v17 = vpop.permute.xlu1 %2470 }
0x105e   :  { %v4564_v12 = vpop.eup %4563 }
0x105f   :  { %v2239_v13 = vmul.f32 %v4564_v12, %v4560_v5 }
0x1060   :  { %v4566_v15 = vpop.eup %4565 }
0x1061   :  { %4394 = vmatmul.mubr.msk.f32.vlgmr.msra.gmra.mxu1 %vm161_vm2, %v2239_v13  ;;  %v2238_v16 = vmul.f32 %v4566_v15, %v4562_v0 }
0x1062   :  { %4402 = vmatpush3.xpose.msk.msra.mxu1 %vm161_vm2, %v2473_v4  ;;  %4403 = vmatprep.mubr.msk.f32.mxu1 %vm4608_vm1, %v4607_v6 }
0x1063   :  { %4389 = vmatmul.mubr.msk.f32.vlgmr.msra.gmra.mxu0 %vm161_vm2, %v2238_v16  ;;  %4411 = vmatprep.subr.mxu1 %v4607_v6 }
0x1064   :  { %4397 = vmatpush3.xpose.msk.msra.mxu0 %vm161_vm2, %v2395_v3  ;;  %4398 = vmatprep.mubr.msk.f32.mxu0 %vm4608_vm1, %v4607_v6 }
0x1065   :  { %4404 = vmatmul.mubr.msk.f32.vlgmr.msra.gmra.mxu1 %vm161_vm2, %v2471_v17  ;;  %4406 = vmatprep.subr.mxu0 %v4607_v6 }
0x1066   :  { %4413 = vmatprep.mubr.msk.f32.mxu1 %vm4608_vm1, %v4607_v6 }
0x1067   :  { %4399 = vmatmul.mubr.msk.f32.vlgmr.msra.gmra.mxu0 %vm161_vm2, %v2393_v18 }
0x1068   :  { %4408 = vmatprep.mubr.msk.f32.mxu0 %vm4608_vm1, %v4607_v6 }
0x1121   :  { %v2388_v11 = vpop.f32.mrf.mxu1 }
0x1123   :  { %v2312_v19 = vpop.f32.mrf.mxu0  ;;  %v4395_v20 = vpop.f32.mrf.mxu1 }
0x1125   :  { %v4390_v21 = vpop.f32.mrf.mxu0  ;;  %v2544_v22 = vpop.f32.mrf.mxu1 }
0x1126   :  { %v2549_v23 = vmul.f32 0.125, %v2544_v22 }
0x1127   :  { %v2466_v24 = vpop.f32.mrf.mxu0  ;;  %v4405_v25 = vpop.f32.mrf.mxu1 }
0x1128   :  { %v2548_v26 = vmul.f32 0.125, %v2466_v24  ;;  %v2551_v27 = vsel %vm2215_vm9, -1e+09, %v2549_v23 }
0x1129   :  { %v4400_v29 = vpop.f32.mrf.mxu0  ;;  %v2555_v31 = vsel %vm161_vm2, %v2551_v27, -inf }
0x112a   :  { %2556 = vmax.xlane.f32.xlu1 %v2555_v31  ;;  %v2550_v32 = vsel %vm2214_vm10, -1e+09, %v2548_v26 }
0x112b   :  { %v2552_v33 = vsel %vm161_vm2, %v2550_v32, -inf }
0x112c   :  { %2553 = vmax.xlane.f32.xlu0 %v2552_v33 }
0x113b   :  { %2574 = vrot.lane.b32.xlu1 %v5010_v42, %s4612_s23 }
0x113f   :  { %2890 = vrot.lane.b32.xlu1 %v5010_v42, %s4614_s25 }
0x1143   :  { %2968 = vrot.lane.b32.xlu1 %v5006_v8, %s4614_s25 }
0x1147   :  { %2966 = vrot.lane.b32.xlu1 %v5016_v43, %s4614_s25 }
0x11b3   :  { %v2557_v34 = vpop.xlane.xlu1 %2556 }
0x11b4   :  { %v2559_v35 = vsub.f32 %v2551_v27, %v2557_v34 }
0x11b5   :  { %v2554_v28 = vpop.xlane.xlu0 %2553 }
0x11b6   :  { %v2562_v36 = vmul.f32 1.442695, %v2559_v35  ;;  %v2558_v37 = vsub.f32 %v2550_v32, %v2554_v28 }
0x11b7   :  { %v2575_v30 = vpop.permute.xlu1 %2574 }
0x11b8   :  { %4567 = vpow2.f32 %v2562_v36  ;;  %v2560_v38 = vmul.f32 1.442695, %v2558_v37  ;;  %4407 = vmatpush3.msra.mxu0 %v2575_v30  ;;  %v2056_v30 = vld [vmem:[%s5289_s10 + $0x10] sm:$0xff] }
0x11b9   :  { %4416 = vmatprep.subr.mxu0 %v2055_v59 }
0x11ba   :  { %4569 = vpow2.f32 %v2560_v38 }
0x11bb   :  { %v2891_v52 = vpop.permute.xlu1 %2890 }
0x11bf   :  { %v2969_v56 = vpop.permute.xlu1 %2968 }
0x11c3   :  { %v2967_v58 = vpop.permute.xlu1 %2966 }
0x11c5   :  { %v4568_v39 = vpop.eup %4567 }
0x11c6   :  { %v2567_v40 = vsel %vm161_vm2, %v4568_v39, 0.0 }
0x11c7   :  { %v4570_v47 = vpop.eup %4569  ;;  %2568 = vadd.xlane.f32.xlu0 %v2567_v40 }
0x11c8   :  { %v2564_v48 = vsel %vm161_vm2, %v4570_v47, 0.0 }
0x11cb   :  { %2565 = vadd.xlane.f32.xlu0 %v2564_v48 }
0x11e1   :  { %2650 = vrot.lane.b32.xlu0 %v5006_v8, %s4612_s23 }
0x11e5   :  { %2888 = vrot.lane.b32.xlu0 %v5020_v44, %s4614_s25  ;;  %s5315_s25 = smov 104  }
0x1250   :  { %v2569_v7 = vpop.xlane.xlu0 %2568 }
0x1251   :  { %4571 = vrcp.f32 %v2569_v7 }
0x1254   :  { %v2566_v49 = vpop.xlane.xlu0 %2565 }
0x1255   :  { %4573 = vrcp.f32 %v2566_v49 }
0x1258   :  { %v2651_v51 = vpop.permute.xlu0 %2650 }
0x1259   :  { %4412 = vmatpush3.msra.mxu1 %v2651_v51 }
0x125a   :  { %4421 = vmatprep.subr.mxu1 %v2054_v50 }
0x125c   :  { %v2889_v1 = vpop.permute.xlu0 %2888 }
0x125e   :  { %v4572_v53 = vpop.eup %4571 }
0x125f   :  { %v2573_v54 = vmul.f32 %v4572_v53, %v4568_v39 }
0x1261   :  { %4414 = vmatmul.mubr.msk.f32.vlgmr.msra.gmra.mxu1 %vm161_vm2, %v2573_v54 }
0x1262   :  { %v4574_v55 = vpop.eup %4573  ;;  %4423 = vmatprep.mubr.msk.f32.mxu1 %vm161_vm2, %v2312_v19  ;;  %4422 = vmatpush3.msra.mxu1 %v2054_v50 }
0x1263   :  { %4431 = vmatprep.subr.mxu1 %v4607_v6  ;;  %v2572_v57 = vmul.f32 %v4574_v55, %v4570_v47 }
0x1265   :  { %4409 = vmatmul.mubr.msk.f32.vlgmr.msra.gmra.mxu0 %vm161_vm2, %v2572_v57  ;;  %4424 = vmatmul.mubr.msk.f32.vlgmr.msra.gmra.mxu1 %vm161_vm2, %v2388_v11 }
0x1266   :  { %4432 = vmatpush3.xpose.msk.msra.mxu1 %vm161_vm2, %v2969_v56  ;;  %4433 = vmatprep.mubr.msk.f32.mxu1 %vm4608_vm1, %v4607_v6 }
0x1267   :  { %4441 = vmatprep.subr.mxu1 %v4607_v6  ;;  %4417 = vmatpush3.msra.mxu0 %v2055_v59 }
0x1268   :  { %4426 = vmatprep.subr.mxu0 %v4607_v6 }
0x1269   :  { %4434 = vmatmul.mubr.msk.f32.vlgmr.msra.gmra.mxu1 %vm161_vm2, %v2967_v58 }
0x126a   :  { %4443 = vmatprep.mubr.msk.f32.mxu1 %vm4608_vm1, %v4607_v6 }
0x1321   :  { %v2722_v60 = vpop.f32.mrf.mxu1 }
0x1323   :  { %v4415_v61 = vpop.f32.mrf.mxu1 }
0x1325   :  { %v2646_v62 = vpop.f32.mrf.mxu0  ;;  %v5117_v63 = vpop.f32.mrf.mxu1 }
0x1326   :  { %4418 = vmatprep.mubr.msk.f32.mxu0 %vm161_vm2, %v2646_v62 }
0x1327   :  { %v4410_v5 = vpop.f32.mrf.mxu0  ;;  %4419 = vmatmul.mubr.msk.f32.vlgmr.msra.gmra.mxu0 %vm161_vm2, %v2722_v60  ;;  %v5121_v2 = vpop.f32.mrf.mxu1 }
0x1328   :  { %4427 = vmatpush3.xpose.msk.msra.mxu0 %vm161_vm2, %v2891_v52  ;;  %4428 = vmatprep.mubr.msk.f32.mxu0 %vm4608_vm1, %v4607_v6 }
0x1329   :  { %v3040_v0 = vpop.f32.mrf.mxu1  ;;  %4436 = vmatprep.subr.mxu0 %v4607_v6 }
0x132a   :  { %v3045_v3 = vmul.f32 0.125, %v3040_v0 }
0x132b   :  { %4429 = vmatmul.mubr.msk.f32.vlgmr.msra.gmra.mxu0 %vm161_vm2, %v2889_v1  ;;  %v4435_v4 = vpop.f32.mrf.mxu1 }
0x132c   :  { %v3047_v9 = vsel %vm2215_vm9, -1e+09, %v3045_v3  ;;  %4438 = vmatprep.mubr.msk.f32.mxu0 %vm4608_vm1, %v4607_v6 }
0x132d   :  { %v3051_v10 = vsel %vm161_vm2, %v3047_v9, -inf }
0x132e   :  { %3052 = vmax.xlane.f32.xlu1 %v3051_v10 }
0x133f   :  { %3070 = vrot.lane.b32.xlu1 %v5010_v42, %s4615_s5 }
0x1343   :  { %3307 = vrot.lane.b32.xlu1 %v5010_v42, %s5315_s25 }
0x1347   :  { %3385 = vrot.lane.b32.xlu1 %v5006_v8, %s5315_s25 }
0x134b   :  { %3383 = vrot.lane.b32.xlu1 %v5016_v43, %s5315_s25 }
0x13b7   :  { %v3053_v12 = vpop.xlane.xlu1 %3052 }
0x13b8   :  { %v3055_v15 = vsub.f32 %v3047_v9, %v3053_v12 }
0x13ba   :  { %v3058_v16 = vmul.f32 1.442695, %v3055_v15 }
0x13bb   :  { %v3071_v13 = vpop.permute.xlu1 %3070 }
0x13bc   :  { %4437 = vmatpush3.msra.mxu0 %v3071_v13  ;;  %4575 = vpow2.f32 %v3058_v16 }
0x13bd   :  { %4446 = vmatprep.subr.mxu0 %v2056_v30 }
0x13bf   :  { %v3308_v28 = vpop.permute.xlu1 %3307 }
0x13c3   :  { %v3386_v50 = vpop.permute.xlu1 %3385 }
0x13c7   :  { %v3384_v53 = vpop.permute.xlu1 %3383 }
0x13c9   :  { %v4576_v23 = vpop.eup %4575 }
0x13ca   :  { %v3063_v43 = vsel %vm161_vm2, %v4576_v23, 0.0 }
0x13e7   :  { %v5141_v17 = vpop.f32.mrf.mxu0 }
0x13e8   :  { %v2885_v58 = vadd.f32 %v5117_v63, %v5141_v17 }
0x13e9   :  { %v5143_v18 = vpop.f32.mrf.mxu0 }
0x13ea   :  { %v2880_v60 = vadd.f32 %v5121_v2, %v5143_v18 }
0x13eb   :  { %v2962_v11 = vpop.f32.mrf.mxu0 }
0x13ec   :  { %v3044_v19 = vmul.f32 0.125, %v2962_v11 }
0x13ed   :  { %v4430_v20 = vpop.f32.mrf.mxu0 }
0x13ee   :  { %v3046_v21 = vsel %vm2214_vm10, -1e+09, %v3044_v19 }
0x13ef   :  { %v3048_v22 = vsel %vm161_vm2, %v3046_v21, -inf }
0x13f0   :  { %3049 = vmax.xlane.f32.xlu0 %v3048_v22 }
0x13f4   :  { %3064 = vadd.xlane.f32.xlu0 %v3063_v43 }
0x1479   :  { %v3050_v24 = vpop.xlane.xlu0 %3049 }
0x147a   :  { %v3054_v25 = vsub.f32 %v3046_v21, %v3050_v24 }
0x147c   :  { %v3056_v26 = vmul.f32 1.442695, %v3054_v25 }
0x147d   :  { %v3065_v31 = vpop.xlane.xlu0 %3064 }
0x147e   :  { %4577 = vpow2.f32 %v3056_v26 }
0x147f   :  { %4579 = vrcp.f32 %v3065_v31 }
0x148b   :  { %v4578_v27 = vpop.eup %4577 }
0x148c   :  { %v3060_v29 = vsel %vm161_vm2, %v4578_v27, 0.0  ;;  %v4580_v33 = vpop.eup %4579 }
0x148d   :  { %3061 = vadd.xlane.f32.xlu0 %v3060_v29  ;;  %v3069_v35 = vmul.f32 %v4580_v33, %v4576_v23 }
0x14a3   :  { %3146 = vrot.lane.b32.xlu0 %v5006_v8, %s4615_s5 }
0x14a7   :  { %3305 = vrot.lane.b32.xlu0 %v5020_v44, %s5315_s25 }
0x1516   :  { %v3062_v32 = vpop.xlane.xlu0 %3061 }
0x1517   :  { %4581 = vrcp.f32 %v3062_v32 }
0x151a   :  { %v3147_v34 = vpop.permute.xlu0 %3146 }
0x151b   :  { %4442 = vmatpush3.msra.mxu1 %v3147_v34 }
0x151c   :  { %4444 = vmatmul.mubr.msk.f32.vlgmr.msra.gmra.mxu1 %vm161_vm2, %v3069_v35  ;;  %4451 = vmatprep.subr.mxu1 %v4607_v6 }
0x151d   :  { %4452 = vmatpush3.xpose.msk.msra.mxu1 %vm161_vm2, %v3308_v28  ;;  %4453 = vmatprep.mubr.msk.f32.mxu1 %vm4608_vm1, %v4607_v6 }
0x151e   :  { %v3306_v36 = vpop.permute.xlu0 %3305  ;;  %4461 = vmatprep.subr.mxu1 %v4607_v6 }
0x1520   :  { %4454 = vmatmul.mubr.msk.f32.vlgmr.msra.gmra.mxu1 %vm161_vm2, %v3306_v36 }
0x1521   :  { %4463 = vmatprep.mubr.msk.f32.mxu1 %vm4608_vm1, %v4607_v6 }
0x1524   :  { %v4582_v44 = vpop.eup %4581 }
0x1525   :  { %v3068_v37 = vmul.f32 %v4582_v44, %v4578_v27 }
0x1527   :  { %4439 = vmatmul.mubr.msk.f32.vlgmr.msra.gmra.mxu0 %vm161_vm2, %v3068_v37 }
0x1528   :  { %4447 = vmatpush3.msra.mxu0 %v2056_v30  ;;  %v3785_v30 = vld [vmem:[%s5290_s13 + $0x18] sm:$0xff] }
0x1529   :  { %4456 = vmatprep.subr.mxu0 %v4607_v6 }
0x15dc   :  { %v3218_v38 = vpop.f32.mrf.mxu1 }
0x15de   :  { %v4445_v39 = vpop.f32.mrf.mxu1 }
0x15df   :  { %v3783_v39 = vld [vmem:[%s5290_s13 + $0x8] sm:$0xff] }
0x15e0   :  { %v3379_v40 = vpop.f32.mrf.mxu1 }
0x15e1   :  { %v3461_v47 = vmul.f32 0.125, %v3379_v40  ;;  %v3782_v40 = vld [vmem:[%s5290_s13] sm:$0xff] }
0x15e2   :  { %v4455_v48 = vpop.f32.mrf.mxu1 }
0x15e3   :  { %v3463_v7 = vsel %vm2214_vm10, -1e+09, %v3461_v47  ;;  %v3883_v47 = vld [vmem:[%s5291_s15 + $0x38] sm:$0xff]  ;;  %v3882_v48 = vld [vmem:[%s5291_s15 + $0x30] sm:$0xff] }
0x15e4   :  { %v3465_v49 = vsel %vm161_vm2, %v3463_v7, -inf }
0x15e5   :  { %3466 = vmax.xlane.f32.xlu0 %v3465_v49  ;;  %v3880_v49 = vld [vmem:[%s5291_s15 + $0x20] sm:$0xff] }
0x15e7   :  { %v3142_v51 = vpop.f32.mrf.mxu0 }
0x15e8   :  { %4448 = vmatprep.mubr.msk.f32.mxu0 %vm161_vm2, %v3142_v51 }
0x15e9   :  { %v4440_v52 = vpop.f32.mrf.mxu0  ;;  %4449 = vmatmul.mubr.msk.f32.vlgmr.msra.gmra.mxu0 %vm161_vm2, %v3218_v38  ;;  %v3784_v38 = vld [vmem:[%s5290_s13 + $0x10] sm:$0xff] }
0x15ea   :  { %4457 = vmatpush3.xpose.msk.msra.mxu0 %vm161_vm2, %v3386_v50  ;;  %4458 = vmatprep.mubr.msk.f32.mxu0 %vm4608_vm1, %v4607_v6 }
0x15eb   :  { %4466 = vmatprep.subr.mxu0 %v4607_v6 }
0x15ed   :  { %4459 = vmatmul.mubr.msk.f32.vlgmr.msra.gmra.mxu0 %vm161_vm2, %v3384_v53 }
0x15ee   :  { %4468 = vmatprep.mubr.msk.f32.mxu0 %vm4608_vm1, %v4607_v6 }
0x166e   :  { %v3467_v46 = vpop.xlane.xlu0 %3466 }
0x166f   :  { %v3471_v54 = vsub.f32 %v3463_v7, %v3467_v46  ;;  %v3881_v7 = vld [vmem:[%s5291_s15 + $0x28] sm:$0xff] }
0x1671   :  { %v3473_v55 = vmul.f32 1.442695, %v3471_v54 }
0x1673   :  { %4583 = vpow2.f32 %v3473_v55 }
0x1680   :  { %v4584_v56 = vpop.eup %4583 }
0x1681   :  { %v3477_v57 = vsel %vm161_vm2, %v4584_v56, 0.0 }
0x1682   :  { %3478 = vadd.xlane.f32.xlu0 %v3477_v57 }
0x16a9   :  { %v4450_v59 = vpop.f32.mrf.mxu0 }
0x16aa   :  { %v3304_v61 = vadd.f32 %v4450_v59, %v2885_v58 }
0x16ab   :  { %v3294_v62 = vpop.f32.mrf.mxu0 }
0x16ac   :  { %v3303_v5 = vadd.f32 %v3294_v62, %v2880_v60 }
0x16ad   :  { %v3457_v0 = vpop.f32.mrf.mxu0 }
0x16ae   :  { %v3462_v6 = vmul.f32 0.125, %v3457_v0 }
0x16af   :  { %v4460_v1 = vpop.f32.mrf.mxu0 }
0x16b0   :  { %v3464_v3 = vsel %vm2215_vm9, -1e+09, %v3462_v6 }
0x16b1   :  { %v3468_v4 = vsel %vm161_vm2, %v3464_v3, -inf }
0x16b2   :  { %3469 = vmax.xlane.f32.xlu1 %v3468_v4 }
0x16c3   :  { %3487 = vrot.lane.b32.xlu1 %v5010_v42, %s5316_s24  ;;  %v2057_v42 = vld [vmem:[%s5289_s10 + $0x18] sm:$0xff] }
0x170b   :  { %v3479_v63 = vpop.xlane.xlu0 %3478 }
0x170c   :  { %4585 = vrcp.f32 %v3479_v63 }
0x1719   :  { %v4586_v10 = vpop.eup %4585 }
0x171a   :  { %v3485_v15 = vmul.f32 %v4586_v10, %v4584_v56  ;;  %v4112_v10 = vld [vmem:[%s5293_s12] ss:$0 sm:$0xff] }
0x173b   :  { %v3470_v9 = vpop.xlane.xlu1 %3469 }
0x173c   :  { %v3472_v2 = vsub.f32 %v3464_v3, %v3470_v9  ;;  %v4111_v3 = vld [vmem:[%s5292_s11] ss:$0 sm:$0xff] }
0x173e   :  { %v3475_v12 = vmul.f32 1.442695, %v3472_v2 }
0x173f   :  { %v3488_v13 = vpop.permute.xlu1 %3487 }
0x1740   :  { %4587 = vpow2.f32 %v3475_v12  ;;  %4462 = vmatpush3.msra.mxu1 %v3488_v13 }
0x1741   :  { %4464 = vmatmul.mubr.msk.f32.vlgmr.msra.gmra.mxu1 %vm161_vm2, %v3485_v15  ;;  %4471 = vmatprep.subr.mxu1 %v2057_v42  ;;  %v3879_v15 = vld [vmem:[%s5291_s15 + $0x18] sm:$0xff] }
0x1742   :  { %4472 = vmatpush3.msra.mxu1 %v2057_v42  ;;  %v3876_v42 = vld [vmem:[%s5291_s15] sm:$0xff] }
0x1743   :  { %4487 = vmatprep.subr.mxu1 %v3883_v47 }
0x174d   :  { %v4588_v45 = vpop.eup %4587 }
0x174e   :  { %v3480_v16 = vsel %vm161_vm2, %v4588_v45, 0.0 }
0x174f   :  { %3481 = vadd.xlane.f32.xlu0 %v3480_v16  ;;  %v3877_v16 = vld [vmem:[%s5291_s15 + $0x8] sm:$0xff] }
0x1765   :  { %3563 = vrot.lane.b32.xlu0 %v5006_v8, %s5316_s24 }
0x17d8   :  { %v3482_v17 = vpop.xlane.xlu0 %3481 }
0x17d9   :  { %4589 = vrcp.f32 %v3482_v17  ;;  %v4113_v17 = vld [vmem:[%s5294_s14] ss:$0 sm:$0xff] }
0x17dc   :  { %v3564_v18 = vpop.permute.xlu0 %3563 }
0x17dd   :  { %4467 = vmatpush3.msra.mxu0 %v3564_v18 }
0x17de   :  { %4476 = vmatprep.subr.mxu0 %v3785_v30 }
0x17e6   :  { %v4590_v11 = vpop.eup %4589 }
0x17e7   :  { %v3486_v19 = vmul.f32 %v4590_v11, %v4588_v45  ;;  %v3878_v45 = vld [vmem:[%s5291_s15 + $0x10] sm:$0xff] }
0x17e9   :  { %4469 = vmatmul.mubr.msk.f32.vlgmr.msra.gmra.mxu0 %vm161_vm2, %v3486_v19 }
0x17ea   :  { %4477 = vmatpush3.msra.mxu0 %v3785_v30 }
0x17eb   :  { %4478 = vmatprep.subr.mxu0 %v3784_v38 }
0x17ec   :  { %4479 = vmatpush3.msra.mxu0 %v3784_v38 }
0x17ed   :  { %4480 = vmatprep.subr.mxu0 %v3783_v39 }
0x17ee   :  { %4481 = vmatpush3.msra.mxu0 %v3783_v39 }
0x17ef   :  { %4482 = vmatprep.subr.mxu0 %v3782_v40 }
0x17f0   :  { %4483 = vmatpush3.msra.mxu0 %v3782_v40 }
0x1801   :  { %v3559_v20 = vpop.f32.mrf.mxu1 }
0x1802   :  { %4473 = vmatprep.mubr.msk.f32.mxu1 %vm161_vm2, %v3559_v20 }
0x1803   :  { %v4465_v21 = vpop.f32.mrf.mxu1 }
0x18a9   :  { %v3635_v22 = vpop.f32.mrf.mxu0 }
0x18aa   :  { %4474 = vmatmul.mubr.msk.f32.vlgmr.msra.gmra.mxu1 %vm161_vm2, %v3635_v22 }
0x18ab   :  { %v4470_v8 = vpop.f32.mrf.mxu0  ;;  %4488 = vmatpush3.msra.mxu1 %v3883_v47 }
0x18ac   :  { %4489 = vmatprep.subr.mxu1 %v3882_v48  ;;  %v4116_v8 = vld [vmem:[%s5295_s16] ss:$0 sm:$0xff] }
0x18ad   :  { %4490 = vmatpush3.msra.mxu1 %v3882_v48 }
0x18ae   :  { %4491 = vmatprep.subr.mxu1 %v3881_v7 }
0x18af   :  { %4492 = vmatpush3.msra.mxu1 %v3881_v7 }
0x18b0   :  { %4493 = vmatprep.subr.mxu1 %v3880_v49 }
0x18b1   :  { %4494 = vmatpush3.msra.mxu1 %v3880_v49 }
0x18b2   :  { %4495 = vmatprep.subr.mxu1 %v3879_v15 }
0x18b3   :  { %4496 = vmatpush3.msra.mxu1 %v3879_v15 }
0x18b4   :  { %4497 = vmatprep.subr.mxu1 %v3878_v45 }
0x18b5   :  { %4498 = vmatpush3.msra.mxu1 %v3878_v45 }
0x18b6   :  { %4499 = vmatprep.subr.mxu1 %v3877_v16 }
0x18b7   :  { %4500 = vmatpush3.msra.mxu1 %v3877_v16 }
0x18b8   :  { %4501 = vmatprep.subr.mxu1 %v3876_v42 }
0x18b9   :  { %4502 = vmatpush3.msra.mxu1 %v3876_v42 }
0x196a   :  { %v4475_v23 = vpop.f32.mrf.mxu1 }
0x196b   :  { %v3721_v43 = vadd.f32 %v4475_v23, %v3304_v61 }
0x196c   :  { %v3711_v24 = vpop.f32.mrf.mxu1 }
0x196d   :  { %v3720_v25 = vadd.f32 %v3711_v24, %v3303_v5  ;;  %v3723_v26 = vadd.f32 %v3721_v43, %v4998_v41 }
0x196f   :  { %v3729_v27 = vsel %vm70_vm0, %v3723_v26, 0.0  ;;  %v3722_v29 = vadd.f32 %v3720_v25, %v4996_v14 }
0x1970   :  { %3730 = vadd.xlane.f32.xlu0 %v3729_v27 }
0x1971   :  { %v3726_v31 = vsel %vm70_vm0, %v3722_v29, 0.0 }
0x1972   :  { %3727 = vadd.xlane.f32.xlu1 %v3726_v31 }
0x19f9   :  { %v3731_v32 = vpop.xlane.xlu0 %3730 }
0x19fa   :  { %v3733_v33 = vmul.f32 0.03125, %v3731_v32 }
0x19fb   :  { %v3728_v34 = vpop.xlane.xlu1 %3727 }
0x19fc   :  { %v3735_v35 = vsub.f32 %v3723_v26, %v3733_v33  ;;  %v3732_v28 = vmul.f32 0.03125, %v3728_v34 }
0x19fe   :  { %v5204_v36 = vsub.f32 %v3722_v29, %v3732_v28  ;;  %v3737_v44 = vmul.f32 %v3735_v35, %v3735_v35 }
0x1a00   :  { %v3741_v37 = vsel %vm70_vm0, %v3737_v44, 0.0  ;;  %v3736_v41 = vmul.f32 %v5204_v36, %v5204_v36 }
0x1a01   :  { %3742 = vadd.xlane.f32.xlu0 %v3741_v37 }
0x1a02   :  { %v3738_v14 = vsel %vm70_vm0, %v3736_v41, 0.0 }
0x1a03   :  { %3739 = vadd.xlane.f32.xlu1 %v3738_v14 }
0x1a8a   :  { %v3743_v50 = vpop.xlane.xlu0 %3742 }
0x1a8b   :  { %v3745_v51 = vmul.f32 0.032258064, %v3743_v50 }
0x1a8c   :  { %v3740_v52 = vpop.xlane.xlu1 %3739 }
0x1a8d   :  { %4591 = vrsqrt.f32 %v3745_v51  ;;  %v3744_v53 = vmul.f32 0.032258064, %v3740_v52  ;;  %vm3755_vm11 = vcmp.eq.f32.partialorder %v3745_v51, inf  ;;  %v3758_v55 = vand.u32 2147483648, %v3745_v51 }
0x1a8e   :  { %vm3757_vm12 = vcmp.eq.f32.partialorder %v3745_v51, 0.0 }
0x1a8f   :  { %4593 = vrsqrt.f32 %v3744_v53  ;;  %vm3748_vm13 = vcmp.eq.f32.partialorder %v3744_v53, inf  ;;  %v3751_v61 = vand.u32 2147483648, %v3744_v53  ;;  %vm3750_vm14 = vcmp.eq.f32.partialorder %v3744_v53, 0.0 }
0x1a9a   :  { %v4592_v46 = vpop.eup %4591 }
0x1a9b   :  { %v3754_v54 = vmul.f32 %v4592_v46, %v3745_v51 }
0x1a9c   :  { %v4594_v56 = vpop.eup %4593 }
0x1a9d   :  { %v3756_v57 = vsel %vm3755_vm11, %v3745_v51, %v3754_v54  ;;  %v3747_v59 = vmul.f32 %v4594_v56, %v3744_v53 }
0x1a9e   :  { %v3759_v58 = vsel %vm3757_vm12, %v3758_v55, %v3756_v57 }
0x1a9f   :  { %v3761_v60 = vadd.f32 1e-06, %v3759_v58  ;;  %v3749_v62 = vsel %vm3748_vm13, %v3744_v53, %v3747_v59  ;;  %v4119_v58 = vld [vmem:[%s5296_s17] ss:$0 sm:$0xff] }
0x1aa0   :  { %v3752_v5 = vsel %vm3750_vm14, %v3751_v61, %v3749_v62 }
0x1aa1   :  { %4595 = vrcp.f32 %v3761_v60  ;;  %v3760_v0 = vadd.f32 1e-06, %v3752_v5  ;;  %v4120_v60 = vld [vmem:[%s5297_s18] ss:$0 sm:$0xff] }
0x1aa3   :  { %4597 = vrcp.f32 %v3760_v0 }
0x1aae   :  { %v4596_v6 = vpop.eup %4595 }
0x1aaf   :  { %v3765_v1 = vmul.f32 %v4596_v6, %v3735_v35 }
0x1ab0   :  { %v4598_v4 = vpop.eup %4597 }
0x1ab1   :  { %v3764_v63 = vmul.f32 %v4598_v4, %v5204_v36  ;;  %v3773_v9 = vmul.f32 %v4111_v3, %v3765_v1 }
0x1ab3   :  { %v3772_v2 = vmul.f32 %v4111_v3, %v3764_v63  ;;  %v3781_v13 = vadd.f32 %v4112_v10, %v3773_v9 }
0x1ab5   :  { %v3780_v12 = vadd.f32 %v4112_v10, %v3772_v2 }
0x1ab7   :  { %4484 = vmatprep.mubr.msk.f32.mxu0 %vm70_vm0, %v3780_v12 }
0x1ab8   :  { %4485 = vmatmul.mubr.msk.f32.vlgmr.msra.gmra.mxu0 %vm70_vm0, %v3781_v13 }
0x1b78   :  { %v4486_v18 = vpop.f32.mrf.mxu0 }
0x1b79   :  { %v3871_v11 = vadd.f32 %v4486_v18, %v4113_v17 }
0x1b7a   :  { %v3865_v19 = vpop.f32.mrf.mxu0 }
0x1b7b   :  { %v3866_v20 = vadd.f32 %v4113_v17, %v3865_v19  ;;  %v3875_v22 = vmax.f32 %v3871_v11, 0.0 }
0x1b7d   :  { %v3874_v21 = vmax.f32 %v3866_v20, 0.0 }
0x1b7f   :  { %4503 = vmatprep.mubr.msk.f32.mxu1 %vm3891_vm15, %v3874_v21 }
0x1b80   :  { %4504 = vmatmul.mubr.msk.f32.vlgmr.msra.gmra.mxu1 %vm3891_vm15, %v3875_v22 }
0x1c40   :  { %v4505_v23 = vpop.f32.mrf.mxu1 }
0x1c41   :  { %v3970_v43 = vadd.f32 %v4505_v23, %v4116_v8 }
0x1c42   :  { %v3964_v24 = vpop.f32.mrf.mxu1 }
0x1c43   :  { %v3965_v25 = vadd.f32 %v4116_v8, %v3964_v24  ;;  %v3974_v26 = vadd.f32 %v3970_v43, %v3781_v13 }
0x1c45   :  { %v3980_v27 = vsel %vm70_vm0, %v3974_v26, 0.0  ;;  %v3973_v29 = vadd.f32 %v3965_v25, %v3780_v12 }
0x1c46   :  { %3981 = vadd.xlane.f32.xlu0 %v3980_v27 }
0x1c47   :  { %v3977_v31 = vsel %vm70_vm0, %v3973_v29, 0.0 }
0x1c48   :  { %3978 = vadd.xlane.f32.xlu1 %v3977_v31 }
0x1ccf   :  { %v3982_v32 = vpop.xlane.xlu0 %3981 }
0x1cd0   :  { %v3984_v33 = vmul.f32 0.03125, %v3982_v32 }
0x1cd1   :  { %v3979_v34 = vpop.xlane.xlu1 %3978 }
0x1cd2   :  { %v3986_v35 = vsub.f32 %v3974_v26, %v3984_v33  ;;  %v3983_v28 = vmul.f32 0.03125, %v3979_v34 }
0x1cd4   :  { %v3985_v36 = vsub.f32 %v3973_v29, %v3983_v28  ;;  %v3988_v44 = vmul.f32 %v3986_v35, %v3986_v35 }
0x1cd6   :  { %v3992_v37 = vsel %vm70_vm0, %v3988_v44, 0.0  ;;  %v3987_v41 = vmul.f32 %v3985_v36, %v3985_v36 }
0x1cd7   :  { %3993 = vadd.xlane.f32.xlu0 %v3992_v37 }
0x1cd8   :  { %v3989_v14 = vsel %vm70_vm0, %v3987_v41, 0.0 }
0x1cd9   :  { %3990 = vadd.xlane.f32.xlu1 %v3989_v14 }
0x1d60   :  { %v3994_v30 = vpop.xlane.xlu0 %3993 }
0x1d61   :  { %v3996_v38 = vmul.f32 0.032258064, %v3994_v30 }
0x1d62   :  { %v3991_v39 = vpop.xlane.xlu1 %3990 }
0x1d63   :  { %4599 = vrsqrt.f32 %v3996_v38  ;;  %v3995_v40 = vmul.f32 0.032258064, %v3991_v39  ;;  %vm4006_vm1 = vcmp.eq.f32.partialorder %v3996_v38, inf  ;;  %v4009_v7 = vand.u32 2147483648, %v3996_v38 }
0x1d64   :  { %vm4008_vm2 = vcmp.eq.f32.partialorder %v3996_v38, 0.0 }
0x1d65   :  { %4601 = vrsqrt.f32 %v3995_v40  ;;  %vm3999_vm3 = vcmp.eq.f32.partialorder %v3995_v40, inf  ;;  %v4002_v46 = vand.u32 2147483648, %v3995_v40  ;;  %vm4001_vm4 = vcmp.eq.f32.partialorder %v3995_v40, 0.0 }
0x1d70   :  { %v4600_v47 = vpop.eup %4599 }
0x1d71   :  { %v4005_v48 = vmul.f32 %v4600_v47, %v3996_v38 }
0x1d72   :  { %v4602_v49 = vpop.eup %4601 }
0x1d73   :  { %v4007_v50 = vsel %vm4006_vm1, %v3996_v38, %v4005_v48  ;;  %v3998_v52 = vmul.f32 %v4602_v49, %v3995_v40 }
0x1d74   :  { %v4010_v51 = vsel %vm4008_vm2, %v4009_v7, %v4007_v50 }
0x1d75   :  { %v4012_v53 = vadd.f32 1e-06, %v4010_v51  ;;  %v4000_v54 = vsel %vm3999_vm3, %v3995_v40, %v3998_v52 }
0x1d76   :  { %v4003_v55 = vsel %vm4001_vm4, %v4002_v46, %v4000_v54 }
0x1d77   :  { %4603 = vrcp.f32 %v4012_v53  ;;  %v4011_v56 = vadd.f32 1e-06, %v4003_v55 }
0x1d79   :  { %4605 = vrcp.f32 %v4011_v56 }
0x1d84   :  { %v4604_v57 = vpop.eup %4603 }
0x1d85   :  { %v4016_v59 = vmul.f32 %v4604_v57, %v3986_v35 }
0x1d86   :  { %v4606_v61 = vpop.eup %4605 }
0x1d87   :  { %v4024_v62 = vmul.f32 %v4119_v58, %v4016_v59  ;;  %v4015_v5 = vmul.f32 %v4606_v61, %v3985_v36 }
0x1d89   :  { %v4032_v0 = vadd.f32 %v4120_v60, %v4024_v62  ;;  %v4023_v6 = vmul.f32 %v4119_v58, %v4015_v5 }
0x1d8b   :  { %4034 = vst.msk [vmem:[%s5298_s19 + $0x8] sm:$0xff] %vm70_vm0, %v4032_v0  ;;  %v4031_v1 = vadd.f32 %v4120_v60, %v4023_v6 }
0x1d8d   :  { %4033 = vst.msk [vmem:[%s5298_s19] sm:$0xff] %vm70_vm0, %v4031_v1 }

</bundles_post_ra>
